<compile_context>
chip_gen: v7x
topology: tpu7x:2x2x1
jax: 0.10.0
libtpu: 0.0.40
codegen_flags: <defaults>
</compile_context>

<pallas_src>
import functools

import jax
import jax.numpy as jnp
from jax.experimental import pallas as pl
from jax.experimental.pallas import tpu as pltpu


# ---------------------------------------------------------------------------
# Fused forward kernel (one batch tile per grid step)
# ---------------------------------------------------------------------------
def cnnet_kernel(x_ref, w1t_ref, b1_ref, w2t_ref, b2_ref,
                 wl1_ref, bl1_ref, wl2_ref, bl2_ref, o_ref, *, tb):
    # x_ref: (4, 7, TB, 28) -- image rows split by (row mod 4):
    #        x_ref[p, t, b, :] == x[b, 0, 4*t + p, :]
    n1 = 6 * tb  # rows per (dy, q) slab of the conv1 patch matrix

    # -------- conv1 (1->16, k=5) + maxpool2 + relu --------------------------
    # Patch rows ordered (dy, q, I', b); dot columns ordered (dx, r, J', c);
    # conv position (u, v) = (2*(2*I'+q)+dy, 2*(2*J'+r)+dx).
    c1 = None
    for ki in range(5):
        slabs = []
        for dy in range(2):
            for q in range(2):
                t = 2 * q + dy + ki
                p, off = t % 4, t // 4
                # x rows 4*I' + 2*q + dy + ki for I' = 0..5, all b -> (6, TB, 28)
                slabs.append(x_ref[p, off:off + 6].reshape(n1, 28))
        p1 = jnp.concatenate(slabs, axis=0)                       # (4*n1, 28)
        d = jnp.dot(p1, w1t_ref[ki], preferred_element_type=jnp.float32)
        c1 = d if c1 is None else c1 + d                          # (4*n1, 384)

    hp1 = jnp.maximum(c1[:2 * n1], c1[2 * n1:])                   # pool over dy
    wp1 = jnp.maximum(hp1[:, :192], hp1[:, 192:])                 # pool over dx
    f1 = jnp.maximum(wp1 + b1_ref[...], 0.0)                      # (2*n1, 192)
    # f1 row (q, I', b), lane (r, J', c) == pooled/relu conv1[b, 2I'+q, 2J'+r, c]

    # -------- conv2 (16->32, k=5) + maxpool2 + relu --------------------------
    c2 = None
    for ki2 in range(5):
        blocks = []
        for dy2 in range(2):
            t = dy2 + ki2
            q, a = t % 2, t // 2
            start = q * n1 + a * tb
            blocks.append(f1[start:start + 4 * tb, :])            # (4*TB, 192)
        p2 = jnp.concatenate(blocks, axis=0)                      # (8*TB, 192)
        d = jnp.dot(p2, w2t_ref[ki2], preferred_element_type=jnp.float32)
        c2 = d if c2 is None else c2 + d                          # (8*TB, 256)

    hp2 = jnp.maximum(c2[:4 * tb], c2[4 * tb:])                   # pool over dy2
    wp2 = jnp.maximum(hp2[:, :128], hp2[:, 128:])                 # pool over dx2
    f2 = jnp.maximum(wp2 + b2_ref[...], 0.0)                      # (4*TB, 128)
    # f2 row (I2, b), lane (J2, co)

    # -------- l1 + relu + dropout(eval: identity) + l2 -----------------------
    h = None
    for i2 in range(4):
        d = jnp.dot(f2[i2 * tb:(i2 + 1) * tb, :], wl1_ref[i2],
                    preferred_element_type=jnp.float32)
        h = d if h is None else h + d                             # (TB, hidden)
    h = jnp.maximum(h + bl1_ref[...], 0.0)
    out = jnp.dot(h, wl2_ref[...], preferred_element_type=jnp.float32) + bl2_ref[...]
    o_ref[...] = out


# ---------------------------------------------------------------------------
# Wrapper: weight re-layout (once, tiny) + pallas_call
# ---------------------------------------------------------------------------
def _build_operands(params):
    w1, b1, w2, b2, wl1, bl1, wl2, bl2 = params
    hidden = wl1.shape[0]
    out_dim = wl2.shape[0]

    # conv1 width-Toeplitz weights: (ki, m, (dx, r, J', c)) -> (5, 28, 384)
    m = jnp.arange(28)
    dx = jnp.arange(2)
    r = jnp.arange(2)
    jp = jnp.arange(6)
    kj = (m[:, None, None, None] - dx[None, :, None, None]
          - 2 * r[None, None, :, None] - 4 * jp[None, None, None, :])  # (28,2,2,6)
    valid1 = ((kj >= 0) & (kj <= 4)).astype(w1.dtype)
    wg1 = w1[:, 0][:, :, jnp.clip(kj, 0, 4)] * valid1[None, None]      # (16,5,28,2,2,6)
    w1t = jnp.transpose(wg1, (1, 2, 3, 4, 5, 0)).reshape(5, 28, 384)

    # conv2 weights: (ki2, (r, J', c), (dx2, J2, co)) -> (5, 192, 256)
    r2 = jnp.arange(2)
    jp2 = jnp.arange(6)
    dx2 = jnp.arange(2)
    j2 = jnp.arange(4)
    kj2 = (2 * (jp2[None, :, None, None] - j2[None, None, None, :])
           + r2[:, None, None, None] - dx2[None, None, :, None])       # (2,6,2,4)
    valid2 = ((kj2 >= 0) & (kj2 <= 4)).astype(w2.dtype)
    wg2 = w2[:, :, :, jnp.clip(kj2, 0, 4)] * valid2[None, None, None]  # (32,16,5,2,6,2,4)
    w2t = jnp.transpose(wg2, (2, 3, 4, 1, 5, 6, 0)).reshape(5, 192, 256)

    # l1 weights permuted to the kernel's (I2, (J2, co)) flatten order
    wl1t = jnp.transpose(wl1.reshape(hidden, 32, 4, 4),
                         (2, 3, 1, 0)).reshape(4, 128, hidden)

    b1t = jnp.tile(b1, 12).reshape(1, 192)
    b2t = jnp.tile(b2, 4).reshape(1, 128)
    return (w1t, b1t, w2t, b2t, wl1t,
            bl1.reshape(1, hidden), wl2.T, bl2.reshape(1, out_dim))


def cnnet_forward(x, params, *, tile_b=8):
    w1, b1, w2, b2, wl1, bl1, wl2, bl2 = params
    B = x.shape[0]
    hidden = wl1.shape[0]
    out_dim = wl2.shape[0]
    assert x.shape[1:] == (1, 28, 28), x.shape
    assert B % tile_b == 0 and tile_b % 8 == 0

    ops = _build_operands(params)

    # Split image rows by (row mod 4): x4[p, t, b, :] = x[b, 0, 4*t + p, :]
    x4 = jnp.transpose(x[:, 0].reshape(B, 7, 4, 28), (2, 1, 0, 3))  # (4, 7, B, 28)

    flops = 2 * B * (6 * 4 * 5 * 28 * 384 + 4 * 2 * 5 * 192 * 256
                     + 4 * 128 * hidden + hidden * out_dim)
    bytes_accessed = 4 * (x4.size + sum(o.size for o in ops) + B * out_dim)

    kernel = functools.partial(cnnet_kernel, tb=tile_b)
    return pl.pallas_call(
        kernel,
        out_shape=jax.ShapeDtypeStruct((B, out_dim), jnp.float32),
        grid=(B // tile_b,),
        in_specs=[
            pl.BlockSpec((4, 7, tile_b, 28), lambda i: (0, 0, i, 0)),
            pl.BlockSpec((5, 28, 384), lambda i: (0, 0, 0)),
            pl.BlockSpec((1, 192), lambda i: (0, 0)),
            pl.BlockSpec((5, 192, 256), lambda i: (0, 0, 0)),
            pl.BlockSpec((1, 128), lambda i: (0, 0)),
            pl.BlockSpec((4, 128, hidden), lambda i: (0, 0, 0)),
            pl.BlockSpec((1, hidden), lambda i: (0, 0)),
            pl.BlockSpec((hidden, out_dim), lambda i: (0, 0)),
            pl.BlockSpec((1, out_dim), lambda i: (0, 0)),
        ],
        out_specs=pl.BlockSpec((tile_b, out_dim), lambda i: (i, 0)),
        compiler_params=pltpu.CompilerParams(
            dimension_semantics=("parallel",),
            vmem_limit_bytes=32 * 1024 * 1024),
        cost_estimate=pl.CostEstimate(flops=flops, transcendentals=0,
                                      bytes_accessed=bytes_accessed),
    )(x4, *ops)


# ---------------------------------------------------------------------------
# Parameters (deterministic, PyTorch-like uniform init) + plain-JAX reference
# ---------------------------------------------------------------------------
def init_params(key, hidden_size, output_size):
    ks = jax.random.split(key, 8)

    def u(k, shape, fan_in):
        bound = 1.0 / (fan_in ** 0.5)
        return jax.random.uniform(k, shape, jnp.float32, -bound, bound)

    w1 = u(ks[0], (16, 1, 5, 5), 1 * 5 * 5)
    b1 = u(ks[1], (16,), 1 * 5 * 5)
    w2 = u(ks[2], (32, 16, 5, 5), 16 * 5 * 5)
    b2 = u(ks[3], (32,), 16 * 5 * 5)
    wl1 = u(ks[4], (hidden_size, 32 * 4 * 4), 32 * 4 * 4)
    bl1 = u(ks[5], (hidden_size,), 32 * 4 * 4)
    wl2 = u(ks[6], (output_size, hidden_size), hidden_size)
    bl2 = u(ks[7], (output_size,), hidden_size)
    return (w1, b1, w2, b2, wl1, bl1, wl2, bl2)


def cnnet_ref(x, params):
    w1, b1, w2, b2, wl1, bl1, wl2, bl2 = params
    dn = ("NCHW", "OIHW", "NCHW")
    y = jax.lax.conv_general_dilated(x, w1, (1, 1), "VALID", dimension_numbers=dn)
    y = y + b1[None, :, None, None]
    y = jax.lax.reduce_window(y, -jnp.inf, jax.lax.max, (1, 1, 2, 2), (1, 1, 2, 2), "VALID")
    y = jnp.maximum(y, 0.0)
    y = jax.lax.conv_general_dilated(y, w2, (1, 1), "VALID", dimension_numbers=dn)
    y = y + b2[None, :, None, None]
    y = jax.lax.reduce_window(y, -jnp.inf, jax.lax.max, (1, 1, 2, 2), (1, 1, 2, 2), "VALID")
    y = jnp.maximum(y, 0.0)
    y = y.reshape(x.shape[0], -1)
    y = jnp.maximum(y @ wl1.T + bl1, 0.0)
    return y @ wl2.T + bl2


if __name__ == "__main__":
    key = jax.random.PRNGKey(0)
    kx, kp = jax.random.split(key)

    batch, hidden_size, output_size = 16, 32, 10
    # MNIST-style input implied by the 32*4*4 flatten: (B, 1, 28, 28)
    x = jax.random.normal(kx, (batch, 1, 28, 28), jnp.float32)
    params = init_params(kp, hidden_size, output_size)

    fwd = jax.jit(lambda xx: cnnet_forward(xx, params, tile_b=8))
    out = fwd(x)
    jax.block_until_ready(out)

    assert out.shape == (batch, output_size), out.shape
    ref = cnnet_ref(x, params)
    assert jnp.allclose(out, ref, atol=1e-3, rtol=1e-3), float(jnp.max(jnp.abs(out - ref)))

    print("KERNEL_OK")
</pallas_src>

<mosaic_0001>
module attributes {stable_mosaic.version = 11 : i64} {
  func.func @cnnet_kernel(%arg0: i32, %arg1: memref<4x7x8x28xf32, #tpu.memory_space<vmem>>, %arg2: memref<5x28x384xf32, #tpu.memory_space<vmem>>, %arg3: memref<1x192xf32, #tpu.memory_space<vmem>>, %arg4: memref<5x192x256xf32, #tpu.memory_space<vmem>>, %arg5: memref<1x128xf32, #tpu.memory_space<vmem>>, %arg6: memref<4x128x32xf32, #tpu.memory_space<vmem>>, %arg7: memref<1x32xf32, #tpu.memory_space<vmem>>, %arg8: memref<32x10xf32, #tpu.memory_space<vmem>>, %arg9: memref<1x10xf32, #tpu.memory_space<vmem>>, %arg10: memref<8x10xf32, #tpu.memory_space<vmem>>) attributes {dimension_semantics = [#tpu.dimension_semantics<parallel>], iteration_bounds = array<i64: 2>, scalar_prefetch = 0 : i64, scratch_operands = 0 : i64, tpu.core_type = #tpu.core_type<tc>, window_params = [{transform_indices = @transform_0, window_bounds = array<i64: 4, 7, 8, 28>}, {pipeline_mode = #tpu.pipeline_mode<synchronous>, transform_indices = @transform_1, window_bounds = array<i64: 5, 28, 384>}, {pipeline_mode = #tpu.pipeline_mode<synchronous>, transform_indices = @transform_2, window_bounds = array<i64: 1, 192>}, {pipeline_mode = #tpu.pipeline_mode<synchronous>, transform_indices = @transform_3, window_bounds = array<i64: 5, 192, 256>}, {pipeline_mode = #tpu.pipeline_mode<synchronous>, transform_indices = @transform_4, window_bounds = array<i64: 1, 128>}, {pipeline_mode = #tpu.pipeline_mode<synchronous>, transform_indices = @transform_5, window_bounds = array<i64: 4, 128, 32>}, {pipeline_mode = #tpu.pipeline_mode<synchronous>, transform_indices = @transform_6, window_bounds = array<i64: 1, 32>}, {pipeline_mode = #tpu.pipeline_mode<synchronous>, transform_indices = @transform_7, window_bounds = array<i64: 32, 10>}, {pipeline_mode = #tpu.pipeline_mode<synchronous>, transform_indices = @transform_8, window_bounds = array<i64: 1, 10>}, {transform_indices = @transform_9, window_bounds = array<i64: 8, 10>}]} {
    %c0 = arith.constant 0 : index
    %c0_0 = arith.constant 0 : index
    %c0_1 = arith.constant 0 : index
    %c0_2 = arith.constant 0 : index
    %0 = vector.load %arg1[%c0, %c0_0, %c0_1, %c0_2] : memref<4x7x8x28xf32, #tpu.memory_space<vmem>>, vector<1x6x8x28xf32>
    %1 = vector.shape_cast %0 : vector<1x6x8x28xf32> to vector<6x8x28xf32>
    %2 = vector.shape_cast %1 : vector<6x8x28xf32> to vector<48x28xf32>
    %c2 = arith.constant 2 : index
    %c0_3 = arith.constant 0 : index
    %c0_4 = arith.constant 0 : index
    %c0_5 = arith.constant 0 : index
    %3 = vector.load %arg1[%c2, %c0_3, %c0_4, %c0_5] : memref<4x7x8x28xf32, #tpu.memory_space<vmem>>, vector<1x6x8x28xf32>
    %4 = vector.shape_cast %3 : vector<1x6x8x28xf32> to vector<6x8x28xf32>
    %5 = vector.shape_cast %4 : vector<6x8x28xf32> to vector<48x28xf32>
    %c1 = arith.constant 1 : index
    %c0_6 = arith.constant 0 : index
    %c0_7 = arith.constant 0 : index
    %c0_8 = arith.constant 0 : index
    %6 = vector.load %arg1[%c1, %c0_6, %c0_7, %c0_8] : memref<4x7x8x28xf32, #tpu.memory_space<vmem>>, vector<1x6x8x28xf32>
    %7 = vector.shape_cast %6 : vector<1x6x8x28xf32> to vector<6x8x28xf32>
    %8 = vector.shape_cast %7 : vector<6x8x28xf32> to vector<48x28xf32>
    %c3 = arith.constant 3 : index
    %c0_9 = arith.constant 0 : index
    %c0_10 = arith.constant 0 : index
    %c0_11 = arith.constant 0 : index
    %9 = vector.load %arg1[%c3, %c0_9, %c0_10, %c0_11] : memref<4x7x8x28xf32, #tpu.memory_space<vmem>>, vector<1x6x8x28xf32>
    %10 = vector.shape_cast %9 : vector<1x6x8x28xf32> to vector<6x8x28xf32>
    %11 = vector.shape_cast %10 : vector<6x8x28xf32> to vector<48x28xf32>
    %12 = tpu.concatenate %2, %5, %8, %11 in 0 : vector<48x28xf32>, vector<48x28xf32>, vector<48x28xf32>, vector<48x28xf32> -> vector<192x28xf32>
    %c0_12 = arith.constant 0 : index
    %c0_13 = arith.constant 0 : index
    %c0_14 = arith.constant 0 : index
    %13 = vector.load %arg2[%c0_12, %c0_13, %c0_14] : memref<5x28x384xf32, #tpu.memory_space<vmem>>, vector<1x28x384xf32>
    %14 = vector.shape_cast %13 : vector<1x28x384xf32> to vector<28x384xf32>
    %cst = arith.constant dense<0.000000e+00> : vector<192x384xf32>
    %15 = tpu.matmul %12, %14, %cst {dimension_numbers = #tpu.dot_dimension_numbers<[1], [0], [0], [1], [0, 0, 1, 1], [], []>} : vector<192x28xf32>, vector<28x384xf32>, vector<192x384xf32> -> vector<192x384xf32>
    %c1_15 = arith.constant 1 : index
    %c0_16 = arith.constant 0 : index
    %c0_17 = arith.constant 0 : index
    %c0_18 = arith.constant 0 : index
    %16 = vector.load %arg1[%c1_15, %c0_16, %c0_17, %c0_18] : memref<4x7x8x28xf32, #tpu.memory_space<vmem>>, vector<1x6x8x28xf32>
    %17 = vector.shape_cast %16 : vector<1x6x8x28xf32> to vector<6x8x28xf32>
    %18 = vector.shape_cast %17 : vector<6x8x28xf32> to vector<48x28xf32>
    %c3_19 = arith.constant 3 : index
    %c0_20 = arith.constant 0 : index
    %c0_21 = arith.constant 0 : index
    %c0_22 = arith.constant 0 : index
    %19 = vector.load %arg1[%c3_19, %c0_20, %c0_21, %c0_22] : memref<4x7x8x28xf32, #tpu.memory_space<vmem>>, vector<1x6x8x28xf32>
    %20 = vector.shape_cast %19 : vector<1x6x8x28xf32> to vector<6x8x28xf32>
    %21 = vector.shape_cast %20 : vector<6x8x28xf32> to vector<48x28xf32>
    %c2_23 = arith.constant 2 : index
    %c0_24 = arith.constant 0 : index
    %c0_25 = arith.constant 0 : index
    %c0_26 = arith.constant 0 : index
    %22 = vector.load %arg1[%c2_23, %c0_24, %c0_25, %c0_26] : memref<4x7x8x28xf32, #tpu.memory_space<vmem>>, vector<1x6x8x28xf32>
    %23 = vector.shape_cast %22 : vector<1x6x8x28xf32> to vector<6x8x28xf32>
    %24 = vector.shape_cast %23 : vector<6x8x28xf32> to vector<48x28xf32>
    %c0_27 = arith.constant 0 : index
    %c1_28 = arith.constant 1 : index
    %c0_29 = arith.constant 0 : index
    %c0_30 = arith.constant 0 : index
    %25 = vector.load %arg1[%c0_27, %c1_28, %c0_29, %c0_30] : memref<4x7x8x28xf32, #tpu.memory_space<vmem>>, vector<1x6x8x28xf32>
    %26 = vector.shape_cast %25 : vector<1x6x8x28xf32> to vector<6x8x28xf32>
    %27 = vector.shape_cast %26 : vector<6x8x28xf32> to vector<48x28xf32>
    %28 = tpu.concatenate %18, %21, %24, %27 in 0 : vector<48x28xf32>, vector<48x28xf32>, vector<48x28xf32>, vector<48x28xf32> -> vector<192x28xf32>
    %c1_31 = arith.constant 1 : index
    %c0_32 = arith.constant 0 : index
    %c0_33 = arith.constant 0 : index
    %29 = vector.load %arg2[%c1_31, %c0_32, %c0_33] : memref<5x28x384xf32, #tpu.memory_space<vmem>>, vector<1x28x384xf32>
    %30 = vector.shape_cast %29 : vector<1x28x384xf32> to vector<28x384xf32>
    %cst_34 = arith.constant dense<0.000000e+00> : vector<192x384xf32>
    %31 = tpu.matmul %28, %30, %cst_34 {dimension_numbers = #tpu.dot_dimension_numbers<[1], [0], [0], [1], [0, 0, 1, 1], [], []>} : vector<192x28xf32>, vector<28x384xf32>, vector<192x384xf32> -> vector<192x384xf32>
    %32 = arith.addf %15, %31 : vector<192x384xf32>
    %c2_35 = arith.constant 2 : index
    %c0_36 = arith.constant 0 : index
    %c0_37 = arith.constant 0 : index
    %c0_38 = arith.constant 0 : index
    %33 = vector.load %arg1[%c2_35, %c0_36, %c0_37, %c0_38] : memref<4x7x8x28xf32, #tpu.memory_space<vmem>>, vector<1x6x8x28xf32>
    %34 = vector.shape_cast %33 : vector<1x6x8x28xf32> to vector<6x8x28xf32>
    %35 = vector.shape_cast %34 : vector<6x8x28xf32> to vector<48x28xf32>
    %c0_39 = arith.constant 0 : index
    %c1_40 = arith.constant 1 : index
    %c0_41 = arith.constant 0 : index
    %c0_42 = arith.constant 0 : index
    %36 = vector.load %arg1[%c0_39, %c1_40, %c0_41, %c0_42] : memref<4x7x8x28xf32, #tpu.memory_space<vmem>>, vector<1x6x8x28xf32>
    %37 = vector.shape_cast %36 : vector<1x6x8x28xf32> to vector<6x8x28xf32>
    %38 = vector.shape_cast %37 : vector<6x8x28xf32> to vector<48x28xf32>
    %c3_43 = arith.constant 3 : index
    %c0_44 = arith.constant 0 : index
    %c0_45 = arith.constant 0 : index
    %c0_46 = arith.constant 0 : index
    %39 = vector.load %arg1[%c3_43, %c0_44, %c0_45, %c0_46] : memref<4x7x8x28xf32, #tpu.memory_space<vmem>>, vector<1x6x8x28xf32>
    %40 = vector.shape_cast %39 : vector<1x6x8x28xf32> to vector<6x8x28xf32>
    %41 = vector.shape_cast %40 : vector<6x8x28xf32> to vector<48x28xf32>
    %c1_47 = arith.constant 1 : index
    %c1_48 = arith.constant 1 : index
    %c0_49 = arith.constant 0 : index
    %c0_50 = arith.constant 0 : index
    %42 = vector.load %arg1[%c1_47, %c1_48, %c0_49, %c0_50] : memref<4x7x8x28xf32, #tpu.memory_space<vmem>>, vector<1x6x8x28xf32>
    %43 = vector.shape_cast %42 : vector<1x6x8x28xf32> to vector<6x8x28xf32>
    %44 = vector.shape_cast %43 : vector<6x8x28xf32> to vector<48x28xf32>
    %45 = tpu.concatenate %35, %38, %41, %44 in 0 : vector<48x28xf32>, vector<48x28xf32>, vector<48x28xf32>, vector<48x28xf32> -> vector<192x28xf32>
    %c2_51 = arith.constant 2 : index
    %c0_52 = arith.constant 0 : index
    %c0_53 = arith.constant 0 : index
    %46 = vector.load %arg2[%c2_51, %c0_52, %c0_53] : memref<5x28x384xf32, #tpu.memory_space<vmem>>, vector<1x28x384xf32>
    %47 = vector.shape_cast %46 : vector<1x28x384xf32> to vector<28x384xf32>
    %cst_54 = arith.constant dense<0.000000e+00> : vector<192x384xf32>
    %48 = tpu.matmul %45, %47, %cst_54 {dimension_numbers = #tpu.dot_dimension_numbers<[1], [0], [0], [1], [0, 0, 1, 1], [], []>} : vector<192x28xf32>, vector<28x384xf32>, vector<192x384xf32> -> vector<192x384xf32>
    %49 = arith.addf %32, %48 : vector<192x384xf32>
    %c3_55 = arith.constant 3 : index
    %c0_56 = arith.constant 0 : index
    %c0_57 = arith.constant 0 : index
    %c0_58 = arith.constant 0 : index
    %50 = vector.load %arg1[%c3_55, %c0_56, %c0_57, %c0_58] : memref<4x7x8x28xf32, #tpu.memory_space<vmem>>, vector<1x6x8x28xf32>
    %51 = vector.shape_cast %50 : vector<1x6x8x28xf32> to vector<6x8x28xf32>
    %52 = vector.shape_cast %51 : vector<6x8x28xf32> to vector<48x28xf32>
    %c1_59 = arith.constant 1 : index
    %c1_60 = arith.constant 1 : index
    %c0_61 = arith.constant 0 : index
    %c0_62 = arith.constant 0 : index
    %53 = vector.load %arg1[%c1_59, %c1_60, %c0_61, %c0_62] : memref<4x7x8x28xf32, #tpu.memory_space<vmem>>, vector<1x6x8x28xf32>
    %54 = vector.shape_cast %53 : vector<1x6x8x28xf32> to vector<6x8x28xf32>
    %55 = vector.shape_cast %54 : vector<6x8x28xf32> to vector<48x28xf32>
    %c0_63 = arith.constant 0 : index
    %c1_64 = arith.constant 1 : index
    %c0_65 = arith.constant 0 : index
    %c0_66 = arith.constant 0 : index
    %56 = vector.load %arg1[%c0_63, %c1_64, %c0_65, %c0_66] : memref<4x7x8x28xf32, #tpu.memory_space<vmem>>, vector<1x6x8x28xf32>
    %57 = vector.shape_cast %56 : vector<1x6x8x28xf32> to vector<6x8x28xf32>
    %58 = vector.shape_cast %57 : vector<6x8x28xf32> to vector<48x28xf32>
    %c2_67 = arith.constant 2 : index
    %c1_68 = arith.constant 1 : index
    %c0_69 = arith.constant 0 : index
    %c0_70 = arith.constant 0 : index
    %59 = vector.load %arg1[%c2_67, %c1_68, %c0_69, %c0_70] : memref<4x7x8x28xf32, #tpu.memory_space<vmem>>, vector<1x6x8x28xf32>
    %60 = vector.shape_cast %59 : vector<1x6x8x28xf32> to vector<6x8x28xf32>
    %61 = vector.shape_cast %60 : vector<6x8x28xf32> to vector<48x28xf32>
    %62 = tpu.concatenate %52, %55, %58, %61 in 0 : vector<48x28xf32>, vector<48x28xf32>, vector<48x28xf32>, vector<48x28xf32> -> vector<192x28xf32>
    %c3_71 = arith.constant 3 : index
    %c0_72 = arith.constant 0 : index
    %c0_73 = arith.constant 0 : index
    %63 = vector.load %arg2[%c3_71, %c0_72, %c0_73] : memref<5x28x384xf32, #tpu.memory_space<vmem>>, vector<1x28x384xf32>
    %64 = vector.shape_cast %63 : vector<1x28x384xf32> to vector<28x384xf32>
    %cst_74 = arith.constant dense<0.000000e+00> : vector<192x384xf32>
    %65 = tpu.matmul %62, %64, %cst_74 {dimension_numbers = #tpu.dot_dimension_numbers<[1], [0], [0], [1], [0, 0, 1, 1], [], []>} : vector<192x28xf32>, vector<28x384xf32>, vector<192x384xf32> -> vector<192x384xf32>
    %66 = arith.addf %49, %65 : vector<192x384xf32>
    %c0_75 = arith.constant 0 : index
    %c1_76 = arith.constant 1 : index
    %c0_77 = arith.constant 0 : index
    %c0_78 = arith.constant 0 : index
    %67 = vector.load %arg1[%c0_75, %c1_76, %c0_77, %c0_78] : memref<4x7x8x28xf32, #tpu.memory_space<vmem>>, vector<1x6x8x28xf32>
    %68 = vector.shape_cast %67 : vector<1x6x8x28xf32> to vector<6x8x28xf32>
    %69 = vector.shape_cast %68 : vector<6x8x28xf32> to vector<48x28xf32>
    %c2_79 = arith.constant 2 : index
    %c1_80 = arith.constant 1 : index
    %c0_81 = arith.constant 0 : index
    %c0_82 = arith.constant 0 : index
    %70 = vector.load %arg1[%c2_79, %c1_80, %c0_81, %c0_82] : memref<4x7x8x28xf32, #tpu.memory_space<vmem>>, vector<1x6x8x28xf32>
    %71 = vector.shape_cast %70 : vector<1x6x8x28xf32> to vector<6x8x28xf32>
    %72 = vector.shape_cast %71 : vector<6x8x28xf32> to vector<48x28xf32>
    %c1_83 = arith.constant 1 : index
    %c1_84 = arith.constant 1 : index
    %c0_85 = arith.constant 0 : index
    %c0_86 = arith.constant 0 : index
    %73 = vector.load %arg1[%c1_83, %c1_84, %c0_85, %c0_86] : memref<4x7x8x28xf32, #tpu.memory_space<vmem>>, vector<1x6x8x28xf32>
    %74 = vector.shape_cast %73 : vector<1x6x8x28xf32> to vector<6x8x28xf32>
    %75 = vector.shape_cast %74 : vector<6x8x28xf32> to vector<48x28xf32>
    %c3_87 = arith.constant 3 : index
    %c1_88 = arith.constant 1 : index
    %c0_89 = arith.constant 0 : index
    %c0_90 = arith.constant 0 : index
    %76 = vector.load %arg1[%c3_87, %c1_88, %c0_89, %c0_90] : memref<4x7x8x28xf32, #tpu.memory_space<vmem>>, vector<1x6x8x28xf32>
    %77 = vector.shape_cast %76 : vector<1x6x8x28xf32> to vector<6x8x28xf32>
    %78 = vector.shape_cast %77 : vector<6x8x28xf32> to vector<48x28xf32>
    %79 = tpu.concatenate %69, %72, %75, %78 in 0 : vector<48x28xf32>, vector<48x28xf32>, vector<48x28xf32>, vector<48x28xf32> -> vector<192x28xf32>
    %c4 = arith.constant 4 : index
    %c0_91 = arith.constant 0 : index
    %c0_92 = arith.constant 0 : index
    %80 = vector.load %arg2[%c4, %c0_91, %c0_92] : memref<5x28x384xf32, #tpu.memory_space<vmem>>, vector<1x28x384xf32>
    %81 = vector.shape_cast %80 : vector<1x28x384xf32> to vector<28x384xf32>
    %cst_93 = arith.constant dense<0.000000e+00> : vector<192x384xf32>
    %82 = tpu.matmul %79, %81, %cst_93 {dimension_numbers = #tpu.dot_dimension_numbers<[1], [0], [0], [1], [0, 0, 1, 1], [], []>} : vector<192x28xf32>, vector<28x384xf32>, vector<192x384xf32> -> vector<192x384xf32>
    %83 = arith.addf %66, %82 : vector<192x384xf32>
    %84 = vector.extract_strided_slice %83 {offsets = [0, 0], sizes = [96, 384], strides = [1, 1]} : vector<192x384xf32> to vector<96x384xf32>
    %85 = vector.extract_strided_slice %83 {offsets = [96, 0], sizes = [96, 384], strides = [1, 1]} : vector<192x384xf32> to vector<96x384xf32>
    %86 = arith.maximumf %84, %85 : vector<96x384xf32>
    %87 = vector.extract_strided_slice %86 {offsets = [0, 0], sizes = [96, 192], strides = [1, 1]} : vector<96x384xf32> to vector<96x192xf32>
    %88 = vector.extract_strided_slice %86 {offsets = [0, 192], sizes = [96, 192], strides = [1, 1]} : vector<96x384xf32> to vector<96x192xf32>
    %89 = arith.maximumf %87, %88 : vector<96x192xf32>
    %c0_94 = arith.constant 0 : index
    %c0_95 = arith.constant 0 : index
    %90 = vector.load %arg3[%c0_94, %c0_95] : memref<1x192xf32, #tpu.memory_space<vmem>>, vector<1x192xf32>
    %91 = vector.broadcast %90 : vector<1x192xf32> to vector<96x192xf32>
    %92 = arith.addf %89, %91 : vector<96x192xf32>
    %cst_96 = arith.constant 0.000000e+00 : f32
    %93 = vector.broadcast %cst_96 : f32 to vector<96x192xf32>
    %94 = arith.maximumf %92, %93 : vector<96x192xf32>
    %95 = vector.extract_strided_slice %94 {offsets = [0, 0], sizes = [32, 192], strides = [1, 1]} : vector<96x192xf32> to vector<32x192xf32>
    %96 = vector.extract_strided_slice %94 {offsets = [48, 0], sizes = [32, 192], strides = [1, 1]} : vector<96x192xf32> to vector<32x192xf32>
    %97 = tpu.concatenate %95, %96 in 0 : vector<32x192xf32>, vector<32x192xf32> -> vector<64x192xf32>
    %c0_97 = arith.constant 0 : index
    %c0_98 = arith.constant 0 : index
    %c0_99 = arith.constant 0 : index
    %98 = vector.load %arg4[%c0_97, %c0_98, %c0_99] : memref<5x192x256xf32, #tpu.memory_space<vmem>>, vector<1x192x256xf32>
    %99 = vector.shape_cast %98 : vector<1x192x256xf32> to vector<192x256xf32>
    %cst_100 = arith.constant dense<0.000000e+00> : vector<64x256xf32>
    %100 = tpu.matmul %97, %99, %cst_100 {dimension_numbers = #tpu.dot_dimension_numbers<[1], [0], [0], [1], [0, 0, 1, 1], [], []>} : vector<64x192xf32>, vector<192x256xf32>, vector<64x256xf32> -> vector<64x256xf32>
    %101 = vector.extract_strided_slice %94 {offsets = [48, 0], sizes = [32, 192], strides = [1, 1]} : vector<96x192xf32> to vector<32x192xf32>
    %102 = vector.extract_strided_slice %94 {offsets = [8, 0], sizes = [32, 192], strides = [1, 1]} : vector<96x192xf32> to vector<32x192xf32>
    %103 = tpu.concatenate %101, %102 in 0 : vector<32x192xf32>, vector<32x192xf32> -> vector<64x192xf32>
    %c1_101 = arith.constant 1 : index
    %c0_102 = arith.constant 0 : index
    %c0_103 = arith.constant 0 : index
    %104 = vector.load %arg4[%c1_101, %c0_102, %c0_103] : memref<5x192x256xf32, #tpu.memory_space<vmem>>, vector<1x192x256xf32>
    %105 = vector.shape_cast %104 : vector<1x192x256xf32> to vector<192x256xf32>
    %cst_104 = arith.constant dense<0.000000e+00> : vector<64x256xf32>
    %106 = tpu.matmul %103, %105, %cst_104 {dimension_numbers = #tpu.dot_dimension_numbers<[1], [0], [0], [1], [0, 0, 1, 1], [], []>} : vector<64x192xf32>, vector<192x256xf32>, vector<64x256xf32> -> vector<64x256xf32>
    %107 = arith.addf %100, %106 : vector<64x256xf32>
    %108 = vector.extract_strided_slice %94 {offsets = [8, 0], sizes = [32, 192], strides = [1, 1]} : vector<96x192xf32> to vector<32x192xf32>
    %109 = vector.extract_strided_slice %94 {offsets = [56, 0], sizes = [32, 192], strides = [1, 1]} : vector<96x192xf32> to vector<32x192xf32>
    %110 = tpu.concatenate %108, %109 in 0 : vector<32x192xf32>, vector<32x192xf32> -> vector<64x192xf32>
    %c2_105 = arith.constant 2 : index
    %c0_106 = arith.constant 0 : index
    %c0_107 = arith.constant 0 : index
    %111 = vector.load %arg4[%c2_105, %c0_106, %c0_107] : memref<5x192x256xf32, #tpu.memory_space<vmem>>, vector<1x192x256xf32>
    %112 = vector.shape_cast %111 : vector<1x192x256xf32> to vector<192x256xf32>
    %cst_108 = arith.constant dense<0.000000e+00> : vector<64x256xf32>
    %113 = tpu.matmul %110, %112, %cst_108 {dimension_numbers = #tpu.dot_dimension_numbers<[1], [0], [0], [1], [0, 0, 1, 1], [], []>} : vector<64x192xf32>, vector<192x256xf32>, vector<64x256xf32> -> vector<64x256xf32>
    %114 = arith.addf %107, %113 : vector<64x256xf32>
    %115 = vector.extract_strided_slice %94 {offsets = [56, 0], sizes = [32, 192], strides = [1, 1]} : vector<96x192xf32> to vector<32x192xf32>
    %116 = vector.extract_strided_slice %94 {offsets = [16, 0], sizes = [32, 192], strides = [1, 1]} : vector<96x192xf32> to vector<32x192xf32>
    %117 = tpu.concatenate %115, %116 in 0 : vector<32x192xf32>, vector<32x192xf32> -> vector<64x192xf32>
    %c3_109 = arith.constant 3 : index
    %c0_110 = arith.constant 0 : index
    %c0_111 = arith.constant 0 : index
    %118 = vector.load %arg4[%c3_109, %c0_110, %c0_111] : memref<5x192x256xf32, #tpu.memory_space<vmem>>, vector<1x192x256xf32>
    %119 = vector.shape_cast %118 : vector<1x192x256xf32> to vector<192x256xf32>
    %cst_112 = arith.constant dense<0.000000e+00> : vector<64x256xf32>
    %120 = tpu.matmul %117, %119, %cst_112 {dimension_numbers = #tpu.dot_dimension_numbers<[1], [0], [0], [1], [0, 0, 1, 1], [], []>} : vector<64x192xf32>, vector<192x256xf32>, vector<64x256xf32> -> vector<64x256xf32>
    %121 = arith.addf %114, %120 : vector<64x256xf32>
    %122 = vector.extract_strided_slice %94 {offsets = [16, 0], sizes = [32, 192], strides = [1, 1]} : vector<96x192xf32> to vector<32x192xf32>
    %123 = vector.extract_strided_slice %94 {offsets = [64, 0], sizes = [32, 192], strides = [1, 1]} : vector<96x192xf32> to vector<32x192xf32>
    %124 = tpu.concatenate %122, %123 in 0 : vector<32x192xf32>, vector<32x192xf32> -> vector<64x192xf32>
    %c4_113 = arith.constant 4 : index
    %c0_114 = arith.constant 0 : index
    %c0_115 = arith.constant 0 : index
    %125 = vector.load %arg4[%c4_113, %c0_114, %c0_115] : memref<5x192x256xf32, #tpu.memory_space<vmem>>, vector<1x192x256xf32>
    %126 = vector.shape_cast %125 : vector<1x192x256xf32> to vector<192x256xf32>
    %cst_116 = arith.constant dense<0.000000e+00> : vector<64x256xf32>
    %127 = tpu.matmul %124, %126, %cst_116 {dimension_numbers = #tpu.dot_dimension_numbers<[1], [0], [0], [1], [0, 0, 1, 1], [], []>} : vector<64x192xf32>, vector<192x256xf32>, vector<64x256xf32> -> vector<64x256xf32>
    %128 = arith.addf %121, %127 : vector<64x256xf32>
    %129 = vector.extract_strided_slice %128 {offsets = [0, 0], sizes = [32, 256], strides = [1, 1]} : vector<64x256xf32> to vector<32x256xf32>
    %130 = vector.extract_strided_slice %128 {offsets = [32, 0], sizes = [32, 256], strides = [1, 1]} : vector<64x256xf32> to vector<32x256xf32>
    %131 = arith.maximumf %129, %130 : vector<32x256xf32>
    %132 = vector.extract_strided_slice %131 {offsets = [0, 0], sizes = [32, 128], strides = [1, 1]} : vector<32x256xf32> to vector<32x128xf32>
    %133 = vector.extract_strided_slice %131 {offsets = [0, 128], sizes = [32, 128], strides = [1, 1]} : vector<32x256xf32> to vector<32x128xf32>
    %134 = arith.maximumf %132, %133 : vector<32x128xf32>
    %c0_117 = arith.constant 0 : index
    %c0_118 = arith.constant 0 : index
    %135 = vector.load %arg5[%c0_117, %c0_118] : memref<1x128xf32, #tpu.memory_space<vmem>>, vector<1x128xf32>
    %136 = vector.broadcast %135 : vector<1x128xf32> to vector<32x128xf32>
    %137 = arith.addf %134, %136 : vector<32x128xf32>
    %cst_119 = arith.constant 0.000000e+00 : f32
    %138 = vector.broadcast %cst_119 : f32 to vector<32x128xf32>
    %139 = arith.maximumf %137, %138 : vector<32x128xf32>
    %140 = vector.extract_strided_slice %139 {offsets = [0, 0], sizes = [8, 128], strides = [1, 1]} : vector<32x128xf32> to vector<8x128xf32>
    %c0_120 = arith.constant 0 : index
    %c0_121 = arith.constant 0 : index
    %c0_122 = arith.constant 0 : index
    %141 = vector.load %arg6[%c0_120, %c0_121, %c0_122] : memref<4x128x32xf32, #tpu.memory_space<vmem>>, vector<1x128x32xf32>
    %142 = vector.shape_cast %141 : vector<1x128x32xf32> to vector<128x32xf32>
    %cst_123 = arith.constant dense<0.000000e+00> : vector<8x32xf32>
    %143 = tpu.matmul %140, %142, %cst_123 {dimension_numbers = #tpu.dot_dimension_numbers<[1], [0], [0], [1], [0, 0, 1, 1], [], []>} : vector<8x128xf32>, vector<128x32xf32>, vector<8x32xf32> -> vector<8x32xf32>
    %144 = vector.extract_strided_slice %139 {offsets = [8, 0], sizes = [8, 128], strides = [1, 1]} : vector<32x128xf32> to vector<8x128xf32>
    %c1_124 = arith.constant 1 : index
    %c0_125 = arith.constant 0 : index
    %c0_126 = arith.constant 0 : index
    %145 = vector.load %arg6[%c1_124, %c0_125, %c0_126] : memref<4x128x32xf32, #tpu.memory_space<vmem>>, vector<1x128x32xf32>
    %146 = vector.shape_cast %145 : vector<1x128x32xf32> to vector<128x32xf32>
    %cst_127 = arith.constant dense<0.000000e+00> : vector<8x32xf32>
    %147 = tpu.matmul %144, %146, %cst_127 {dimension_numbers = #tpu.dot_dimension_numbers<[1], [0], [0], [1], [0, 0, 1, 1], [], []>} : vector<8x128xf32>, vector<128x32xf32>, vector<8x32xf32> -> vector<8x32xf32>
    %148 = arith.addf %143, %147 : vector<8x32xf32>
    %149 = vector.extract_strided_slice %139 {offsets = [16, 0], sizes = [8, 128], strides = [1, 1]} : vector<32x128xf32> to vector<8x128xf32>
    %c2_128 = arith.constant 2 : index
    %c0_129 = arith.constant 0 : index
    %c0_130 = arith.constant 0 : index
    %150 = vector.load %arg6[%c2_128, %c0_129, %c0_130] : memref<4x128x32xf32, #tpu.memory_space<vmem>>, vector<1x128x32xf32>
    %151 = vector.shape_cast %150 : vector<1x128x32xf32> to vector<128x32xf32>
    %cst_131 = arith.constant dense<0.000000e+00> : vector<8x32xf32>
    %152 = tpu.matmul %149, %151, %cst_131 {dimension_numbers = #tpu.dot_dimension_numbers<[1], [0], [0], [1], [0, 0, 1, 1], [], []>} : vector<8x128xf32>, vector<128x32xf32>, vector<8x32xf32> -> vector<8x32xf32>
    %153 = arith.addf %148, %152 : vector<8x32xf32>
    %154 = vector.extract_strided_slice %139 {offsets = [24, 0], sizes = [8, 128], strides = [1, 1]} : vector<32x128xf32> to vector<8x128xf32>
    %c3_132 = arith.constant 3 : index
    %c0_133 = arith.constant 0 : index
    %c0_134 = arith.constant 0 : index
    %155 = vector.load %arg6[%c3_132, %c0_133, %c0_134] : memref<4x128x32xf32, #tpu.memory_space<vmem>>, vector<1x128x32xf32>
    %156 = vector.shape_cast %155 : vector<1x128x32xf32> to vector<128x32xf32>
    %cst_135 = arith.constant dense<0.000000e+00> : vector<8x32xf32>
    %157 = tpu.matmul %154, %156, %cst_135 {dimension_numbers = #tpu.dot_dimension_numbers<[1], [0], [0], [1], [0, 0, 1, 1], [], []>} : vector<8x128xf32>, vector<128x32xf32>, vector<8x32xf32> -> vector<8x32xf32>
    %158 = arith.addf %153, %157 : vector<8x32xf32>
    %c0_136 = arith.constant 0 : index
    %c0_137 = arith.constant 0 : index
    %159 = vector.load %arg7[%c0_136, %c0_137] : memref<1x32xf32, #tpu.memory_space<vmem>>, vector<1x32xf32>
    %160 = vector.broadcast %159 : vector<1x32xf32> to vector<8x32xf32>
    %161 = arith.addf %158, %160 : vector<8x32xf32>
    %cst_138 = arith.constant 0.000000e+00 : f32
    %162 = vector.broadcast %cst_138 : f32 to vector<8x32xf32>
    %163 = arith.maximumf %161, %162 : vector<8x32xf32>
    %c0_139 = arith.constant 0 : index
    %c0_140 = arith.constant 0 : index
    %164 = vector.load %arg8[%c0_139, %c0_140] : memref<32x10xf32, #tpu.memory_space<vmem>>, vector<32x10xf32>
    %cst_141 = arith.constant dense<0.000000e+00> : vector<8x10xf32>
    %165 = tpu.matmul %163, %164, %cst_141 {dimension_numbers = #tpu.dot_dimension_numbers<[1], [0], [0], [1], [0, 0, 1, 1], [], []>} : vector<8x32xf32>, vector<32x10xf32>, vector<8x10xf32> -> vector<8x10xf32>
    %c0_142 = arith.constant 0 : index
    %c0_143 = arith.constant 0 : index
    %166 = vector.load %arg9[%c0_142, %c0_143] : memref<1x10xf32, #tpu.memory_space<vmem>>, vector<1x10xf32>
    %167 = vector.broadcast %166 : vector<1x10xf32> to vector<8x10xf32>
    %168 = arith.addf %165, %167 : vector<8x10xf32>
    %c0_144 = arith.constant 0 : index
    %c0_145 = arith.constant 0 : index
    %169 = vector.load %arg10[%c0_144, %c0_145] : memref<8x10xf32, #tpu.memory_space<vmem>>, vector<8x10xf32>
    tpu.vector_store %arg10[%c0_144, %c0_145], %168 {strides = array<i32>} : memref<8x10xf32, #tpu.memory_space<vmem>>, vector<8x10xf32>,
    return
  }
  func.func @transform_0(%arg0: i32) -> (i32, i32, i32, i32) {
    %c0_i32 = arith.constant 0 : i32
    %c0_i32_0 = arith.constant 0 : i32
    %c0_i32_1 = arith.constant 0 : i32
    %c0_i32_2 = arith.constant 0 : i32
    return %c0_i32, %c0_i32_0, %arg0, %c0_i32_1 : i32, i32, i32, i32
  }
  func.func @transform_1(%arg0: i32) -> (i32, i32, i32) {
    %c0_i32 = arith.constant 0 : i32
    %c0_i32_0 = arith.constant 0 : i32
    %c0_i32_1 = arith.constant 0 : i32
    %c0_i32_2 = arith.constant 0 : i32
    return %c0_i32, %c0_i32_0, %c0_i32_1 : i32, i32, i32
  }
  func.func @transform_2(%arg0: i32) -> (i32, i32) {
    %c0_i32 = arith.constant 0 : i32
    %c0_i32_0 = arith.constant 0 : i32
    %c0_i32_1 = arith.constant 0 : i32
    return %c0_i32, %c0_i32_0 : i32, i32
  }
  func.func @transform_3(%arg0: i32) -> (i32, i32, i32) {
    %c0_i32 = arith.constant 0 : i32
    %c0_i32_0 = arith.constant 0 : i32
    %c0_i32_1 = arith.constant 0 : i32
    %c0_i32_2 = arith.constant 0 : i32
    return %c0_i32, %c0_i32_0, %c0_i32_1 : i32, i32, i32
  }
  func.func @transform_4(%arg0: i32) -> (i32, i32) {
    %c0_i32 = arith.constant 0 : i32
    %c0_i32_0 = arith.constant 0 : i32
    %c0_i32_1 = arith.constant 0 : i32
    return %c0_i32, %c0_i32_0 : i32, i32
  }
  func.func @transform_5(%arg0: i32) -> (i32, i32, i32) {
    %c0_i32 = arith.constant 0 : i32
    %c0_i32_0 = arith.constant 0 : i32
    %c0_i32_1 = arith.constant 0 : i32
    %c0_i32_2 = arith.constant 0 : i32
    return %c0_i32, %c0_i32_0, %c0_i32_1 : i32, i32, i32
  }
  func.func @transform_6(%arg0: i32) -> (i32, i32) {
    %c0_i32 = arith.constant 0 : i32
    %c0_i32_0 = arith.constant 0 : i32
    %c0_i32_1 = arith.constant 0 : i32
    return %c0_i32, %c0_i32_0 : i32, i32
  }
  func.func @transform_7(%arg0: i32) -> (i32, i32) {
    %c0_i32 = arith.constant 0 : i32
    %c0_i32_0 = arith.constant 0 : i32
    %c0_i32_1 = arith.constant 0 : i32
    return %c0_i32, %c0_i32_0 : i32, i32
  }
  func.func @transform_8(%arg0: i32) -> (i32, i32) {
    %c0_i32 = arith.constant 0 : i32
    %c0_i32_0 = arith.constant 0 : i32
    %c0_i32_1 = arith.constant 0 : i32
    return %c0_i32, %c0_i32_0 : i32, i32
  }
  func.func @transform_9(%arg0: i32) -> (i32, i32) {
    %c0_i32 = arith.constant 0 : i32
    %c0_i32_0 = arith.constant 0 : i32
    return %arg0, %c0_i32 : i32, i32
  }
}

</mosaic_0001>

<bundles_post_ra>
// kernel: tile.10
= control target key start
LH: loop header
LB: loop body
LE: loop exit
PB: predicated region body
PF: predicated region fallthrough
CT: control target
= control target key end

     0   :  { %s28_s0 = inlined_call_operand.vmem [shape: f32[16], index: 0, kind: input, shape index: {}]   ;;  %s29_s1 = inlined_call_operand.vmem [shape: f32[12,16], index: 1, kind: output, shape index: {}]  }
   0x1   :  { %v4_v0 = vld [vmem:[%s28_s0] ss:$0 sm:$0xff] }
   0x2   :  { %5 = vst [vmem:[%s29_s1] sm:$0xff] %v4_v0  ;;  %8 = vst [vmem:[%s29_s1 + $0x8] sm:$0xff] %v4_v0 }

// kernel: tile.11
= control target key start
LH: loop header
LB: loop body
LE: loop exit
PB: predicated region body
PF: predicated region fallthrough
CT: control target
= control target key end

     0   :  { %s77_s10 = smov 112   ;;  %s78_s11 = smov 80   ;;  %vm4_vm0 = vcmask 130048   ;;  %vm10_vm1 = vcmask 1048448   ;;  %vm16_vm2 = vcmask 917248   ;;  %vm22_vm3 = vcmask 786048   ;;  %s124_s0 = inlined_call_operand.vmem [shape: f32[12,16], index: 0, kind: input, shape index: {}]   ;;  %s125_s1 = inlined_call_operand.vmem [shape: f32[1,192], index: 1, kind: output, shape index: {}]  }
   0x1   :  { %v62_v0 = vld [vmem:[%s124_s0 + $0x7] sm:$0x1]   ;;  %v64_v1 = vld [vmem:[%s124_s0 + $0x5] sm:$0x1]   ;;  %v63_v2 = vld [vmem:[%s124_s0 + $0x6] sm:$0x1]  }
   0x2   :  { %8 = vrot.lane.b32.xlu0 %v62_v0, %s77_s10  ;;  %20 = vrot.lane.b32.xlu1 %v64_v1, %s78_s11  ;;  %v65_v3 = vld [vmem:[%s124_s0 + $0x4] sm:$0x1]   ;;  %s31_s16 = smov 3  ;;  %s38_s17 = smov 3  ;;  %vm28_vm4 = vcmask 654848   ;;  %vm35_vm5 = vcmask 523648  }
   0x3   :  { %s79_s18 = smov 96   ;;  %s80_s19 = smov 64   ;;  %v66_v4 = vld [vmem:[%s124_s0 + $0x3] ss:$8 sm:%s31_s16]   ;;  %v67_v5 = vld [vmem:[%s124_s0 + $0x2] ss:$8 sm:%s38_s17]  }
   0x4   :  { %s2_s22 = smov 3  ;;  %s45_s27 = smov 3  ;;  %vm42_vm6 = vcmask 392448   ;;  %vm49_vm7 = vcmask 261248  }
   0x5   :  { %v3_v6 = vld [vmem:[%s124_s0] ss:$8 sm:%s2_s22]   ;;  %s81_s28 = smov 48   ;;  %s82_s29 = smov 32   ;;  %v68_v7 = vld [vmem:[%s124_s0 + $0x1] ss:$8 sm:%s45_s27]  }
   0x6   :  { %14 = vrot.lane.b32.xlu0 %v63_v2, %s79_s18  ;;  %26 = vrot.lane.b32.xlu1 %v65_v3, %s80_s19  ;;  %5 = vst.msk [vmem:[#allocation0] ss:$8 sm:$0x3] %vm4_vm0, %v3_v6   ;;  %s83_s0 = smov 16  }
   0xa   :  { %33 = vrot.lane.b32.xlu0 %v66_v4, %s81_s28  ;;  %40 = vrot.lane.b32.xlu1 %v67_v5, %s82_s29 }
   0xe   :  { %47 = vrot.lane.b32.xlu0 %v68_v7, %s83_s0 }
  0x74   :  { %v9_v8 = vpop.permute.xlu0 %8   ;;  %v21_v9 = vpop.permute.xlu1 %20  }
  0x75   :  { %11 = vst.msk [vmem:[#allocation0] sm:$0x1] %vm10_vm1, %v9_v8  }
  0x78   :  { %v15_v10 = vpop.permute.xlu0 %14   ;;  %v27_v11 = vpop.permute.xlu1 %26  }
  0x79   :  { %17 = vst.msk [vmem:[#allocation0] sm:$0x1] %vm16_vm2, %v15_v10  }
  0x7a   :  { %23 = vst.msk [vmem:[#allocation0] sm:$0x1] %vm22_vm3, %v21_v9  }
  0x7b   :  { %29 = vst.msk [vmem:[#allocation0] sm:$0x1] %vm28_vm4, %v27_v11  }
  0x7c   :  { %v34_v12 = vpop.permute.xlu0 %33   ;;  %v41_v13 = vpop.permute.xlu1 %40  }
  0x7d   :  { %36 = vst.msk [vmem:[#allocation0] ss:$8 sm:$0x3] %vm35_vm5, %v34_v12  }
  0x7e   :  { %43 = vst.msk [vmem:[#allocation0] ss:$8 sm:$0x3] %vm42_vm6, %v41_v13  }
  0x80   :  { %v48_v14 = vpop.permute.xlu0 %47  }
  0x81   :  { %50 = vst.msk [vmem:[#allocation0] ss:$8 sm:$0x3] %vm49_vm7, %v48_v14  }
  0x88   :  { %v54_v15 = vld [vmem:[#allocation0] sm:$0x1]  ;;  %v58_v16 = vld [vmem:[#allocation0 + $0x8] sm:$0x1] }
  0x89   :  { %56 = vst [vmem:[%s125_s1] sm:$0x1] %v54_v15  ;;  %69 = vst [vmem:[%s125_s1 + $0x1] sm:$0x1] %v58_v16 }

// kernel: tile.14
= control target key start
LH: loop header
LB: loop body
LE: loop exit
PB: predicated region body
PF: predicated region fallthrough
CT: control target
= control target key end

     0   :  { %s22_s0 = inlined_call_operand.vmem [shape: f32[32], index: 0, kind: input, shape index: {}]   ;;  %s23_s1 = inlined_call_operand.vmem [shape: f32[4,32], index: 1, kind: output, shape index: {}]  }
   0x1   :  { %v4_v0 = vld [vmem:[%s22_s0] ss:$0 sm:$0xff] }
   0x2   :  { %5 = vst [vmem:[%s23_s1] sm:$0xf] %v4_v0 }

// kernel: tile.15
= control target key start
LH: loop header
LB: loop body
LE: loop exit
PB: predicated region body
PF: predicated region fallthrough
CT: control target
= control target key end

     0   :  { %vm7_vm0 = vcmask 261120   ;;  %s37_s8 = smov 32   ;;  %s38_s9 = smov 64   ;;  %vm13_vm1 = vcmask 1048320   ;;  %vm19_vm2 = vcmask 785920   ;;  %vm25_vm3 = vcmask 523520   ;;  %s55_s0 = inlined_call_operand.vmem [shape: f32[4,32], index: 0, kind: input, shape index: {}]   ;;  %s56_s1 = inlined_call_operand.vmem [shape: f32[1,128], index: 1, kind: output, shape index: {}]  }
   0x1   :  { %v4_v0 = vld [vmem:[%s55_s0] sm:$0xf]  ;;  %s36_s0 = smov 96  }
   0x2   :  { %5 = vst [vmem:[#allocation1] sm:$0xf] %v4_v0 }
   0x9   :  { %v10_v1 = vld [vmem:[#allocation1 + $0x3] sm:$0x1]   ;;  %v22_v2 = vld [vmem:[#allocation1 + $0x1] sm:$0x1]   ;;  %v6_v3 = vld [vmem:[#allocation1] sm:$0x1]  }
   0xa   :  { %11 = vrot.lane.b32.xlu0 %v10_v1, %s36_s0  ;;  %23 = vrot.lane.b32.xlu1 %v22_v2, %s37_s8  ;;  %v16_v4 = vld [vmem:[#allocation1 + $0x2] sm:$0x1]   ;;  %8 = vst.msk [vmem:[#allocation0] sm:$0x1] %vm7_vm0, %v6_v3  }
   0xe   :  { %17 = vrot.lane.b32.xlu0 %v16_v4, %s38_s9 }
  0x7c   :  { %v12_v5 = vpop.permute.xlu0 %11   ;;  %v24_v6 = vpop.permute.xlu1 %23  }
  0x7d   :  { %14 = vst.msk [vmem:[#allocation0] sm:$0x1] %vm13_vm1, %v12_v5  }
  0x80   :  { %v18_v7 = vpop.permute.xlu0 %17  }
  0x81   :  { %20 = vst.msk [vmem:[#allocation0] sm:$0x1] %vm19_vm2, %v18_v7  }
  0x82   :  { %26 = vst.msk [vmem:[#allocation0] sm:$0x1] %vm25_vm3, %v24_v6  }
  0x89   :  { %v30_v8 = vld [vmem:[#allocation0] sm:$0x1] }
  0x8a   :  { %32 = vst [vmem:[%s56_s1] sm:$0x1] %v30_v8 }

// kernel: _lambda_.1
= control target key start
LH: loop header
LB: loop body
LE: loop exit
PB: predicated region body
PF: predicated region fallthrough
CT: control target
= control target key end

     0   :  { %14 = vsyncpa [#allocation4], 0  ;;  %s9425_s0 = inlined_call_operand.vmem [shape: f32[4,7,16,28], index: 0, kind: input, shape index: {}]   ;;  %s9426_s1 = inlined_call_operand.vmem [shape: f32[5,28,384], index: 1, kind: input, shape index: {}]   ;;  %s9427_s2 = inlined_call_operand.vmem [shape: f32[1,192], index: 2, kind: input, shape index: {}]   ;;  %s9428_s3 = inlined_call_operand.vmem [shape: f32[5,192,256], index: 3, kind: input, shape index: {}]   ;;  %s9429_s4 = inlined_call_operand.vmem [shape: f32[1,128], index: 4, kind: input, shape index: {}]   ;;  %s9430_s5 = inlined_call_operand.vmem [shape: f32[4,128,32], index: 5, kind: input, shape index: {}]   ;;  %s9431_s6 = inlined_call_operand.vmem [shape: f32[1,32], index: 6, kind: input, shape index: {}]   ;;  %s9432_s7 = inlined_call_operand.vmem [shape: f32[32,10], index: 7, kind: input, shape index: {}]   ;;  %s9433_s8 = inlined_call_operand.vmem [shape: f32[1,10], index: 8, kind: input, shape index: {}]   ;;  %s9434_s9 = inlined_call_operand.hbm [shape: f32[16,10], index: 9, kind: output, shape index: {}]  }
   0x1   :  { %16 = vsyncpa [#allocation4 + $0x1], 0  ;;  %s6825_s30 = smov 0   ;;  %s6827_s10 = smov 0  }
   0x2   :  { %s6829_s11 = smov 0   ;;  %s6831_s12 = smov 0  }
   0x3 LB: > { %s9435_s13 = sadd.s32 4294967295, %s6767_s12   ;;  %s4642_s14 = sadd.s32 4294967294, %s6767_s12   ;;  %s6767_s12 = sphi %s6831_s12, %s9463_s12   ;;  %s6763_s11 = sphi %s6829_s11, %s9462_s11   ;;  %s6759_s10 = sphi %s6827_s10, %s9461_s10   ;;  %s6755_s30 = sphi %s6825_s30, %s9460_s30  }
   0x4   : > { %s6848_s15 = sadd.s32 1, %s6767_s12   ;;  %s29_s16 = sadd.s32 1, %s6763_s11 }
   0x5   : > { %s26_s17 = ssub.s32 %s6767_s12, %s6848_s15  ;;  %p36_p0 = scmp.ne.s32.totalorder %s6763_s11, %s6759_s10 }
   0x6   : > { %p27_p1 = scmp.eq.s32.totalorder %s26_s17, 0  ;;  %p37_p2 = scmp.eq.s32.totalorder %s6767_s12, 0 }
   0x7   : > { %p234_p3 = scmp.eq.s32.totalorder %s9435_s13, 1  ;;  %p239_p4 = scmp.ne.s32.totalorder %s6759_s10, %s6755_s30 }
   0x8   : > { %s6861_s18 = scalar_select %p27_p1, %s6763_s11, %s29_s16  }
   0x9   : > { %p38_p5 = por %p37_p2, %p36_p0  ;;  %p6863_p6 = por %p234_p3, %p36_p0 }
   0xa   : > { %p240_p7 = scmp.eq.s32.totalorder %s4642_s14, 1  ;;  %p4644_p9 = scmp.ge.s32.totalorder %s6767_s12, 2 }
   0xc   : > { %p6867_p8 = por %p240_p7, %p239_p4  ;;  %280 = sbr.rel (%p4644_p9) target bundleno = 37 (0x25), region = 48 }
  0x13   : > { %283 = sbr.rel (!%p38_p5) target bundleno = 37 (0x25), region = 52  ;;  %s285_s21 = sand.u32 (%p38_p5), 1, %s6763_s11  }
  0x14   : > { %s4645_s22 = sshll.u32 (%p38_p5), %s6767_s12, 3  ;;  %s6659_s23 = smul.u32 (%p38_p5), 224, %s285_s21 }
  0x15   : > { %s6879_s26 = scalar_lea.vmem (%p38_p5), %s9425_s0, %s4645_s22 }
  0x16   : > { %v371_v0 = vld [vmem:[%s6879_s26] sm:$0xff] (%p38_p5)  ;;  %v373_v1 = vld [vmem:[%s6879_s26 + $0x10] sm:$0xff] (%p38_p5)  ;;  %s6887_s27 = scalar_lea.vmem (%p38_p5), [#allocation2], %s6659_s23 }
  0x17   : > { %v375_v2 = vld [vmem:[%s6879_s26 + $0x20] sm:$0xff] (%p38_p5)  ;;  %v377_v3 = vld [vmem:[%s6879_s26 + $0x30] sm:$0xff] (%p38_p5)  ;;  %372 = vst [vmem:[%s6887_s27] sm:$0xff] (%p38_p5), %v371_v0  ;;  %374 = vst [vmem:[%s6887_s27 + $0x8] sm:$0xff] (%p38_p5), %v373_v1 }
  0x18   : > { %v379_v4 = vld [vmem:[%s6879_s26 + $0x40] sm:$0xff] (%p38_p5)  ;;  %v381_v5 = vld [vmem:[%s6879_s26 + $0x50] sm:$0xff] (%p38_p5)  ;;  %376 = vst [vmem:[%s6887_s27 + $0x10] sm:$0xff] (%p38_p5), %v375_v2  ;;  %378 = vst [vmem:[%s6887_s27 + $0x18] sm:$0xff] (%p38_p5), %v377_v3 }
  0x19   : > { %380 = vst [vmem:[%s6887_s27 + $0x20] sm:$0xff] (%p38_p5), %v379_v4  ;;  %382 = vst [vmem:[%s6887_s27 + $0x28] sm:$0xff] (%p38_p5), %v381_v5  ;;  %v383_v6 = vld [vmem:[%s6879_s26 + $0x60] sm:$0xff] (%p38_p5)  ;;  %v385_v7 = vld [vmem:[%s6879_s26 + $0x70] sm:$0xff] (%p38_p5) }
  0x1a   : > { %v387_v8 = vld [vmem:[%s6879_s26 + $0x80] sm:$0xff]  ;;  %384 = vst [vmem:[%s6887_s27 + $0x30] sm:$0xff] %v383_v6  ;;  %386 = vst [vmem:[%s6887_s27 + $0x38] sm:$0xff] %v385_v7  ;;  %v389_v9 = vld [vmem:[%s6879_s26 + $0x90] sm:$0xff] }
  0x1b   : > { %388 = vst [vmem:[%s6887_s27 + $0x40] sm:$0xff] %v387_v8  ;;  %v391_v10 = vld [vmem:[%s6879_s26 + $0xa0] sm:$0xff]  ;;  %v393_v11 = vld [vmem:[%s6879_s26 + $0xb0] sm:$0xff]  ;;  %390 = vst [vmem:[%s6887_s27 + $0x48] sm:$0xff] %v389_v9 }
  0x1c   : > { %392 = vst [vmem:[%s6887_s27 + $0x50] sm:$0xff] %v391_v10  ;;  %394 = vst [vmem:[%s6887_s27 + $0x58] sm:$0xff] %v393_v11  ;;  %v395_v12 = vld [vmem:[%s6879_s26 + $0xc0] sm:$0xff]  ;;  %v397_v13 = vld [vmem:[%s6879_s26 + $0xd0] sm:$0xff] }
  0x1d   : > { %v399_v14 = vld [vmem:[%s6879_s26 + $0xe0] sm:$0xff]  ;;  %396 = vst [vmem:[%s6887_s27 + $0x60] sm:$0xff] %v395_v12  ;;  %398 = vst [vmem:[%s6887_s27 + $0x68] sm:$0xff] %v397_v13  ;;  %v401_v15 = vld [vmem:[%s6879_s26 + $0xf0] sm:$0xff] }
  0x1e   : > { %400 = vst [vmem:[%s6887_s27 + $0x70] sm:$0xff] %v399_v14  ;;  %v403_v16 = vld [vmem:[%s6879_s26 + $0x100] sm:$0xff]  ;;  %v405_v17 = vld [vmem:[%s6879_s26 + $0x110] sm:$0xff]  ;;  %402 = vst [vmem:[%s6887_s27 + $0x78] sm:$0xff] %v401_v15 }
  0x1f   : > { %404 = vst [vmem:[%s6887_s27 + $0x80] sm:$0xff] %v403_v16  ;;  %406 = vst [vmem:[%s6887_s27 + $0x88] sm:$0xff] %v405_v17  ;;  %v407_v18 = vld [vmem:[%s6879_s26 + $0x120] sm:$0xff]  ;;  %v409_v19 = vld [vmem:[%s6879_s26 + $0x130] sm:$0xff] }
  0x20   : > { %v411_v20 = vld [vmem:[%s6879_s26 + $0x140] sm:$0xff]  ;;  %408 = vst [vmem:[%s6887_s27 + $0x90] sm:$0xff] %v407_v18  ;;  %410 = vst [vmem:[%s6887_s27 + $0x98] sm:$0xff] %v409_v19  ;;  %v413_v21 = vld [vmem:[%s6879_s26 + $0x150] sm:$0xff] }
  0x21   : > { %412 = vst [vmem:[%s6887_s27 + $0xa0] sm:$0xff] %v411_v20  ;;  %v415_v22 = vld [vmem:[%s6879_s26 + $0x160] sm:$0xff]  ;;  %v417_v23 = vld [vmem:[%s6879_s26 + $0x170] sm:$0xff]  ;;  %414 = vst [vmem:[%s6887_s27 + $0xa8] sm:$0xff] %v413_v21 }
  0x22   : > { %416 = vst [vmem:[%s6887_s27 + $0xb0] sm:$0xff] %v415_v22  ;;  %418 = vst [vmem:[%s6887_s27 + $0xb8] sm:$0xff] %v417_v23  ;;  %v419_v24 = vld [vmem:[%s6879_s26 + $0x180] sm:$0xff]  ;;  %v421_v25 = vld [vmem:[%s6879_s26 + $0x190] sm:$0xff] }
  0x23   : > { %v423_v26 = vld [vmem:[%s6879_s26 + $0x1a0] sm:$0xff]  ;;  %420 = vst [vmem:[%s6887_s27 + $0xc0] sm:$0xff] %v419_v24  ;;  %422 = vst [vmem:[%s6887_s27 + $0xc8] sm:$0xff] %v421_v25  ;;  %v425_v27 = vld [vmem:[%s6879_s26 + $0x1b0] sm:$0xff] }
  0x24   : > { %424 = vst [vmem:[%s6887_s27 + $0xd0] sm:$0xff] %v423_v26  ;;  %426 = vst [vmem:[%s6887_s27 + $0xd8] sm:$0xff] %v425_v27 }
  0x25 PF: > { %p4646_p10 = scmp.ge.s32.totalorder %s6767_s12, 1  ;;  %p431_p11 = scmp.lt.s32.totalorder %s6767_s12, 3 }
  0x27   : > { %p432_p12 = pnand %p4646_p10, %p431_p11 }
  0x28   : > { %v4673_v28 = vld [vmem:[%s9426_s1 + $0x68] sm:$0xff] (!%p432_p12)  ;;  %v4676_v29 = vld [vmem:[%s9426_s1 + $0x80] sm:$0xff] (!%p432_p12)  ;;  %vm605_vm0 = vcmask (!%p432_p12), 1043456   ;;  %v4675_v32 = vld [vmem:[%s9426_s1 + $0x78] sm:$0xff] (!%p432_p12)  ;;  %v9436_v35 = vmov (!%p432_p12), 0.0   ;;  %s6961_s28 = sand.u32 (!%p432_p12), 1, %s6759_s10  }
  0x29   : > { %435 = sbr.rel (%p432_p12) target bundleno = 1761 (0x6e1), region = 90  ;;  %v4672_v30 = vld [vmem:[%s9426_s1 + $0x60] sm:$0xff] (!%p432_p12)  ;;  %v5865_v31 = vpack.c.bf16 (!%p432_p12), %v4676_v29, %v4673_v28  ;;  %v4679_v33 = vld [vmem:[%s9426_s1 + $0x98] sm:$0xff] (!%p432_p12)  ;;  %v4682_v34 = vld [vmem:[%s9426_s1 + $0xb0] sm:$0xf] (!%p432_p12)  ;;  %679 = vmatprep.mubr.f32.mxu0 (!%p432_p12), %v9436_v35  ;;  %vm6770_vm1 = vmmov (!%p432_p12), 1  }
  0x2a   : > { %v5867_v36 = vpack.c.bf16 (!%p432_p12), %v4675_v32, %v4672_v30  ;;  %v5869_v37 = vpack.c.bf16 (!%p432_p12), %v4682_v34, %v4679_v33  ;;  %vm6963_vm2 = vmpackc.low (!%p432_p12), %vm605_vm0, %vm6770_vm1  ;;  %v4678_v39 = vld [vmem:[%s9426_s1 + $0x90] sm:$0xff] (!%p432_p12)  ;;  %v4681_v40 = vld [vmem:[%s9426_s1 + $0xa8] sm:$0xf] (!%p432_p12)  ;;  %s6660_s21 = smul.u32 (!%p432_p12), 224, %s6961_s28  ;;  %vm532_vm3 = vcmask (!%p432_p12), 228352   ;;  %s6771_s25 = smov (!%p432_p12), 64  }
  0x2b   : > { %5866 = vmatprep.subr.bf16.mxu0 (!%p432_p12), %v5865_v31  ;;  %v501_v41 = vld [vmem:[%s9426_s1 + $0x8] sm:$0xff] (!%p432_p12)  ;;  %v504_v42 = vld [vmem:[%s9426_s1 + $0x20] sm:$0xff] (!%p432_p12)  ;;  %v5872_v43 = vpack.c.bf16 (!%p432_p12), %v4681_v40, %v4678_v39  ;;  %v4674_v44 = vld [vmem:[%s9426_s1 + $0x70] sm:$0xff] (!%p432_p12)  ;;  %vm3077_vm4 = vcmask (!%p432_p12), 523264   ;;  %vm6773_vm5 = vmmov (!%p432_p12), 0   ;;  %vm4487_vm6 = vcmask (!%p432_p12), 261120  }
  0x2c   : > { %5868 = vmatpush1.bf16.msra.mxu0 (!%p432_p12), %v5867_v36  ;;  %v4677_v45 = vld [vmem:[%s9426_s1 + $0x88] sm:$0xff] (!%p432_p12)  ;;  %s6988_s16 = scalar_lea.vmem (!%p432_p12), [#allocation2], %s6660_s21  ;;  %v5885_v47 = vpack.c.bf16 (!%p432_p12), %v504_v42, %v501_v41  ;;  %v500_v48 = vld [vmem:[%s9426_s1] sm:$0xff] (!%p432_p12)  ;;  %v503_v49 = vld [vmem:[%s9426_s1 + $0x18] sm:$0xff] (!%p432_p12)  ;;  %s4647_s22 = sshll.u32 (!%p432_p12), %s6961_s28, 3  ;;  %vm4561_vm7 = vcmask (!%p432_p12), 80896  }
  0x2d   : > { %5871 = vmatprep.subr.msk.bf16.mxu0 (!%p432_p12), %vm6963_vm2, %v5869_v37  ;;  %v6991_v46 = vld [vmem:[%s6988_s16 + $0x38] sm:$0xff] (!%p432_p12)  ;;  %v5875_v50 = vpack.c.bf16 (!%p432_p12), %v4677_v45, %v4674_v44  ;;  %v4680_v51 = vld [vmem:[%s9426_s1 + $0xa0] sm:$0xff] (!%p432_p12)  ;;  %v5887_v54 = vpack.c.bf16 (!%p432_p12), %v503_v49, %v500_v48  ;;  %v510_v57 = vld [vmem:[%s9426_s1 + $0x50] sm:$0xf] (!%p432_p12)  ;;  %s9459_s13 = sadd.s32 (!%p432_p12), 4294967295, %s6767_s12   ;;  %s472_s26 = scalar_lea.vmem (!%p432_p12), [#allocation3], %s4647_s22 }
  0x2e   : > { %v4683_v52 = vld [vmem:[%s9426_s1 + $0xb8] sm:$0xf] (!%p432_p12)  ;;  %5502 = vmatprep.mubr.msk.f32.mxu1 (!%p432_p12), %vm532_vm3, %v6991_v46  ;;  %v7014_v55 = vld [vmem:[%s6988_s16 + $0x40] sm:$0xff] (!%p432_p12)  ;;  %v506_v58 = vld [vmem:[%s9426_s1 + $0x30] sm:$0xff] (!%p432_p12)  ;;  %s4577_s21 = sshll.u32 (!%p432_p12), %s472_s26, 4  ;;  %s4564_s14 = scalar_lea.sflag (!%p432_p12), [#allocation4], %s6961_s28  ;;  %s9383_s21 = int_to_ptr.vmem [resolvable:$true] %s4577_s21 }
  0x2f   : > { %5876 = vmatprep.subr.bf16.mxu1 (!%p432_p12), %v5875_v50  ;;  %v5879_v53 = vpack.c.bf16 (!%p432_p12), %v4683_v52, %v4680_v51  ;;  %v507_v56 = vld [vmem:[%s9426_s1 + $0x38] sm:$0xff] (!%p432_p12)  ;;  %v509_v59 = vld [vmem:[%s9426_s1 + $0x48] sm:$0xf] (!%p432_p12)  ;;  %v502_v62 = vld [vmem:[%s9426_s1 + $0x10] sm:$0xff] (!%p432_p12)  ;;  %s6705_s17 = scalar_lea.vmem (!%p432_p12), %s9383_s21, 128  ;;  %s6774_s22 = smov (!%p432_p12), [#allocation3]  }
  0x30   : > { %5874 = vmatpush1.bf16.msk.msra.mxu0 %vm6963_vm2, %v5872_v43  ;;  %5878 = vmatpush3.bf16.msra.mxu1 %v5875_v50  ;;  %v5889_v60 = vpack.c.bf16 %v510_v57, %v507_v56  ;;  %v5892_v61 = vpack.c.bf16 %v509_v59, %v506_v58  ;;  %v505_v63 = vld [vmem:[%s9426_s1 + $0x28] sm:$0xff]  ;;  %v508_v1 = vld [vmem:[%s9426_s1 + $0x40] sm:$0xff]  ;;  %v511_v3 = vld [vmem:[%s9426_s1 + $0x58] sm:$0xf]  ;;  %p6706_p13 = scmp.ne.s32.totalorder %s9383_s21, %s6705_s17  ;;  %s6709_s23 = sshll.u32 %s6774_s22, 4  ;;  %s6710_s23 = int_to_ptr.vmem [resolvable:$false] %s6709_s23 }
  0x31   : > { %5886 = vmatprep.subr.bf16.mxu0 %v5885_v47  ;;  %5881 = vmatprep.subr.msk.bf16.mxu1 %vm6963_vm2, %v5879_v53  ;;  %v5895_v0 = vpack.c.bf16 %v505_v63, %v502_v62  ;;  %v7046_v2 = vld [vmem:[%s6988_s16 + $0x48] sm:$0xff]  ;;  %v5899_v5 = vpack.c.bf16 %v511_v3, %v508_v1  ;;  %v4796_v6 = vld [vmem:[%s9426_s1 + $0xe0] sm:$0xff]  ;;  %v4794_v8 = vld [vmem:[%s9426_s1 + $0xd0] sm:$0xff]  ;;  %s6711_s24 = scalar_lea.vmem %s6710_s23, 256  ;;  %p6712_p2 = scmp.lt.s32.totalorder %s9383_s21, %s6710_s23 }
  0x32   : > { %v4793_v4 = vld [vmem:[%s9426_s1 + $0xc8] sm:$0xff]  ;;  %v7072_v10 = vld [vmem:[%s6988_s16 + $0x50] sm:$0xff]  ;;  %v7076_v11 = vld [vmem:[%s6988_s16 + $0x58] sm:$0xff]  ;;  %p6707_p0 = pnand %p6706_p13, %p6863_p6  ;;  %p6713_p3 = scmp.lt.s32.totalorder %s6711_s24, %s6705_s17 }
  0x33   : > { %4686 = vmatmul.mubr.msk.f32.vlgmr.msra.gmra.mrb[0].mxu0 %vm532_vm3, %v6991_v46  ;;  %v5905_v7 = vpack.c.bf16 %v4796_v6, %v4793_v4  ;;  %v4797_v9 = vld [vmem:[%s9426_s1 + $0xe8] sm:$0xff]  ;;  %v7089_v13 = vld [vmem:[%s6988_s16 + $0x60] sm:$0xff]  ;;  %v7102_v15 = vld [vmem:[%s6988_s16 + $0xb0] sm:$0xff] }
  0x34   : > { %5888 = vmatpush1.bf16.msra.mxu0 %v5887_v54  ;;  %685 = vmatprep.mubr.f32.mxu0 %v9436_v35  ;;  %v7084_v12 = vpack.c.bf16 %v4797_v9, %v4794_v8  ;;  %v7095_v14 = vld [vmem:[%s6988_s16 + $0xa8] sm:$0xff]  ;;  %v7106_v16 = vld [vmem:[%s6988_s16 + $0xb8] sm:$0xff]  ;;  %v7116_v17 = vld [vmem:[%s6988_s16 + $0xc0] sm:$0xff]  ;;  %p6708_p1 = pneg %p6707_p0  ;;  %p6714_p4 = por %p6713_p3, %p6712_p2 }
  0x35   : > { %5884 = vmatpush3.bf16.msk.msra.mxu1 %vm6963_vm2, %v5879_v53  ;;  %5891 = vmatprep.subr.msk.bf16.mxu0 %vm6963_vm2, %v5889_v60  ;;  %v7119_v18 = vld [vmem:[%s6988_s16 + $0xc8] sm:$0xff]  ;;  %v7129_v19 = vld [vmem:[%s6988_s16 + $0xd0] sm:$0xff]  ;;  %v7142_v21 = vld [vmem:[%s6988_s16 + $0x78] sm:$0xff] }
  0x36   : > { %5896 = vmatprep.subr.bf16.mxu1 %v5895_v0  ;;  %v7132_v20 = vld [vmem:[%s6988_s16 + $0x70] sm:$0xff]  ;;  %v7145_v22 = vld [vmem:[%s6988_s16 + $0x80] sm:$0xff]  ;;  %v7155_v23 = vld [vmem:[%s6988_s16 + $0x88] sm:$0xff]  ;;  %p6715_p5 = pnand %p6714_p4, %p6708_p1 }
  0x37   : > { %4687 = vmatmul.mubr.msk.f32.gmra.mrb[2].mxu0 %vm532_vm3, %v7014_v55  ;;  %v7158_v24 = vld [vmem:[%s6988_s16 + $0x90] sm:$0xff]  ;;  %v7168_v25 = vld [vmem:[%s6988_s16 + $0x98] sm:$0xff]  ;;  %v7171_v26 = vld [vmem:[%s6988_s16 + $0x8] sm:$0xff] }
  0x38   : > { %691 = vmatprep.mubr.f32.mxu0 %v9436_v35  ;;  %5503 = vmatmul.mubr.msk.f32.vlgmr.msra.gmra.mrb[0].mxu1 %vm532_vm3, %v7014_v55  ;;  %v7181_v27 = vld [vmem:[%s6988_s16 + $0x10] sm:$0xff]  ;;  %v7184_v28 = vld [vmem:[%s6988_s16 + $0x18] sm:$0xff]  ;;  %v7194_v29 = vld [vmem:[%s6988_s16 + $0x20] sm:$0xff] }
  0x39   : > { %5505 = vmatprep.mubr.msk.f32.mxu1 %vm532_vm3, %v7046_v2  ;;  %5894 = vmatpush1.bf16.msk.msra.mxu0 %vm6963_vm2, %v5892_v61  ;;  %v7197_v30 = vld [vmem:[%s6988_s16 + $0x28] sm:$0xff]  ;;  %v7207_v31 = vld [vmem:[%s6988_s16 + $0x30] sm:$0xff]  ;;  %v7210_v32 = vld [vmem:[%s6988_s16] sm:$0xff] }
  0x3a   : > { %5898 = vmatpush3.bf16.msra.mxu1 %v5895_v0  ;;  %5906 = vmatprep.subr.bf16.mxu0 %v5905_v7  ;;  %v4800_v33 = vld [vmem:[%s9426_s1 + $0x100] sm:$0xff]  ;;  %v4803_v34 = vld [vmem:[%s9426_s1 + $0x118] sm:$0xf]  ;;  %v4863_v37 = vld [vmem:[%s9426_s1 + $0x130] sm:$0xff] }
  0x3b   : > { %4688 = vmatmul.mubr.msk.f32.gmra.mrb[4].mxu0 %vm532_vm3, %v7046_v2  ;;  %5901 = vmatprep.subr.msk.bf16.mxu1 %vm6963_vm2, %v5899_v5  ;;  %v5919_v36 = vpack.c.bf16 %v4803_v34, %v4800_v33  ;;  %v4866_v39 = vld [vmem:[%s9426_s1 + $0x148] sm:$0xff]  ;;  %v4792_v41 = vld [vmem:[%s9426_s1 + $0xc0] sm:$0xff]  ;;  %v4795_v42 = vld [vmem:[%s9426_s1 + $0xd8] sm:$0xff] }
  0x3c   : > { %697 = vmatprep.mubr.f32.mxu0 %v9436_v35  ;;  %5506 = vmatmul.mubr.msk.f32.gmra.mrb[2].mxu1 %vm532_vm3, %v7072_v10  ;;  %v7241_v40 = vpack.c.bf16 %v4866_v39, %v4863_v37  ;;  %v4799_v43 = vld [vmem:[%s9426_s1 + $0xf8] sm:$0xff]  ;;  %v4802_v44 = vld [vmem:[%s9426_s1 + $0x110] sm:$0xf]  ;;  %v5907_v45 = vpack.c.bf16 %v4795_v42, %v4792_v41  ;;  %v4801_v49 = vld [vmem:[%s9426_s1 + $0x108] sm:$0xf] }
  0x3d   : > { %5508 = vmatprep.mubr.msk.f32.mxu1 %vm532_vm3, %v7076_v11  ;;  %v5909_v47 = vpack.c.bf16 %v4802_v44, %v4799_v43  ;;  %v4798_v48 = vld [vmem:[%s9426_s1 + $0xf0] sm:$0xff]  ;;  %v4862_v50 = vld [vmem:[%s9426_s1 + $0x128] sm:$0xff]  ;;  %v4865_v51 = vld [vmem:[%s9426_s1 + $0x140] sm:$0xff] }
  0x3e   : > { %5904 = vmatpush3.bf16.msk.msra.mxu1 %vm6963_vm2, %v5899_v5  ;;  %v5912_v52 = vpack.c.bf16 %v4801_v49, %v4798_v48  ;;  %v4869_v53 = vld [vmem:[%s9426_s1 + $0x160] sm:$0xff]  ;;  %v4872_v54 = vld [vmem:[%s9426_s1 + $0x178] sm:$0xf]  ;;  %v5925_v56 = vpack.c.bf16 %v4865_v51, %v4862_v50  ;;  %v4932_v58 = vld [vmem:[%s9426_s1 + $0x190] sm:$0xff] }
  0x3f   : > { %4689 = vmatmul.mubr.msk.f32.gmra.mrb[6].mxu0 %vm532_vm3, %v7072_v10  ;;  %5916 = vmatprep.subr.bf16.mxu1 %v7084_v12  ;;  %v5939_v57 = vpack.c.bf16 %v4872_v54, %v4869_v53  ;;  %v4935_v59 = vld [vmem:[%s9426_s1 + $0x1a8] sm:$0xff]  ;;  %v4938_v62 = vld [vmem:[%s9426_s1 + $0x1c0] sm:$0xff]  ;;  %v4941_v63 = vld [vmem:[%s9426_s1 + $0x1d8] sm:$0xf] }
  0x40   : > { %703 = vmatprep.mubr.f32.mxu0 %v9436_v35  ;;  %5509 = vmatmul.mubr.msk.f32.gmra.mrb[4].mxu1 %vm532_vm3, %v7089_v13  ;;  %v5955_v60 = vpack.c.bf16 %v4935_v59, %v4932_v58  ;;  %v7446_v61 = vld [vmem:[%s6988_s16 + $0x68] sm:$0xff]  ;;  %v4861_v0 = vld [vmem:[%s9426_s1 + $0x120] sm:$0xff]  ;;  %v4864_v1 = vld [vmem:[%s9426_s1 + $0x138] sm:$0xff] }
  0x41   : > { %5511 = vmatprep.mubr.msk.f32.mxu1 %vm532_vm3, %v7095_v14  ;;  %v4868_v3 = vld [vmem:[%s9426_s1 + $0x158] sm:$0xff]  ;;  %v4871_v4 = vld [vmem:[%s9426_s1 + $0x170] sm:$0xf]  ;;  %v5927_v5 = vpack.c.bf16 %v4864_v1, %v4861_v0  ;;  %v4870_v8 = vld [vmem:[%s9426_s1 + $0x168] sm:$0xf] }
  0x42   : > { %v5929_v6 = vpack.c.bf16 %v4871_v4, %v4868_v3  ;;  %v4867_v7 = vld [vmem:[%s9426_s1 + $0x150] sm:$0xff]  ;;  %v7561_v9 = vld [vmem:[%s6988_s16 + $0xa0] sm:$0xff]  ;;  %v4933_v37 = vld [vmem:[%s9426_s1 + $0x198] sm:$0xff] }
  0x43   : > { %4690 = vmatmul.mubr.msk.f32.gmra.mrb[8].mxu0 %vm532_vm3, %v7076_v11  ;;  %v5932_v33 = vpack.c.bf16 %v4870_v8, %v4867_v7  ;;  %v4937_v39 = vld [vmem:[%s9426_s1 + $0x1b8] sm:$0xff]  ;;  %v4936_v43 = vld [vmem:[%s9426_s1 + $0x1b0] sm:$0xff]  ;;  %v4939_v44 = vld [vmem:[%s9426_s1 + $0x1c8] sm:$0xf] }
  0x44   : > { %709 = vmatprep.mubr.f32.mxu0 %v9436_v35  ;;  %5512 = vmatmul.mubr.msk.f32.gmra.mrb[6].mxu1 %vm532_vm3, %v7102_v15  ;;  %v5000_v3 = vld [vmem:[%s9428_s3 + $0x1b8] sm:$0xff]  ;;  %v4999_v7 = vld [vmem:[%s9428_s3 + $0x1b0] sm:$0xff]  ;;  %v5002_v8 = vld [vmem:[%s9428_s3 + $0x1c8] sm:$0xff] }
  0x45   : > { %5514 = vmatprep.mubr.msk.f32.mxu1 %vm532_vm3, %v7106_v16 }
  0x47   : > { %4691 = vmatmul.mubr.msk.f32.gmra.mrb[10].mxu0 %vm532_vm3, %v7089_v13 }
  0x48   : > { %715 = vmatprep.mubr.f32.mxu0 %v9436_v35  ;;  %5515 = vmatmul.mubr.msk.f32.gmra.mrb[8].mxu1 %vm532_vm3, %v7116_v17 }
  0x49   : > { %5517 = vmatprep.mubr.msk.f32.mxu1 %vm532_vm3, %v7119_v18 }
  0x4b   : > { %4692 = vmatmul.mubr.msk.f32.gmra.mrb[12].mxu0 %vm532_vm3, %v7095_v14 }
  0x4c   : > { %721 = vmatprep.mubr.f32.mxu0 %v9436_v35  ;;  %5518 = vmatmul.mubr.msk.f32.gmra.mrb[10].mxu1 %vm532_vm3, %v7129_v19 }
  0x4d   : > { %5520 = vmatprep.mubr.msk.f32.mxu1 %vm532_vm3, %v7132_v20 }
  0x4f   : > { %4693 = vmatmul.mubr.msk.f32.gmra.mrb[14].mxu0 %vm532_vm3, %v7102_v15 }
  0x50   : > { %727 = vmatprep.mubr.f32.mxu0 %v9436_v35  ;;  %5521 = vmatmul.mubr.msk.f32.gmra.mrb[12].mxu1 %vm532_vm3, %v7142_v21 }
  0x51   : > { %5523 = vmatprep.mubr.msk.f32.mxu1 %vm532_vm3, %v7145_v22 }
  0x53   : > { %4694 = vmatmul.mubr.msk.f32.gmra.mrb[16].mxu0 %vm532_vm3, %v7106_v16 }
  0x54   : > { %733 = vmatprep.mubr.f32.mxu0 %v9436_v35  ;;  %5524 = vmatmul.mubr.msk.f32.gmra.mrb[14].mxu1 %vm532_vm3, %v7155_v23 }
  0x55   : > { %5526 = vmatprep.mubr.msk.f32.mxu1 %vm532_vm3, %v7158_v24 }
  0x57   : > { %4695 = vmatmul.mubr.msk.f32.gmra.mrb[18].mxu0 %vm532_vm3, %v7116_v17 }
  0x58   : > { %739 = vmatprep.mubr.f32.mxu0 %v9436_v35  ;;  %5527 = vmatmul.mubr.msk.f32.gmra.mrb[16].mxu1 %vm532_vm3, %v7168_v25 }
  0x59   : > { %5529 = vmatprep.mubr.msk.f32.mxu1 %vm532_vm3, %v7171_v26 }
  0x5b   : > { %4696 = vmatmul.mubr.msk.f32.gmra.mrb[20].mxu0 %vm532_vm3, %v7119_v18 }
  0x5c   : > { %745 = vmatprep.mubr.f32.mxu0 %v9436_v35  ;;  %5530 = vmatmul.mubr.msk.f32.gmra.mrb[18].mxu1 %vm532_vm3, %v7181_v27 }
  0x5d   : > { %5532 = vmatprep.mubr.msk.f32.mxu1 %vm532_vm3, %v7184_v28 }
  0x5f   : > { %4697 = vmatmul.mubr.msk.f32.gmra.mrb[22].mxu0 %vm532_vm3, %v7129_v19 }
  0x60   : > { %751 = vmatprep.mubr.f32.mxu0 %v9436_v35  ;;  %5533 = vmatmul.mubr.msk.f32.gmra.mrb[20].mxu1 %vm532_vm3, %v7194_v29 }
  0x61   : > { %5535 = vmatprep.mubr.msk.f32.mxu1 %vm532_vm3, %v7197_v30 }
  0x63   : > { %4698 = vmatmul.mubr.msk.f32.gmra.mrb[24].mxu0 %vm532_vm3, %v7132_v20 }
  0x64   : > { %757 = vmatprep.mubr.f32.mxu0 %v9436_v35  ;;  %5536 = vmatmul.mubr.msk.f32.gmra.mrb[22].mxu1 %vm532_vm3, %v7207_v31 }
  0x65   : > { %5546 = vmatprep.mubr.msk.f32.mxu1 %vm532_vm3, %v7210_v32 }
  0x67   : > { %4699 = vmatmul.mubr.msk.f32.gmra.mrb[26].mxu0 %vm532_vm3, %v7142_v21 }
  0x68   : > { %763 = vmatprep.mubr.f32.mxu0 %v9436_v35  ;;  %5547 = vmatmul.mubr.msk.f32.vlgmr.msra.gmra.mrb[0].mxu1 %vm532_vm3, %v7171_v26 }
  0x69   : > { %5549 = vmatprep.mubr.msk.f32.mxu1 %vm532_vm3, %v7181_v27  ;;  %5918 = vmatpush3.bf16.msra.mxu1 %v7084_v12  ;;  %v4931_v12 = vld [vmem:[%s9426_s1 + $0x188] sm:$0xff] }
  0x6a   : > { %5921 = vmatprep.subr.msk.bf16.mxu1 %vm6963_vm2, %v5919_v36 }
  0x6b   : > { %4700 = vmatmul.mubr.msk.f32.gmra.mrb[28].mxu0 %vm532_vm3, %v7145_v22 }
  0x6c   : > { %769 = vmatprep.mubr.f32.mxu0 %v9436_v35  ;;  %5550 = vmatmul.mubr.msk.f32.gmra.mrb[2].mxu1 %vm532_vm3, %v7184_v28 }
  0x6d   : > { %5552 = vmatprep.mubr.msk.f32.mxu1 %vm532_vm3, %v7194_v29  ;;  %5924 = vmatpush3.bf16.msk.msra.mxu1 %vm6963_vm2, %v5919_v36  ;;  %v4930_v36 = vld [vmem:[%s9426_s1 + $0x180] sm:$0xff] }
  0x6e   : > { %5936 = vmatprep.subr.bf16.mxu1 %v7241_v40  ;;  %v5947_v41 = vpack.c.bf16 %v4933_v37, %v4930_v36  ;;  %v5008_v36 = vld [vmem:[%s9428_s3 + $0x1f8] sm:$0xff] }
  0x6f   : > { %4701 = vmatmul.mubr.msk.f32.gmra.mrb[30].mxu0 %vm532_vm3, %v7155_v23 }
  0x70   : > { %775 = vmatprep.mubr.f32.mxu0 %v9436_v35  ;;  %5553 = vmatmul.mubr.msk.f32.gmra.mrb[4].mxu1 %vm532_vm3, %v7197_v30 }
  0x71   : > { %5555 = vmatprep.mubr.msk.f32.mxu1 %vm532_vm3, %v7132_v20 }
  0x73   : > { %4702 = vmatmul.mubr.msk.f32.gmra.mrb[32].mxu0 %vm532_vm3, %v7158_v24 }
  0x74   : > { %781 = vmatprep.mubr.f32.mxu0 %v9436_v35  ;;  %5556 = vmatmul.mubr.msk.f32.gmra.mrb[6].mxu1 %vm532_vm3, %v7142_v21 }
  0x75   : > { %5558 = vmatprep.mubr.msk.f32.mxu1 %vm532_vm3, %v7145_v22 }
  0x77   : > { %4703 = vmatmul.mubr.msk.f32.gmra.mrb[34].mxu0 %vm532_vm3, %v7168_v25 }
  0x78   : > { %787 = vmatprep.mubr.f32.mxu0 %v9436_v35  ;;  %5559 = vmatmul.mubr.msk.f32.gmra.mrb[8].mxu1 %vm532_vm3, %v7155_v23 }
  0x79   : > { %5561 = vmatprep.mubr.msk.f32.mxu1 %vm532_vm3, %v7158_v24 }
  0x7b   : > { %4704 = vmatmul.mubr.msk.f32.gmra.mrb[36].mxu0 %vm532_vm3, %v7171_v26 }
  0x7c   : > { %793 = vmatprep.mubr.f32.mxu0 %v9436_v35  ;;  %5562 = vmatmul.mubr.msk.f32.gmra.mrb[10].mxu1 %vm532_vm3, %v7168_v25 }
  0x7d   : > { %5564 = vmatprep.mubr.msk.f32.mxu1 %vm532_vm3, %v6991_v46 }
  0x7f   : > { %4705 = vmatmul.mubr.msk.f32.gmra.mrb[38].mxu0 %vm532_vm3, %v7181_v27 }
  0x80   : > { %799 = vmatprep.mubr.f32.mxu0 %v9436_v35  ;;  %5565 = vmatmul.mubr.msk.f32.gmra.mrb[12].mxu1 %vm532_vm3, %v7014_v55 }
  0x81   : > { %5567 = vmatprep.mubr.msk.f32.mxu1 %vm532_vm3, %v7046_v2 }
  0x83   : > { %4706 = vmatmul.mubr.msk.f32.gmra.mrb[40].mxu0 %vm532_vm3, %v7184_v28 }
  0x84   : > { %805 = vmatprep.mubr.f32.mxu0 %v9436_v35  ;;  %5568 = vmatmul.mubr.msk.f32.gmra.mrb[14].mxu1 %vm532_vm3, %v7072_v10 }
  0x85   : > { %5570 = vmatprep.mubr.msk.f32.mxu1 %vm532_vm3, %v7076_v11 }
  0x87   : > { %4707 = vmatmul.mubr.msk.f32.gmra.mrb[42].mxu0 %vm532_vm3, %v7194_v29 }
  0x88   : > { %811 = vmatprep.mubr.f32.mxu0 %v9436_v35  ;;  %5571 = vmatmul.mubr.msk.f32.gmra.mrb[16].mxu1 %vm532_vm3, %v7089_v13 }
  0x89   : > { %5573 = vmatprep.mubr.msk.f32.mxu1 %vm532_vm3, %v7095_v14 }
  0x8b   : > { %4708 = vmatmul.mubr.msk.f32.gmra.mrb[44].mxu0 %vm532_vm3, %v7197_v30 }
  0x8c   : > { %817 = vmatprep.mubr.f32.mxu0 %v9436_v35  ;;  %5574 = vmatmul.mubr.msk.f32.gmra.mrb[18].mxu1 %vm532_vm3, %v7102_v15 }
  0x8d   : > { %5576 = vmatprep.mubr.msk.f32.mxu1 %vm532_vm3, %v7106_v16 }
  0x8f   : > { %4709 = vmatmul.mubr.msk.f32.gmra.mrb[46].mxu0 %vm532_vm3, %v7207_v31 }
  0x90   : > { %1100 = vmatprep.mubr.f32.mxu0 %v9436_v35  ;;  %5577 = vmatmul.mubr.msk.f32.gmra.mrb[20].mxu1 %vm532_vm3, %v7116_v17 }
  0x91   : > { %5579 = vmatprep.mubr.msk.f32.mxu1 %vm532_vm3, %v7119_v18 }
  0x93   : > { %4737 = vmatmul.mubr.msk.f32.vlgmr.msra.gmra.mrb[0].mxu0 %vm532_vm3, %v7210_v32  ;;  %v4934_v32 = vld [vmem:[%s9426_s1 + $0x1a0] sm:$0xff] }
  0x94   : > { %5908 = vmatpush1.bf16.msra.mxu0 %v5907_v45  ;;  %1106 = vmatprep.mubr.f32.mxu0 %v9436_v35  ;;  %v5945_v34 = vpack.c.bf16 %v4934_v32, %v4931_v12  ;;  %v5952_v45 = vpack.c.bf16 %v4939_v44, %v4936_v43  ;;  %v5007_v43 = vld [vmem:[%s9428_s3 + $0x1f0] sm:$0xff]  ;;  %v5010_v44 = vld [vmem:[%s9428_s3 + $0x208] sm:$0xff] }
  0x95   : > { %5580 = vmatmul.mubr.msk.f32.gmra.mrb[22].mxu1 %vm532_vm3, %v7129_v19  ;;  %5911 = vmatprep.subr.msk.bf16.mxu0 %vm6963_vm2, %v5909_v47 }
  0x96   : > { %5590 = vmatprep.mubr.msk.f32.mxu1 %vm532_vm3, %v7132_v20 }
  0x97   : > { %4738 = vmatmul.mubr.msk.f32.gmra.mrb[2].mxu0 %vm532_vm3, %v7171_v26 }
  0x98   : > { %1112 = vmatprep.mubr.f32.mxu0 %v9436_v35  ;;  %5914 = vmatpush1.bf16.msk.msra.mxu0 %vm6963_vm2, %v5912_v52 }
  0x99   : > { %5591 = vmatmul.mubr.msk.f32.vlgmr.msra.gmra.mrb[0].mxu1 %vm532_vm3, %v7142_v21  ;;  %5926 = vmatprep.subr.bf16.mxu0 %v5925_v56 }
  0x9a   : > { %5593 = vmatprep.mubr.msk.f32.mxu1 %vm532_vm3, %v7145_v22  ;;  %5938 = vmatpush3.bf16.msra.mxu1 %v7241_v40  ;;  %v4940_v40 = vld [vmem:[%s9426_s1 + $0x1d0] sm:$0xf] }
  0x9b   : > { %4739 = vmatmul.mubr.msk.f32.gmra.mrb[4].mxu0 %vm532_vm3, %v7181_v27  ;;  %5941 = vmatprep.subr.msk.bf16.mxu1 %vm6963_vm2, %v5939_v57  ;;  %v5949_v42 = vpack.c.bf16 %v4940_v40, %v4937_v39 }
  0x9c   : > { %1118 = vmatprep.mubr.f32.mxu0 %v9436_v35 }
  0x9d   : > { %5594 = vmatmul.mubr.msk.f32.gmra.mrb[2].mxu1 %vm532_vm3, %v7155_v23 }
  0x9e   : > { %5596 = vmatprep.mubr.msk.f32.mxu1 %vm532_vm3, %v7158_v24  ;;  %5944 = vmatpush3.bf16.msk.msra.mxu1 %vm6963_vm2, %v5939_v57 }
  0x9f   : > { %4740 = vmatmul.mubr.msk.f32.gmra.mrb[6].mxu0 %vm532_vm3, %v7184_v28  ;;  %5956 = vmatprep.subr.bf16.mxu1 %v5955_v60 }
  0xa0   : > { %1124 = vmatprep.mubr.f32.mxu0 %v9436_v35 }
  0xa1   : > { %5597 = vmatmul.mubr.msk.f32.gmra.mrb[4].mxu1 %vm532_vm3, %v7168_v25 }
  0xa2   : > { %5599 = vmatprep.mubr.msk.f32.mxu1 %vm532_vm3, %v7171_v26 }
  0xa3   : > { %4741 = vmatmul.mubr.msk.f32.gmra.mrb[8].mxu0 %vm532_vm3, %v7194_v29 }
  0xa4   : > { %1130 = vmatprep.mubr.f32.mxu0 %v9436_v35 }
  0xa5   : > { %5600 = vmatmul.mubr.msk.f32.gmra.mrb[6].mxu1 %vm532_vm3, %v7181_v27 }
  0xa6   : > { %5602 = vmatprep.mubr.msk.f32.mxu1 %vm532_vm3, %v7184_v28 }
  0xa7   : > { %4742 = vmatmul.mubr.msk.f32.gmra.mrb[10].mxu0 %vm532_vm3, %v7197_v30 }
  0xa8   : > { %1136 = vmatprep.mubr.f32.mxu0 %v9436_v35 }
  0xa9   : > { %5603 = vmatmul.mubr.msk.f32.gmra.mrb[8].mxu1 %vm532_vm3, %v7194_v29 }
  0xaa   : > { %5605 = vmatprep.mubr.msk.f32.mxu1 %vm532_vm3, %v7197_v30 }
  0xab   : > { %4743 = vmatmul.mubr.msk.f32.gmra.mrb[12].mxu0 %vm532_vm3, %v7132_v20 }
  0xac   : > { %1142 = vmatprep.mubr.f32.mxu0 %v9436_v35 }
  0xad   : > { %5606 = vmatmul.mubr.msk.f32.gmra.mrb[10].mxu1 %vm532_vm3, %v7207_v31 }
  0xae   : > { %5608 = vmatprep.mubr.msk.f32.mxu1 %vm532_vm3, %v7095_v14 }
  0xaf   : > { %4744 = vmatmul.mubr.msk.f32.gmra.mrb[14].mxu0 %vm532_vm3, %v7142_v21 }
  0xb0   : > { %1148 = vmatprep.mubr.f32.mxu0 %v9436_v35 }
  0xb1   : > { %5609 = vmatmul.mubr.msk.f32.gmra.mrb[12].mxu1 %vm532_vm3, %v7102_v15 }
  0xb2   : > { %5611 = vmatprep.mubr.msk.f32.mxu1 %vm532_vm3, %v7106_v16 }
  0xb3   : > { %4745 = vmatmul.mubr.msk.f32.gmra.mrb[16].mxu0 %vm532_vm3, %v7145_v22 }
  0xb4   : > { %1154 = vmatprep.mubr.f32.mxu0 %v9436_v35 }
  0xb5   : > { %5612 = vmatmul.mubr.msk.f32.gmra.mrb[14].mxu1 %vm532_vm3, %v7116_v17 }
  0xb6   : > { %5614 = vmatprep.mubr.msk.f32.mxu1 %vm532_vm3, %v7119_v18 }
  0xb7   : > { %4746 = vmatmul.mubr.msk.f32.gmra.mrb[18].mxu0 %vm532_vm3, %v7155_v23 }
  0xb8   : > { %1160 = vmatprep.mubr.f32.mxu0 %v9436_v35 }
  0xb9   : > { %5615 = vmatmul.mubr.msk.f32.gmra.mrb[16].mxu1 %vm532_vm3, %v7129_v19 }
  0xba   : > { %5617 = vmatprep.mubr.msk.f32.mxu1 %vm532_vm3, %v7014_v55 }
  0xbb   : > { %4747 = vmatmul.mubr.msk.f32.gmra.mrb[20].mxu0 %vm532_vm3, %v7158_v24 }
  0xbc   : > { %1166 = vmatprep.mubr.f32.mxu0 %v9436_v35 }
  0xbd   : > { %5618 = vmatmul.mubr.msk.f32.gmra.mrb[18].mxu1 %vm532_vm3, %v7046_v2 }
  0xbe   : > { %5620 = vmatprep.mubr.msk.f32.mxu1 %vm532_vm3, %v7072_v10 }
  0xbf   : > { %4748 = vmatmul.mubr.msk.f32.gmra.mrb[22].mxu0 %vm532_vm3, %v7168_v25 }
  0xc0   : > { %1172 = vmatprep.mubr.f32.mxu0 %v9436_v35 }
  0xc1   : > { %5621 = vmatmul.mubr.msk.f32.gmra.mrb[20].mxu1 %vm532_vm3, %v7076_v11 }
  0xc2   : > { %5623 = vmatprep.mubr.msk.f32.mxu1 %vm532_vm3, %v7089_v13 }
  0xc3   : > { %4749 = vmatmul.mubr.msk.f32.gmra.mrb[24].mxu0 %vm532_vm3, %v6991_v46  ;;  %v5959_v46 = vpack.c.bf16 %v4941_v63, %v4938_v62 }
  0xc4   : > { %1178 = vmatprep.mubr.f32.mxu0 %v9436_v35 }
  0xc5   : > { %5624 = vmatmul.mubr.msk.f32.gmra.mrb[22].mxu1 %vm532_vm3, %v7446_v61 }
  0xc6   : > { %5634 = vmatprep.mubr.msk.f32.mxu1 %vm532_vm3, %v7095_v14 }
  0xc7   : > { %4750 = vmatmul.mubr.msk.f32.gmra.mrb[26].mxu0 %vm532_vm3, %v7014_v55 }
  0xc8   : > { %1184 = vmatprep.mubr.f32.mxu0 %v9436_v35 }
  0xc9   : > { %5635 = vmatmul.mubr.msk.f32.vlgmr.msra.gmra.mrb[0].mxu1 %vm532_vm3, %v7102_v15 }
  0xca   : > { %5637 = vmatprep.mubr.msk.f32.mxu1 %vm532_vm3, %v7106_v16  ;;  %5958 = vmatpush3.bf16.msra.mxu1 %v5955_v60 }
  0xcb   : > { %4751 = vmatmul.mubr.msk.f32.gmra.mrb[28].mxu0 %vm532_vm3, %v7046_v2  ;;  %5961 = vmatprep.subr.msk.bf16.mxu1 %vm6963_vm2, %v5959_v46 }
  0xcc   : > { %1190 = vmatprep.mubr.f32.mxu0 %v9436_v35 }
  0xcd   : > { %5638 = vmatmul.mubr.msk.f32.gmra.mrb[2].mxu1 %vm532_vm3, %v7116_v17 }
  0xce   : > { %5640 = vmatprep.mubr.msk.f32.mxu1 %vm532_vm3, %v7119_v18  ;;  %5964 = vmatpush3.bf16.msk.msra.mxu1 %vm6963_vm2, %v5959_v46 }
  0xcf   : > { %4752 = vmatmul.mubr.msk.f32.gmra.mrb[30].mxu0 %vm532_vm3, %v7072_v10 }
  0xd0   : > { %1196 = vmatprep.mubr.f32.mxu0 %v9436_v35 }
  0xd1   : > { %5641 = vmatmul.mubr.msk.f32.gmra.mrb[4].mxu1 %vm532_vm3, %v7129_v19 }
  0xd2   : > { %5643 = vmatprep.mubr.msk.f32.mxu1 %vm532_vm3, %v7014_v55 }
  0xd3   : > { %4753 = vmatmul.mubr.msk.f32.gmra.mrb[32].mxu0 %vm532_vm3, %v7076_v11 }
  0xd4   : > { %1202 = vmatprep.mubr.f32.mxu0 %v9436_v35 }
  0xd5   : > { %5644 = vmatmul.mubr.msk.f32.gmra.mrb[6].mxu1 %vm532_vm3, %v7046_v2 }
  0xd6   : > { %5646 = vmatprep.mubr.msk.f32.mxu1 %vm532_vm3, %v7072_v10 }
  0xd7   : > { %4754 = vmatmul.mubr.msk.f32.gmra.mrb[34].mxu0 %vm532_vm3, %v7089_v13 }
  0xd8   : > { %1208 = vmatprep.mubr.f32.mxu0 %v9436_v35 }
  0xd9   : > { %5647 = vmatmul.mubr.msk.f32.gmra.mrb[8].mxu1 %vm532_vm3, %v7076_v11 }
  0xda   : > { %5649 = vmatprep.mubr.msk.f32.mxu1 %vm532_vm3, %v7089_v13 }
  0xdb   : > { %4755 = vmatmul.mubr.msk.f32.gmra.mrb[36].mxu0 %vm532_vm3, %v7095_v14 }
  0xdc   : > { %1214 = vmatprep.mubr.f32.mxu0 %v9436_v35 }
  0xdd   : > { %5650 = vmatmul.mubr.msk.f32.gmra.mrb[10].mxu1 %vm532_vm3, %v7446_v61 }
  0xde   : > { %5652 = vmatprep.mubr.msk.f32.mxu1 %vm532_vm3, %v7171_v26 }
  0xdf   : > { %4756 = vmatmul.mubr.msk.f32.gmra.mrb[38].mxu0 %vm532_vm3, %v7102_v15 }
  0xe0   : > { %1220 = vmatprep.mubr.f32.mxu0 %v9436_v35 }
  0xe1   : > { %5653 = vmatmul.mubr.msk.f32.gmra.mrb[12].mxu1 %vm532_vm3, %v7181_v27 }
  0xe2   : > { %5655 = vmatprep.mubr.msk.f32.mxu1 %vm532_vm3, %v7184_v28 }
  0xe3   : > { %4757 = vmatmul.mubr.msk.f32.gmra.mrb[40].mxu0 %vm532_vm3, %v7106_v16 }
  0xe4   : > { %1226 = vmatprep.mubr.f32.mxu0 %v9436_v35 }
  0xe5   : > { %5656 = vmatmul.mubr.msk.f32.gmra.mrb[14].mxu1 %vm532_vm3, %v7194_v29 }
  0xe6   : > { %5658 = vmatprep.mubr.msk.f32.mxu1 %vm532_vm3, %v7197_v30 }
  0xe7   : > { %4758 = vmatmul.mubr.msk.f32.gmra.mrb[42].mxu0 %vm532_vm3, %v7116_v17 }
  0xe8   : > { %1232 = vmatprep.mubr.f32.mxu0 %v9436_v35 }
  0xe9   : > { %5659 = vmatmul.mubr.msk.f32.gmra.mrb[16].mxu1 %vm532_vm3, %v7207_v31 }
  0xea   : > { %5661 = vmatprep.mubr.msk.f32.mxu1 %vm532_vm3, %v7142_v21 }
  0xeb   : > { %4759 = vmatmul.mubr.msk.f32.gmra.mrb[44].mxu0 %vm532_vm3, %v7119_v18 }
  0xec   : > { %1238 = vmatprep.mubr.f32.mxu0 %v9436_v35 }
  0xed   : > { %5662 = vmatmul.mubr.msk.f32.gmra.mrb[18].mxu1 %vm532_vm3, %v7145_v22 }
  0xee   : > { %5664 = vmatprep.mubr.msk.f32.mxu1 %vm532_vm3, %v7155_v23 }
  0xef   : > { %4760 = vmatmul.mubr.msk.f32.gmra.mrb[46].mxu0 %vm532_vm3, %v7129_v19 }
  0xf0   : > { %1541 = vmatprep.mubr.f32.mxu0 %v9436_v35 }
  0xf1   : > { %5665 = vmatmul.mubr.msk.f32.gmra.mrb[20].mxu1 %vm532_vm3, %v7158_v24 }
  0xf2   : > { %5667 = vmatprep.mubr.msk.f32.mxu1 %vm532_vm3, %v7168_v25 }
  0xf3   : > { %4806 = vmatmul.mubr.msk.f32.vlgmr.msra.gmra.mrb[0].mxu0 %vm532_vm3, %v7132_v20  ;;  %v7658_v20 = vld [vmem:[%s6988_s16 + $0xd8] sm:$0xff]  ;;  %s5278_s16 = sshll.u32 %s9459_s13, 7 }
  0xf4   : > { %5928 = vmatpush1.bf16.msra.mxu0 %v5927_v5  ;;  %1547 = vmatprep.mubr.f32.mxu0 %v9436_v35  ;;  %s9381_s29 = scalar_lea.hbm %s9434_s9, %s5278_s16 }
  0xf5   : > { %5668 = vmatmul.mubr.msk.f32.gmra.mrb[22].mxu1 %vm532_vm3, %v7561_v9  ;;  %5931 = vmatprep.subr.msk.bf16.mxu0 %vm6963_vm2, %v5929_v6  ;;  %v4997_v6 = vld [vmem:[%s9428_s3 + $0x1a0] sm:$0xff] }
  0xf6   : > { %5678 = vmatprep.mubr.msk.f32.mxu1 %vm532_vm3, %v7171_v26  ;;  %v5971_v12 = vpack.c.bf16 %v4999_v7, %v4997_v6  ;;  %v5013_v6 = vld [vmem:[%s9428_s3 + $0x220] sm:$0xff]  ;;  %v5015_v7 = vld [vmem:[%s9428_s3 + $0x230] sm:$0xff] }
  0xf7   : > { %4807 = vmatmul.mubr.msk.f32.gmra.mrb[2].mxu0 %vm532_vm3, %v7142_v21 }
  0xf8   : > { %1553 = vmatprep.mubr.f32.mxu0 %v9436_v35  ;;  %5934 = vmatpush1.bf16.msk.msra.mxu0 %vm6963_vm2, %v5932_v33  ;;  %v5001_v33 = vld [vmem:[%s9428_s3 + $0x1c0] sm:$0xff] }
  0xf9   : > { %5679 = vmatmul.mubr.msk.f32.vlgmr.msra.gmra.mrb[0].mxu1 %vm532_vm3, %v7181_v27  ;;  %5946 = vmatprep.subr.bf16.mxu0 %v5945_v34  ;;  %v5003_v34 = vld [vmem:[%s9428_s3 + $0x1d0] sm:$0xff] }
  0xfa   : > { %5681 = vmatprep.mubr.msk.f32.mxu1 %vm532_vm3, %v7184_v28  ;;  %v5975_v39 = vpack.c.bf16 %v5003_v34, %v5001_v33 }
  0xfb   : > { %4808 = vmatmul.mubr.msk.f32.gmra.mrb[4].mxu0 %vm532_vm3, %v7145_v22 }
  0xfc   : > { %1559 = vmatprep.mubr.f32.mxu0 %v9436_v35 }
  0xfd   : > { %5682 = vmatmul.mubr.msk.f32.gmra.mrb[2].mxu1 %vm532_vm3, %v7194_v29 }
  0xfe   : > { %5684 = vmatprep.mubr.msk.f32.mxu1 %vm532_vm3, %v7197_v30 }
  0xff   : > { %4809 = vmatmul.mubr.msk.f32.gmra.mrb[6].mxu0 %vm532_vm3, %v7155_v23 }
 0x100   : > { %1565 = vmatprep.mubr.f32.mxu0 %v9436_v35 }
 0x101   : > { %5685 = vmatmul.mubr.msk.f32.gmra.mrb[4].mxu1 %vm532_vm3, %v7207_v31 }
 0x102   : > { %5687 = vmatprep.mubr.msk.f32.mxu1 %vm532_vm3, %v7142_v21 }
 0x103   : > { %4810 = vmatmul.mubr.msk.f32.gmra.mrb[8].mxu0 %vm532_vm3, %v7158_v24 }
 0x104   : > { %1571 = vmatprep.mubr.f32.mxu0 %v9436_v35 }
 0x105   : > { %5688 = vmatmul.mubr.msk.f32.gmra.mrb[6].mxu1 %vm532_vm3, %v7145_v22 }
 0x106   : > { %5690 = vmatprep.mubr.msk.f32.mxu1 %vm532_vm3, %v7155_v23 }
 0x107   : > { %4811 = vmatmul.mubr.msk.f32.gmra.mrb[10].mxu0 %vm532_vm3, %v7168_v25 }
 0x108   : > { %1577 = vmatprep.mubr.f32.mxu0 %v9436_v35 }
 0x109   : > { %5691 = vmatmul.mubr.msk.f32.gmra.mrb[8].mxu1 %vm532_vm3, %v7158_v24 }
 0x10a   : > { %5693 = vmatprep.mubr.msk.f32.mxu1 %vm532_vm3, %v7168_v25 }
 0x10b   : > { %4812 = vmatmul.mubr.msk.f32.gmra.mrb[12].mxu0 %vm532_vm3, %v7171_v26 }
 0x10c   : > { %1583 = vmatprep.mubr.f32.mxu0 %v9436_v35 }
 0x10d   : > { %5694 = vmatmul.mubr.msk.f32.gmra.mrb[10].mxu1 %vm532_vm3, %v7561_v9 }
 0x10e   : > { %5696 = vmatprep.mubr.msk.f32.mxu1 %vm532_vm3, %v7014_v55 }
 0x10f   : > { %4813 = vmatmul.mubr.msk.f32.gmra.mrb[14].mxu0 %vm532_vm3, %v7181_v27 }
 0x110   : > { %1589 = vmatprep.mubr.f32.mxu0 %v9436_v35 }
 0x111   : > { %5697 = vmatmul.mubr.msk.f32.gmra.mrb[12].mxu1 %vm532_vm3, %v7046_v2 }
 0x112   : > { %5699 = vmatprep.mubr.msk.f32.mxu1 %vm532_vm3, %v7072_v10 }
 0x113   : > { %4814 = vmatmul.mubr.msk.f32.gmra.mrb[16].mxu0 %vm532_vm3, %v7184_v28 }
 0x114   : > { %1595 = vmatprep.mubr.f32.mxu0 %v9436_v35 }
 0x115   : > { %5700 = vmatmul.mubr.msk.f32.gmra.mrb[14].mxu1 %vm532_vm3, %v7076_v11 }
 0x116   : > { %5702 = vmatprep.mubr.msk.f32.mxu1 %vm532_vm3, %v7089_v13 }
 0x117   : > { %4815 = vmatmul.mubr.msk.f32.gmra.mrb[18].mxu0 %vm532_vm3, %v7194_v29 }
 0x118   : > { %1601 = vmatprep.mubr.f32.mxu0 %v9436_v35 }
 0x119   : > { %5703 = vmatmul.mubr.msk.f32.gmra.mrb[16].mxu1 %vm532_vm3, %v7446_v61 }
 0x11a   : > { %5705 = vmatprep.mubr.msk.f32.mxu1 %vm532_vm3, %v7102_v15 }
 0x11b   : > { %4816 = vmatmul.mubr.msk.f32.gmra.mrb[20].mxu0 %vm532_vm3, %v7197_v30 }
 0x11c   : > { %1607 = vmatprep.mubr.f32.mxu0 %v9436_v35 }
 0x11d   : > { %5706 = vmatmul.mubr.msk.f32.gmra.mrb[18].mxu1 %vm532_vm3, %v7106_v16 }
 0x11e   : > { %5708 = vmatprep.mubr.msk.f32.mxu1 %vm532_vm3, %v7116_v17 }
 0x11f   : > { %4817 = vmatmul.mubr.msk.f32.gmra.mrb[22].mxu0 %vm532_vm3, %v7207_v31 }
 0x120   : > { %1613 = vmatprep.mubr.f32.mxu0 %v9436_v35 }
 0x121   : > { %5709 = vmatmul.mubr.msk.f32.gmra.mrb[20].mxu1 %vm532_vm3, %v7119_v18 }
 0x122   : > { %5711 = vmatprep.mubr.msk.f32.mxu1 %vm532_vm3, %v7129_v19 }
 0x123   : > { %4818 = vmatmul.mubr.msk.f32.gmra.mrb[24].mxu0 %vm532_vm3, %v7095_v14 }
 0x124   : > { %1619 = vmatprep.mubr.f32.mxu0 %v9436_v35 }
 0x125   : > { %5712 = vmatmul.mubr.msk.f32.gmra.mrb[22].mxu1 %vm532_vm3, %v7658_v20 }
 0x127   : > { %4819 = vmatmul.mubr.msk.f32.gmra.mrb[26].mxu0 %vm532_vm3, %v7102_v15 }
 0x128   : > { %1625 = vmatprep.mubr.f32.mxu0 %v9436_v35 }
 0x12b   : > { %4820 = vmatmul.mubr.msk.f32.gmra.mrb[28].mxu0 %vm532_vm3, %v7106_v16 }
 0x12c   : > { %1631 = vmatprep.mubr.f32.mxu0 %v9436_v35 }
 0x12f   : > { %4821 = vmatmul.mubr.msk.f32.gmra.mrb[30].mxu0 %vm532_vm3, %v7116_v17 }
 0x130   : > { %1637 = vmatprep.mubr.f32.mxu0 %v9436_v35 }
 0x133   : > { %4822 = vmatmul.mubr.msk.f32.gmra.mrb[32].mxu0 %vm532_vm3, %v7119_v18 }
 0x134   : > { %1643 = vmatprep.mubr.f32.mxu0 %v9436_v35 }
 0x137   : > { %4823 = vmatmul.mubr.msk.f32.gmra.mrb[34].mxu0 %vm532_vm3, %v7129_v19 }
 0x138   : > { %1649 = vmatprep.mubr.f32.mxu0 %v9436_v35 }
 0x13b   : > { %4824 = vmatmul.mubr.msk.f32.gmra.mrb[36].mxu0 %vm532_vm3, %v7014_v55 }
 0x13c   : > { %1655 = vmatprep.mubr.f32.mxu0 %v9436_v35 }
 0x13f   : > { %4825 = vmatmul.mubr.msk.f32.gmra.mrb[38].mxu0 %vm532_vm3, %v7046_v2 }
 0x140   : > { %1661 = vmatprep.mubr.f32.mxu0 %v9436_v35 }
 0x143   : > { %4826 = vmatmul.mubr.msk.f32.gmra.mrb[40].mxu0 %vm532_vm3, %v7072_v10 }
 0x144   : > { %1667 = vmatprep.mubr.f32.mxu0 %v9436_v35 }
 0x147   : > { %4827 = vmatmul.mubr.msk.f32.gmra.mrb[42].mxu0 %vm532_vm3, %v7076_v11 }
 0x148   : > { %1673 = vmatprep.mubr.f32.mxu0 %v9436_v35 }
 0x14b   : > { %4828 = vmatmul.mubr.msk.f32.gmra.mrb[44].mxu0 %vm532_vm3, %v7089_v13 }
 0x14c   : > { %1679 = vmatprep.mubr.f32.mxu0 %v9436_v35 }
 0x14f   : > { %4829 = vmatmul.mubr.msk.f32.gmra.mrb[46].mxu0 %vm532_vm3, %v7446_v61 }
 0x150   : > { %2054 = vmatprep.mubr.f32.mxu0 %v9436_v35 }
 0x153   : > { %4875 = vmatmul.mubr.msk.f32.vlgmr.msra.gmra.mrb[0].mxu0 %vm532_vm3, %v7095_v14 }
 0x154   : > { %5948 = vmatpush1.bf16.msra.mxu0 %v5947_v41  ;;  %2060 = vmatprep.mubr.f32.mxu0 %v9436_v35 }
 0x155   : > { %5951 = vmatprep.subr.msk.bf16.mxu0 %vm6963_vm2, %v5949_v42  ;;  %v5005_v42 = vld [vmem:[%s9428_s3 + $0x1e0] sm:$0xff] }
 0x157   : > { %4876 = vmatmul.mubr.msk.f32.gmra.mrb[2].mxu0 %vm532_vm3, %v7102_v15 }
 0x158   : > { %2066 = vmatprep.mubr.f32.mxu0 %v9436_v35  ;;  %5954 = vmatpush1.bf16.msk.msra.mxu0 %vm6963_vm2, %v5952_v45  ;;  %v5012_v45 = vld [vmem:[%s9428_s3 + $0x218] sm:$0xff] }
 0x15b   : > { %4877 = vmatmul.mubr.msk.f32.gmra.mrb[4].mxu0 %vm532_vm3, %v7106_v16 }
 0x15c   : > { %2072 = vmatprep.mubr.f32.mxu0 %v9436_v35 }
 0x15f   : > { %4878 = vmatmul.mubr.msk.f32.gmra.mrb[6].mxu0 %vm532_vm3, %v7116_v17 }
 0x160   : > { %2078 = vmatprep.mubr.f32.mxu0 %v9436_v35 }
 0x163   : > { %4879 = vmatmul.mubr.msk.f32.gmra.mrb[8].mxu0 %vm532_vm3, %v7119_v18 }
 0x164   : > { %2084 = vmatprep.mubr.f32.mxu0 %v9436_v35 }
 0x167   : > { %4880 = vmatmul.mubr.msk.f32.gmra.mrb[10].mxu0 %vm532_vm3, %v7129_v19 }
 0x168   : > { %2090 = vmatprep.mubr.f32.mxu0 %v9436_v35 }
 0x16b   : > { %4881 = vmatmul.mubr.msk.f32.gmra.mrb[12].mxu0 %vm532_vm3, %v7014_v55 }
 0x16c   : > { %2096 = vmatprep.mubr.f32.mxu0 %v9436_v35 }
 0x16f   : > { %4882 = vmatmul.mubr.msk.f32.gmra.mrb[14].mxu0 %vm532_vm3, %v7046_v2 }
 0x170   : > { %2102 = vmatprep.mubr.f32.mxu0 %v9436_v35 }
 0x173   : > { %4883 = vmatmul.mubr.msk.f32.gmra.mrb[16].mxu0 %vm532_vm3, %v7072_v10 }
 0x174   : > { %2108 = vmatprep.mubr.f32.mxu0 %v9436_v35 }
 0x177   : > { %4884 = vmatmul.mubr.msk.f32.gmra.mrb[18].mxu0 %vm532_vm3, %v7076_v11 }
 0x178   : > { %2114 = vmatprep.mubr.f32.mxu0 %v9436_v35 }
 0x17b   : > { %4885 = vmatmul.mubr.msk.f32.gmra.mrb[20].mxu0 %vm532_vm3, %v7089_v13 }
 0x17c   : > { %2120 = vmatprep.mubr.f32.mxu0 %v9436_v35 }
 0x17f   : > { %4886 = vmatmul.mubr.msk.f32.gmra.mrb[22].mxu0 %vm532_vm3, %v7446_v61 }
 0x180   : > { %2126 = vmatprep.mubr.f32.mxu0 %v9436_v35 }
 0x183   : > { %4887 = vmatmul.mubr.msk.f32.gmra.mrb[24].mxu0 %vm532_vm3, %v7171_v26 }
 0x184   : > { %2132 = vmatprep.mubr.f32.mxu0 %v9436_v35 }
 0x187   : > { %4888 = vmatmul.mubr.msk.f32.gmra.mrb[26].mxu0 %vm532_vm3, %v7181_v27 }
 0x188   : > { %2138 = vmatprep.mubr.f32.mxu0 %v9436_v35 }
 0x18b   : > { %4889 = vmatmul.mubr.msk.f32.gmra.mrb[28].mxu0 %vm532_vm3, %v7184_v28 }
 0x18c   : > { %2144 = vmatprep.mubr.f32.mxu0 %v9436_v35 }
 0x18f   : > { %4890 = vmatmul.mubr.msk.f32.gmra.mrb[30].mxu0 %vm532_vm3, %v7194_v29 }
 0x190   : > { %2150 = vmatprep.mubr.f32.mxu0 %v9436_v35 }
 0x193   : > { %4891 = vmatmul.mubr.msk.f32.gmra.mrb[32].mxu0 %vm532_vm3, %v7197_v30 }
 0x194   : > { %2156 = vmatprep.mubr.f32.mxu0 %v9436_v35 }
 0x197   : > { %4892 = vmatmul.mubr.msk.f32.gmra.mrb[34].mxu0 %vm532_vm3, %v7207_v31 }
 0x198   : > { %2162 = vmatprep.mubr.f32.mxu0 %v9436_v35 }
 0x19b   : > { %4893 = vmatmul.mubr.msk.f32.gmra.mrb[36].mxu0 %vm532_vm3, %v7142_v21 }
 0x19c   : > { %2168 = vmatprep.mubr.f32.mxu0 %v9436_v35 }
 0x19f   : > { %4894 = vmatmul.mubr.msk.f32.gmra.mrb[38].mxu0 %vm532_vm3, %v7145_v22 }
 0x1a0   : > { %2174 = vmatprep.mubr.f32.mxu0 %v9436_v35 }
 0x1a3   : > { %4895 = vmatmul.mubr.msk.f32.gmra.mrb[40].mxu0 %vm532_vm3, %v7155_v23 }
 0x1a4   : > { %2180 = vmatprep.mubr.f32.mxu0 %v9436_v35 }
 0x1a7   : > { %4896 = vmatmul.mubr.msk.f32.gmra.mrb[42].mxu0 %vm532_vm3, %v7158_v24 }
 0x1a8   : > { %2186 = vmatprep.mubr.f32.mxu0 %v9436_v35 }
 0x1ab   : > { %4897 = vmatmul.mubr.msk.f32.gmra.mrb[44].mxu0 %vm532_vm3, %v7168_v25 }
 0x1ac   : > { %2192 = vmatprep.mubr.f32.mxu0 %v9436_v35 }
 0x1af   : > { %4898 = vmatmul.mubr.msk.f32.gmra.mrb[46].mxu0 %vm532_vm3, %v7561_v9 }
 0x1b0   : > { %2567 = vmatprep.mubr.f32.mxu0 %v9436_v35 }
 0x1b3   : > { %4944 = vmatmul.mubr.msk.f32.vlgmr.msra.gmra.mrb[0].mxu0 %vm532_vm3, %v7171_v26 }
 0x1b4   : > { %2573 = vmatprep.mubr.f32.mxu0 %v9436_v35 }
 0x1b7   : > { %4945 = vmatmul.mubr.msk.f32.gmra.mrb[2].mxu0 %vm532_vm3, %v7181_v27 }
 0x1b8   : > { %2579 = vmatprep.mubr.f32.mxu0 %v9436_v35 }
 0x1bb   : > { %4946 = vmatmul.mubr.msk.f32.gmra.mrb[4].mxu0 %vm532_vm3, %v7184_v28 }
 0x1bc   : > { %2585 = vmatprep.mubr.f32.mxu0 %v9436_v35 }
 0x1bf   : > { %4947 = vmatmul.mubr.msk.f32.gmra.mrb[6].mxu0 %vm532_vm3, %v7194_v29 }
 0x1c0   : > { %2591 = vmatprep.mubr.f32.mxu0 %v9436_v35 }
 0x1c3   : > { %4948 = vmatmul.mubr.msk.f32.gmra.mrb[8].mxu0 %vm532_vm3, %v7197_v30 }
 0x1c4   : > { %2597 = vmatprep.mubr.f32.mxu0 %v9436_v35 }
 0x1c7   : > { %4949 = vmatmul.mubr.msk.f32.gmra.mrb[10].mxu0 %vm532_vm3, %v7207_v31 }
 0x1c8   : > { %2603 = vmatprep.mubr.f32.mxu0 %v9436_v35 }
 0x1cb   : > { %4950 = vmatmul.mubr.msk.f32.gmra.mrb[12].mxu0 %vm532_vm3, %v7142_v21 }
 0x1cc   : > { %2609 = vmatprep.mubr.f32.mxu0 %v9436_v35  ;;  %v7813_v38 = vpop.f32.mrb[0].mxu1 }
 0x1cd   : > { %v7815_v14 = vpop.f32.mrb[1].mxu1 }
 0x1cf   : > { %4951 = vmatmul.mubr.msk.f32.gmra.mrb[14].mxu0 %vm532_vm3, %v7145_v22 }
 0x1d0   : > { %2615 = vmatprep.mubr.f32.mxu0 %v9436_v35  ;;  %v7820_v26 = vpop.f32.mrb[2].mxu1 }
 0x1d1   : > { %v7822_v27 = vpop.f32.mrb[3].mxu1 }
 0x1d3   : > { %4952 = vmatmul.mubr.msk.f32.gmra.mrb[16].mxu0 %vm532_vm3, %v7155_v23 }
 0x1d4   : > { %2621 = vmatprep.mubr.f32.mxu0 %v9436_v35  ;;  %v7827_v21 = vpop.f32.mrb[4].mxu1 }
 0x1d5   : > { %v7829_v28 = vpop.f32.mrb[5].mxu1 }
 0x1d7   : > { %4953 = vmatmul.mubr.msk.f32.gmra.mrb[18].mxu0 %vm532_vm3, %v7158_v24 }
 0x1d8   : > { %2627 = vmatprep.mubr.f32.mxu0 %v9436_v35  ;;  %v5689_v22 = vpop.f32.mrb[6].mxu1 }
 0x1d9   : > { %v7834_v29 = vpop.f32.mrb[7].mxu1 }
 0x1db   : > { %4954 = vmatmul.mubr.msk.f32.gmra.mrb[20].mxu0 %vm532_vm3, %v7168_v25 }
 0x1dc   : > { %2633 = vmatprep.mubr.f32.mxu0 %v9436_v35  ;;  %v7839_v23 = vpop.f32.mrb[8].mxu1 }
 0x1dd   : > { %v7841_v30 = vpop.f32.mrb[9].mxu1 }
 0x1df   : > { %4955 = vmatmul.mubr.msk.f32.gmra.mrb[22].mxu0 %vm532_vm3, %v7561_v9  ;;  %v5004_v9 = vld [vmem:[%s9428_s3 + $0x1d8] sm:$0xff] }
 0x1e0   : > { %2639 = vmatprep.mubr.f32.mxu0 %v9436_v35  ;;  %v7846_v24 = vpop.f32.mrb[10].mxu1  ;;  %v5973_v32 = vpack.c.bf16 %v5004_v9, %v5002_v8  ;;  %v5018_v8 = vld [vmem:[%s9428_s3 + $0x248] sm:$0xff]  ;;  %v5020_v9 = vld [vmem:[%s9428_s3 + $0x258] sm:$0xff] }
 0x1e1   : > { %v7848_v31 = vpop.f32.mrb[11].mxu1  ;;  %v5989_v34 = vpack.c.bf16 %v5020_v9, %v5018_v8  ;;  %v5030_v8 = vld [vmem:[%s9428_s3 + $0x2a8] sm:$0xff]  ;;  %v5032_v9 = vld [vmem:[%s9428_s3 + $0x2b8] sm:$0xff] }
 0x1e3   : > { %4956 = vmatmul.mubr.msk.f32.gmra.mrb[24].mxu0 %vm532_vm3, %v7014_v55 }
 0x1e4   : > { %2645 = vmatprep.mubr.f32.mxu0 %v9436_v35  ;;  %v7853_v25 = vpop.f32.mrb[12].mxu1 }
 0x1e5   : > { %v7857_v48 = vpop.f32.mrb[13].mxu1 }
 0x1e7   : > { %4957 = vmatmul.mubr.msk.f32.gmra.mrb[26].mxu0 %vm532_vm3, %v7046_v2 }
 0x1e8   : > { %2651 = vmatprep.mubr.f32.mxu0 %v9436_v35  ;;  %v7864_v50 = vpop.f32.mrb[14].mxu1 }
 0x1e9   : > { %v7868_v51 = vpop.f32.mrb[15].mxu1 }
 0x1eb   : > { %4958 = vmatmul.mubr.msk.f32.gmra.mrb[28].mxu0 %vm532_vm3, %v7072_v10 }
 0x1ec   : > { %2657 = vmatprep.mubr.f32.mxu0 %v9436_v35  ;;  %v7875_v53 = vpop.f32.mrb[16].mxu1 }
 0x1ed   : > { %v7879_v54 = vpop.f32.mrb[17].mxu1 }
 0x1ef   : > { %4959 = vmatmul.mubr.msk.f32.gmra.mrb[30].mxu0 %vm532_vm3, %v7076_v11 }
 0x1f0   : > { %2663 = vmatprep.mubr.f32.mxu0 %v9436_v35  ;;  %v5707_v57 = vpop.f32.mrb[18].mxu1 }
 0x1f1   : > { %v2992_v58 = vmax.f32 %v5689_v22, %v5707_v57  ;;  %v7886_v10 = vpop.f32.mrb[19].mxu1  ;;  %v5979_v57 = vpack.c.bf16 %v5007_v43, %v5005_v42 }
 0x1f2   : > { %v2989_v59 = vmax.f32 %v7834_v29, %v7886_v10 }
 0x1f3   : > { %4960 = vmatmul.mubr.msk.f32.gmra.mrb[32].mxu0 %vm532_vm3, %v7089_v13  ;;  %3059 = vrot.lane.b32.xlu1 %v2992_v58, %s6771_s25 }
 0x1f4   : > { %2669 = vmatprep.mubr.f32.mxu0 %v9436_v35  ;;  %v7894_v60 = vpop.f32.mrb[20].mxu1 }
 0x1f5   : > { %v7898_v62 = vpop.f32.mrb[21].mxu1 }
 0x1f7   : > { %4961 = vmatmul.mubr.msk.f32.gmra.mrb[34].mxu0 %vm532_vm3, %v7446_v61  ;;  %v4998_v61 = vld [vmem:[%s9428_s3 + $0x1a8] sm:$0xff] }
 0x1f8   : > { %2675 = vmatprep.mubr.f32.mxu0 %v9436_v35  ;;  %v7905_v13 = vpop.f32.mrb[22].mxu1  ;;  %v5969_v5 = vpack.c.bf16 %v5000_v3, %v4998_v61 }
 0x1f9   : > { %v7909_v0 = vpop.f32.mrb[23].mxu1 }
 0x1fb   : > { %4962 = vmatmul.mubr.msk.f32.gmra.mrb[36].mxu0 %vm532_vm3, %v7102_v15  ;;  %v4994_v15 = vld [vmem:[%s9428_s3 + $0x188] sm:$0xff] }
 0x1fc   : > { %2681 = vmatprep.mubr.f32.mxu0 %v9436_v35 }
 0x1ff   : > { %4963 = vmatmul.mubr.msk.f32.gmra.mrb[38].mxu0 %vm532_vm3, %v7106_v16  ;;  %v4996_v16 = vld [vmem:[%s9428_s3 + $0x198] sm:$0xff] }
 0x200   : > { %2687 = vmatprep.mubr.f32.mxu0 %v9436_v35 }
 0x203   : > { %4964 = vmatmul.mubr.msk.f32.gmra.mrb[40].mxu0 %vm532_vm3, %v7116_v17  ;;  %v4993_v17 = vld [vmem:[%s9428_s3 + $0x180] sm:$0xff] }
 0x204   : > { %2693 = vmatprep.mubr.f32.mxu0 %v9436_v35 }
 0x207   : > { %4965 = vmatmul.mubr.msk.f32.gmra.mrb[42].mxu0 %vm532_vm3, %v7119_v18  ;;  %v5965_v18 = vpack.c.bf16 %v4996_v16, %v4994_v15  ;;  %v5981_v15 = vpack.c.bf16 %v5012_v45, %v5010_v44  ;;  %v5009_v16 = vld [vmem:[%s9428_s3 + $0x200] sm:$0xff] }
 0x208   : > { %2699 = vmatprep.mubr.f32.mxu0 %v9436_v35 }
 0x209   : > { %5966 = vmatprep.subr.bf16.mxu1 %v5965_v18  ;;  %v5014_v18 = vld [vmem:[%s9428_s3 + $0x228] sm:$0xff] }
 0x20b   : > { %4966 = vmatmul.mubr.msk.f32.gmra.mrb[44].mxu0 %vm532_vm3, %v7129_v19  ;;  %v4995_v19 = vld [vmem:[%s9428_s3 + $0x190] sm:$0xff] }
 0x20c   : > { %2705 = vmatprep.mubr.f32.mxu0 %v9436_v35  ;;  %v5967_v4 = vpack.c.bf16 %v4995_v19, %v4993_v17  ;;  %v5011_v17 = vld [vmem:[%s9428_s3 + $0x210] sm:$0xff]  ;;  %v5016_v19 = vld [vmem:[%s9428_s3 + $0x238] sm:$0xff] }
 0x20d   : > { %v5983_v3 = vpack.c.bf16 %v5011_v17, %v5009_v16  ;;  %v5026_v16 = vld [vmem:[%s9428_s3 + $0x288] sm:$0xff]  ;;  %v5028_v17 = vld [vmem:[%s9428_s3 + $0x298] sm:$0xff] }
 0x20e   : > { %5968 = vmatpush1.bf16.msra.mxu1 %v5967_v4 }
 0x20f   : > { %4967 = vmatmul.mubr.msk.f32.gmra.mrb[46].mxu0 %vm532_vm3, %v7658_v20  ;;  %5970 = vmatprep.subr.bf16.mxu1 %v5969_v5  ;;  %v5006_v20 = vld [vmem:[%s9428_s3 + $0x1e8] sm:$0xff]  ;;  %v5985_v5 = vpack.c.bf16 %v5016_v19, %v5014_v18 }
 0x210   : > { %v5977_v41 = vpack.c.bf16 %v5008_v36, %v5006_v20  ;;  %v5017_v20 = vld [vmem:[%s9428_s3 + $0x240] sm:$0xff]  ;;  %v5019_v36 = vld [vmem:[%s9428_s3 + $0x250] sm:$0xff] }
 0x211   : > { %v5991_v43 = vpack.c.bf16 %v5019_v36, %v5017_v20  ;;  %v6001_v36 = vpack.c.bf16 %v5032_v9, %v5030_v8 }
 0x212   : > { %5972 = vmatpush1.bf16.msra.mxu1 %v5971_v12 }
 0x213   : > { %5974 = vmatprep.subr.bf16.mxu1 %v5973_v32  ;;  %v5987_v32 = vpack.c.bf16 %v5015_v7, %v5013_v6  ;;  %v5025_v6 = vld [vmem:[%s9428_s3 + $0x280] sm:$0xff]  ;;  %v5027_v7 = vld [vmem:[%s9428_s3 + $0x290] sm:$0xff] }
 0x216   : > { %5976 = vmatpush1.bf16.msra.mxu1 %v5975_v39  ;;  %v5022_v39 = vld [vmem:[%s9428_s3 + $0x268] sm:$0xff] }
 0x217   : > { %5978 = vmatprep.subr.bf16.mxu1 %v5977_v41  ;;  %v5024_v41 = vld [vmem:[%s9428_s3 + $0x278] sm:$0xff] }
 0x218   : > { %v5993_v45 = vpack.c.bf16 %v5024_v41, %v5022_v39  ;;  %v5029_v39 = vld [vmem:[%s9428_s3 + $0x2a0] sm:$0xff]  ;;  %v5031_v41 = vld [vmem:[%s9428_s3 + $0x2b0] sm:$0xff] }
 0x21a   : > { %5980 = vmatpush1.bf16.msra.mxu1 %v5979_v57  ;;  %v5021_v57 = vld [vmem:[%s9428_s3 + $0x260] sm:$0xff] }
 0x21b   : > { %5982 = vmatprep.subr.bf16.mxu1 %v5981_v15  ;;  %v5023_v15 = vld [vmem:[%s9428_s3 + $0x270] sm:$0xff] }
 0x21c   : > { %v5995_v19 = vpack.c.bf16 %v5023_v15, %v5021_v57 }
 0x21e   : > { %5984 = vmatpush1.bf16.msra.mxu1 %v5983_v3 }
 0x21f   : > { %5986 = vmatprep.subr.bf16.mxu1 %v5985_v5  ;;  %v5997_v5 = vpack.c.bf16 %v5028_v17, %v5026_v16 }
 0x222   : > { %5988 = vmatpush1.bf16.msra.mxu1 %v5987_v32 }
 0x223   : > { %5990 = vmatprep.subr.bf16.mxu1 %v5989_v34  ;;  %v5999_v34 = vpack.c.bf16 %v5027_v7, %v5025_v6 }
 0x226   : > { %5992 = vmatpush1.bf16.msra.mxu1 %v5991_v43 }
 0x227   : > { %5994 = vmatprep.subr.bf16.mxu1 %v5993_v45  ;;  %v6003_v45 = vpack.c.bf16 %v5031_v41, %v5029_v39 }
 0x22a   : > { %5996 = vmatpush1.bf16.msra.mxu1 %v5995_v19 }
 0x22b   : > { %5998 = vmatprep.subr.bf16.mxu1 %v5997_v5 }
 0x22e   : > { %6000 = vmatpush1.bf16.msra.mxu1 %v5999_v34 }
 0x22f   : > { %6002 = vmatprep.subr.bf16.mxu1 %v6001_v36 }
 0x232   : > { %6004 = vmatpush1.bf16.msra.mxu1 %v6003_v45 }
 0x286   : > { %v7972_v37 = vpop.f32.mrb[0].mxu0 }
 0x287   : > { %v7974_v40 = vpop.f32.mrb[1].mxu0 }
 0x28a   : > { %v7988_v22 = vpop.f32.mrb[2].mxu0 }
 0x28b   : > { %v7990_v58 = vpop.f32.mrb[3].mxu0 }
 0x28e   : > { %v8004_v61 = vpop.f32.mrb[4].mxu0 }
 0x28f   : > { %v8006_v4 = vpop.f32.mrb[5].mxu0 }
 0x292   : > { %v8020_v12 = vpop.f32.mrb[6].mxu0 }
 0x293   : > { %v8022_v33 = vpop.f32.mrb[7].mxu0 }
 0x296   : > { %v8036_v42 = vpop.f32.mrb[8].mxu0 }
 0x297   : > { %v8038_v44 = vpop.f32.mrb[9].mxu0 }
 0x29a   : > { %v8052_v18 = vpop.f32.mrb[10].mxu0 }
 0x29b   : > { %v8054_v3 = vpop.f32.mrb[11].mxu0 }
 0x29e   : > { %v8068_v32 = vpop.f32.mrb[12].mxu0 }
 0x29f   : > { %v8070_v20 = vpop.f32.mrb[13].mxu0 }
 0x2a2   : > { %v8078_v43 = vpop.f32.mrb[14].mxu0 }
 0x2a3   : > { %v8080_v57 = vpop.f32.mrb[15].mxu0 }
 0x2a6   : > { %v8082_v15 = vpop.f32.mrb[16].mxu0 }
 0x2a7   : > { %v8084_v16 = vpop.f32.mrb[17].mxu0 }
 0x2aa   : > { %v8086_v17 = vpop.f32.mrb[18].mxu0 }
 0x2ab   : > { %v8088_v19 = vpop.f32.mrb[19].mxu0 }
 0x2ae   : > { %v8090_v5 = vpop.f32.mrb[20].mxu0 }
 0x2af   : > { %v8092_v6 = vpop.f32.mrb[21].mxu0 }
 0x2b2   : > { %v8094_v7 = vpop.f32.mrb[22].mxu0 }
 0x2b3   : > { %v8096_v8 = vpop.f32.mrb[23].mxu0 }
 0x2b6   : > { %v8098_v9 = vpop.f32.mrb[24].mxu0 }
 0x2b7   : > { %v2643_v36 = vpop.f32.mrb[25].mxu0 }
 0x2b8   : > { %v8103_v39 = vmax.f32 %v7974_v40, %v2643_v36  ;;  %v5035_v36 = vld [vmem:[%s9428_s3 + $0x2d0] sm:$0xff] }
 0x2ba   : > { %v8105_v41 = vpop.f32.mrb[26].mxu0 }
 0x2bb   : > { %v2649_v35 = vpop.f32.mrb[27].mxu0 }
 0x2bc   : > { %v8110_v46 = vmax.f32 %v7990_v58, %v2649_v35  ;;  %v5034_v35 = vld [vmem:[%s9428_s3 + $0x2c8] sm:$0xff]  ;;  %v5036_v58 = vld [vmem:[%s9428_s3 + $0x2d8] sm:$0xff] }
 0x2be   : > { %v8112_v2 = vpop.f32.mrb[28].mxu0 }
 0x2bf   : > { %v2655_v49 = vpop.f32.mrb[29].mxu0 }
 0x2c0   : > { %v8117_v34 = vmax.f32 %v8006_v4, %v2655_v49  ;;  %v5033_v49 = vld [vmem:[%s9428_s3 + $0x2c0] sm:$0xff]  ;;  %v6005_v4 = vpack.c.bf16 %v5036_v58, %v5034_v35  ;;  %v5038_v35 = vld [vmem:[%s9428_s3 + $0x2e8] sm:$0xff]  ;;  %v5040_v58 = vld [vmem:[%s9428_s3 + $0x2f8] sm:$0xff] }
 0x2c1   : > { %v6009_v47 = vpack.c.bf16 %v5040_v58, %v5038_v35  ;;  %v3199_v35 = vld [vmem:[%s9428_s3 + $0x8] sm:$0xff]  ;;  %v3201_v58 = vld [vmem:[%s9428_s3 + $0x18] sm:$0xff] }
 0x2c2   : > { %v8119_v40 = vpop.f32.mrb[30].mxu0  ;;  %6006 = vmatprep.subr.bf16.mxu1 %v6005_v4  ;;  %v6013_v11 = vpack.c.bf16 %v3201_v58, %v3199_v35 }
 0x2c3   : > { %v2661_v56 = vpop.f32.mrb[31].mxu0 }
 0x2c4   : > { %v8124_v45 = vmax.f32 %v8022_v33, %v2661_v56  ;;  %v6007_v56 = vpack.c.bf16 %v5035_v36, %v5033_v49  ;;  %v5037_v36 = vld [vmem:[%s9428_s3 + $0x2e0] sm:$0xff]  ;;  %v5039_v49 = vld [vmem:[%s9428_s3 + $0x2f0] sm:$0xff] }
 0x2c6   : > { %v8138_v1 = vpop.f32.mrb[32].mxu0  ;;  %6008 = vmatpush1.bf16.msra.mxu1 %v6007_v56 }
 0x2c7   : > { %v2667_v55 = vpop.f32.mrb[33].mxu0  ;;  %6010 = vmatprep.subr.bf16.mxu1 %v6009_v47 }
 0x2c8   : > { %v8143_v52 = vmax.f32 %v8038_v44, %v2667_v55  ;;  %v6011_v44 = vpack.c.bf16 %v5039_v49, %v5037_v36 }
 0x2ca   : > { %v8157_v55 = vpop.f32.mrb[34].mxu0  ;;  %6012 = vmatpush1.bf16.msra.mxu1 %v6011_v44 }
 0x2cb   : > { %v2673_v56 = vpop.f32.mrb[35].mxu0  ;;  %6014 = vmatprep.subr.bf16.mxu1 %v6013_v11 }
 0x2cc   : > { %v8162_v33 = vmax.f32 %v8054_v3, %v2673_v56 }
 0x2ce   : > { %v8170_v63 = vpop.f32.mrb[36].mxu0 }
 0x2cf   : > { %v2987_v36 = vmax.f32 %v8068_v32, %v8170_v63  ;;  %v2679_v49 = vpop.f32.mrb[37].mxu0  ;;  %v3205_v63 = vld [vmem:[%s9428_s3 + $0x38] sm:$0xff] }
 0x2d0   : > { %v8175_v47 = vmax.f32 %v8070_v20, %v2679_v49 }
 0x2d2   : > { %3053 = vrot.lane.b32.xlu0 %v8175_v47, %s6771_s25  ;;  %v2683_v3 = vpop.f32.mrb[38].mxu0 }
 0x2d3   : > { %v2990_v44 = vmax.f32 %v8078_v43, %v2683_v3  ;;  %v2685_v56 = vpop.f32.mrb[39].mxu0  ;;  %v9442_v43 = vmax.f32 %v7841_v30, %v7898_v62 }
 0x2d4   : > { %v2991_v4 = vmax.f32 %v8080_v57, %v2685_v56 }
 0x2d6   : > { %3055 = vrot.lane.b32.xlu0 %v2989_v59, %s6771_s25  ;;  %3057 = vrot.lane.b32.xlu1 %v2991_v4, %s6771_s25  ;;  %v8186_v11 = vpop.f32.mrb[40].mxu0 }
 0x2d7   : > { %v2993_v20 = vmax.f32 %v8082_v15, %v8186_v11  ;;  %v2691_v35 = vpop.f32.mrb[41].mxu0  ;;  %v3207_v15 = vld [vmem:[%s9428_s3 + $0x48] sm:$0xff]  ;;  %v3209_v11 = vld [vmem:[%s9428_s3 + $0x58] sm:$0xff] }
 0x2d8   : > { %v8191_v58 = vmax.f32 %v8084_v16, %v2691_v35  ;;  %v9443_v16 = vmax.f32 %v7839_v23, %v7894_v60 }
 0x2da   : > { %3063 = vrot.lane.b32.xlu1 %v9442_v43, %s6771_s25  ;;  %3061 = vrot.lane.b32.xlu0 %v8191_v58, %s6771_s25  ;;  %v8199_v29 = vpop.f32.mrb[42].mxu0 }
 0x2db   : > { %v2996_v10 = vmax.f32 %v8086_v17, %v8199_v29  ;;  %v2697_v59 = vpop.f32.mrb[43].mxu0  ;;  %v3213_v17 = vld [vmem:[%s9428_s3 + $0x78] sm:$0xff] }
 0x2dc   : > { %v8204_v57 = vmax.f32 %v8088_v19, %v2697_v59  ;;  %v9444_v19 = vmax.f32 %v7813_v38, %v7853_v25  ;;  %v9446_v38 = vmax.f32 %v7820_v26, %v7864_v50  ;;  %v9447_v25 = vmax.f32 %v7829_v28, %v7879_v54 }
 0x2dd   : > { %v9449_v26 = vmax.f32 %v7848_v31, %v7909_v0  ;;  %v9450_v28 = vmax.f32 %v7827_v21, %v7875_v53  ;;  %v3140_v31 = vlaneseq  ;;  %v3138_v21 = vld [vmem:[%s9427_s2] sm:$0x3] }
 0x2de   : > { %3067 = vrot.lane.b32.xlu1 %v9443_v16, %s6771_s25  ;;  %3065 = vrot.lane.b32.xlu0 %v8204_v57, %s6771_s25  ;;  %v8212_v30 = vpop.f32.mrb[44].mxu0 }
 0x2df   : > { %v2999_v62 = vmax.f32 %v8090_v5, %v8212_v30  ;;  %v2703_v49 = vpop.f32.mrb[45].mxu0  ;;  %v3237_v5 = vld [vmem:[%s9428_s3 + $0x138] sm:$0xff] }
 0x2e0   : > { %v8217_v3 = vmax.f32 %v8092_v6, %v2703_v49  ;;  %v9445_v6 = vmax.f32 %v7822_v27, %v7868_v51  ;;  %v9448_v27 = vmax.f32 %v7815_v14, %v7857_v48  ;;  %v9451_v14 = vmax.f32 %v7846_v24, %v7905_v13  ;;  %v3060_v51 = vpop.permute.xlu1 %3059 }
 0x2e1   : > { %v3141_v48 = vshrl.u32 %v3140_v31, 7  ;;  %v3129_v0 = vmax.f32 %v2991_v4, %v3060_v51  ;;  %v3198_v4 = vld [vmem:[%s9428_s3] sm:$0xff] }
 0x2e2   : > { %3035 = vrot.lane.b32.xlu1 %v9444_v19, %s6771_s25  ;;  %3033 = vrot.lane.b32.xlu0 %v8110_v46, %s6771_s25  ;;  %v8225_v23 = vpop.f32.mrb[46].mxu0 }
 0x2e3   : > { %v3002_v60 = vmax.f32 %v8094_v7, %v8225_v23  ;;  %v2709_v56 = vpop.f32.mrb[47].mxu0  ;;  %v3146_v50 = vsub.s32 1, %v3141_v48  ;;  %v3142_v54 = vsub.s32 0, %v3141_v48  ;;  %v3245_v7 = vld [vmem:[%s9428_s3 + $0x178] sm:$0xff] }
 0x2e4   : > { %v8230_v35 = vmax.f32 %v8096_v8, %v2709_v56 }
 0x2e5   : > { %v8277_v8 = vrot.slane %v3138_v21, %v3146_v50  ;;  %v8279_v43 = vrot.slane %v3138_v21, %v3142_v54  ;;  %v3202_v21 = vld [vmem:[%s9428_s3 + $0x20] sm:$0xff] }
 0x2e6   : > { %3039 = vrot.lane.b32.xlu1 %v9445_v6, %s6771_s25  ;;  %3037 = vrot.lane.b32.xlu0 %v8117_v34, %s6771_s25  ;;  %v3200_v6 = vld [vmem:[%s9428_s3 + $0x10] sm:$0xff] }
 0x2ea   : > { %3043 = vrot.lane.b32.xlu1 %v9446_v38, %s6771_s25  ;;  %3041 = vrot.lane.b32.xlu0 %v8124_v45, %s6771_s25  ;;  %v3165_v38 = vadd.f32 %v8277_v8, %v3129_v0 }
 0x2ee   : > { %3047 = vrot.lane.b32.xlu1 %v9447_v25, %s6771_s25  ;;  %3045 = vrot.lane.b32.xlu0 %v8143_v52, %s6771_s25 }
 0x2f2   : > { %3031 = vrot.lane.b32.xlu1 %v9448_v27, %s6771_s25  ;;  %3029 = vrot.lane.b32.xlu0 %v8103_v39, %s6771_s25 }
 0x2f6   : > { %3071 = vrot.lane.b32.xlu1 %v9449_v26, %s6771_s25  ;;  %3069 = vrot.lane.b32.xlu0 %v8217_v3, %s6771_s25 }
 0x2fa   : > { %3051 = vrot.lane.b32.xlu1 %v9450_v28, %s6771_s25  ;;  %3049 = vrot.lane.b32.xlu0 %v8162_v33, %s6771_s25 }
 0x2fe   : > { %3075 = vrot.lane.b32.xlu1 %v9451_v14, %s6771_s25  ;;  %3073 = vrot.lane.b32.xlu0 %v8230_v35, %s6771_s25  ;;  %v6015_v14 = vpack.c.bf16 %v3200_v6, %v3198_v4  ;;  %v3208_v4 = vld [vmem:[%s9428_s3 + $0x50] sm:$0xff] }
 0x344   : > { %v3054_v53 = vpop.permute.xlu0 %3053 }
 0x348   : > { %v3056_v24 = vpop.permute.xlu0 %3055  ;;  %v3058_v13 = vpop.permute.xlu1 %3057 }
 0x349   : > { %v3084_v59 = vsel %vm3077_vm4, %v3054_v53, %v3056_v24  ;;  %v3127_v16 = vmax.f32 %v8175_v47, %v3056_v24  ;;  %v3085_v49 = vsel %vm3077_vm4, %v3058_v13, %v3060_v51  ;;  %v3203_v47 = vld [vmem:[%s9428_s3 + $0x28] sm:$0xff]  ;;  %v8320_v53 = vmax.f32 %v3165_v38, 0.0 }
 0x34a   : > { %v3126_v19 = vmax.f32 %v2987_v36, %v3084_v59  ;;  %v3128_v56 = vmax.f32 %v2990_v44, %v3085_v49  ;;  %v6017_v51 = vpack.c.bf16 %v3205_v63, %v3203_v47  ;;  %v3211_v47 = vld [vmem:[%s9428_s3 + $0x68] sm:$0xff] }
 0x34b   : > { %v8295_v25 = vadd.f32 %v8277_v8, %v3127_v16 }
 0x34c   : > { %v8304_v32 = vadd.f32 %v8279_v43, %v3126_v19  ;;  %v3064_v36 = vpop.permute.xlu1 %3063  ;;  %v3062_v44 = vpop.permute.xlu0 %3061  ;;  %v3164_v48 = vadd.f32 %v8279_v43, %v3128_v56  ;;  %v6021_v56 = vpack.c.bf16 %v3209_v11, %v3207_v15 }
 0x34d   : > { %v3187_v27 = vmax.f32 %v8295_v25, 0.0  ;;  %v3131_v26 = vmax.f32 %v8191_v58, %v3064_v36  ;;  %v3086_v28 = vsel %vm3077_vm4, %v3062_v44, %v3064_v36  ;;  %v3204_v58 = vld [vmem:[%s9428_s3 + $0x30] sm:$0xff]  ;;  %v5084_v25 = vld [vmem:[%s9428_s3 + $0x3d8] sm:$0xff] }
 0x34e   : > { %v3186_v31 = vmax.f32 %v8304_v32, 0.0  ;;  %v3130_v50 = vmax.f32 %v2993_v20, %v3086_v28  ;;  %v6019_v59 = vpack.c.bf16 %v3204_v58, %v3202_v21  ;;  %v8338_v16 = vmax.f32 %v3164_v48, 0.0  ;;  %v5086_v32 = vld [vmem:[%s9428_s3 + $0x3e8] sm:$0xff] }
 0x34f   : > { %v3167_v54 = vadd.f32 %v8277_v8, %v3131_v26  ;;  %5041 = vmatprep.mubr.msk.f32.mxu1 %vm3077_vm4, %v3187_v27 }
 0x350   : > { %3384 = vmatmul.mubr.f32.vlgmr.msra.gmra.mrb[24].mxu1 %v3186_v31  ;;  %v3068_v20 = vpop.permute.xlu1 %3067  ;;  %v3066_v0 = vpop.permute.xlu0 %3065  ;;  %v3166_v49 = vadd.f32 %v8279_v43, %v3130_v50  ;;  %v6025_v50 = vpack.c.bf16 %v3213_v17, %v3211_v47 }
 0x351   : > { %6016 = vmatpush1.bf16.msra.mxu1 %v6015_v14  ;;  %v3133_v24 = vmax.f32 %v8204_v57, %v3068_v20  ;;  %v3087_v13 = vsel %vm3077_vm4, %v3066_v0, %v3068_v20  ;;  %5042 = vmatprep.mubr.msk.f32.mxu1 %vm3077_vm4, %v8320_v53  ;;  %v3206_v57 = vld [vmem:[%s9428_s3 + $0x40] sm:$0xff]  ;;  %v8350_v6 = vmax.f32 %v3167_v54, 0.0  ;;  %v9452_v14 = vmax.f32 %v7988_v22, %v8105_v41  ;;  %v3215_v54 = vld [vmem:[%s9428_s3 + $0x88] sm:$0xff]  ;;  %v3217_v22 = vld [vmem:[%s9428_s3 + $0x98] sm:$0xff] }
 0x352   : > { %v3132_v19 = vmax.f32 %v2996_v10, %v3087_v13  ;;  %6018 = vmatprep.subr.bf16.mxu1 %v6017_v51  ;;  %v6023_v44 = vpack.c.bf16 %v3208_v4, %v3206_v57  ;;  %v8364_v26 = vmax.f32 %v3166_v49, 0.0  ;;  %v3212_v51 = vld [vmem:[%s9428_s3 + $0x70] sm:$0xff]  ;;  %v9453_v13 = vmax.f32 %v8004_v61, %v8112_v2  ;;  %v3219_v2 = vld [vmem:[%s9428_s3 + $0xa8] sm:$0xff]  ;;  %v3221_v61 = vld [vmem:[%s9428_s3 + $0xb8] sm:$0xff] }
 0x353   : > { %v3169_v38 = vadd.f32 %v8277_v8, %v3133_v24  ;;  %v6029_v49 = vpack.c.bf16 %v3217_v22, %v3215_v54 }
 0x354   : > { %v3036_v29 = vpop.permute.xlu1 %3035  ;;  %3390 = vmatmul.mubr.f32.gmra.mrb[26].mxu1 %v8338_v16  ;;  %v3034_v10 = vpop.permute.xlu0 %3033  ;;  %v3168_v28 = vadd.f32 %v8279_v43, %v3132_v19  ;;  %v3214_v19 = vld [vmem:[%s9428_s3 + $0x80] sm:$0xff] }
 0x355   : > { %6020 = vmatpush1.bf16.msra.mxu1 %v6019_v59  ;;  %v3117_v63 = vmax.f32 %v8110_v46, %v3036_v29  ;;  %v3079_v36 = vsel %vm3077_vm4, %v3034_v10, %v3036_v29  ;;  %5043 = vmatprep.mubr.msk.f32.mxu1 %vm3077_vm4, %v8350_v6  ;;  %v3210_v46 = vld [vmem:[%s9428_s3 + $0x60] sm:$0xff]  ;;  %v8376_v21 = vmax.f32 %v3169_v38, 0.0 }
 0x356   : > { %v3116_v48 = vmax.f32 %v9452_v14, %v3079_v36  ;;  %6022 = vmatprep.subr.bf16.mxu1 %v6021_v56  ;;  %v6027_v0 = vpack.c.bf16 %v3212_v51, %v3210_v46  ;;  %v8390_v24 = vmax.f32 %v3168_v28, 0.0  ;;  %v9454_v36 = vmax.f32 %v8020_v12, %v8119_v40  ;;  %v3223_v12 = vld [vmem:[%s9428_s3 + $0xc8] sm:$0xff]  ;;  %v3225_v40 = vld [vmem:[%s9428_s3 + $0xd8] sm:$0xff] }
 0x357   : > { %v3153_v58 = vadd.f32 %v8277_v8, %v3117_v63  ;;  %v6033_v14 = vpack.c.bf16 %v3221_v61, %v3219_v2 }
 0x358   : > { %v3040_v41 = vpop.permute.xlu1 %3039  ;;  %3396 = vmatmul.mubr.f32.gmra.mrb[28].mxu1 %v8364_v26  ;;  %v3038_v15 = vpop.permute.xlu0 %3037  ;;  %v3152_v56 = vadd.f32 %v8279_v43, %v3116_v48  ;;  %v3220_v48 = vld [vmem:[%s9428_s3 + $0xb0] sm:$0xff] }
 0x359   : > { %6024 = vmatpush1.bf16.msra.mxu1 %v6023_v44  ;;  %v3119_v11 = vmax.f32 %v8117_v34, %v3040_v41  ;;  %v3080_v20 = vsel %vm3077_vm4, %v3038_v15, %v3040_v41  ;;  %5044 = vmatprep.mubr.msk.f32.mxu1 %vm3077_vm4, %v8376_v21  ;;  %v3216_v34 = vld [vmem:[%s9428_s3 + $0x90] sm:$0xff]  ;;  %v8402_v57 = vmax.f32 %v3153_v58, 0.0 }
 0x35a   : > { %v3118_v59 = vmax.f32 %v9453_v13, %v3080_v20  ;;  %6026 = vmatprep.subr.bf16.mxu1 %v6025_v50  ;;  %v6031_v10 = vpack.c.bf16 %v3216_v34, %v3214_v19  ;;  %v8420_v28 = vmax.f32 %v3152_v56, 0.0  ;;  %v9455_v20 = vmax.f32 %v8036_v42, %v8138_v1  ;;  %v3227_v34 = vld [vmem:[%s9428_s3 + $0xe8] sm:$0xff]  ;;  %v3229_v1 = vld [vmem:[%s9428_s3 + $0xf8] sm:$0xff] }
 0x35b   : > { %v3155_v4 = vadd.f32 %v8277_v8, %v3119_v11  ;;  %v6037_v13 = vpack.c.bf16 %v3225_v40, %v3223_v12 }
 0x35c   : > { %v3044_v38 = vpop.permute.xlu1 %3043  ;;  %v3042_v47 = vpop.permute.xlu0 %3041  ;;  %3402 = vmatmul.mubr.f32.gmra.mrb[30].mxu1 %v8390_v24  ;;  %v3154_v63 = vadd.f32 %v8279_v43, %v3118_v59  ;;  %v3224_v59 = vld [vmem:[%s9428_s3 + $0xd0] sm:$0xff] }
 0x35d   : > { %6028 = vmatpush1.bf16.msra.mxu1 %v6027_v0  ;;  %v3121_v17 = vmax.f32 %v8124_v45, %v3044_v38  ;;  %v3081_v29 = vsel %vm3077_vm4, %v3042_v47, %v3044_v38  ;;  %5045 = vmatprep.mubr.msk.f32.mxu1 %vm3077_vm4, %v8402_v57  ;;  %v3218_v45 = vld [vmem:[%s9428_s3 + $0xa0] sm:$0xff]  ;;  %v8428_v50 = vmax.f32 %v3155_v4, 0.0  ;;  %v6041_v47 = vpack.c.bf16 %v3229_v1, %v3227_v34  ;;  %v3239_v34 = vld [vmem:[%s9428_s3 + $0x148] sm:$0xff]  ;;  %v3241_v1 = vld [vmem:[%s9428_s3 + $0x158] sm:$0xff] }
 0x35e   : > { %v3120_v44 = vmax.f32 %v9454_v36, %v3081_v29  ;;  %6030 = vmatprep.subr.bf16.mxu1 %v6029_v49  ;;  %v6035_v41 = vpack.c.bf16 %v3220_v48, %v3218_v45  ;;  %v8442_v15 = vmax.f32 %v3154_v63, 0.0  ;;  %v3228_v29 = vld [vmem:[%s9428_s3 + $0xf0] sm:$0xff]  ;;  %v3231_v63 = vld [vmem:[%s9428_s3 + $0x108] sm:$0xff]  ;;  %v3233_v36 = vld [vmem:[%s9428_s3 + $0x118] sm:$0xff] }
 0x35f   : > { %v3157_v46 = vadd.f32 %v8277_v8, %v3121_v17  ;;  %v3226_v17 = vld [vmem:[%s9428_s3 + $0xe0] sm:$0xff]  ;;  %v6045_v40 = vpack.c.bf16 %v3233_v36, %v3231_v63  ;;  %v3243_v36 = vld [vmem:[%s9428_s3 + $0x168] sm:$0xff] }
 0x360   : > { %v3048_v51 = vpop.permute.xlu1 %3047  ;;  %v3046_v58 = vpop.permute.xlu0 %3045  ;;  %3408 = vmatmul.mubr.f32.gmra.mrb[32].mxu1 %v8420_v28  ;;  %v3156_v11 = vadd.f32 %v8279_v43, %v3120_v44  ;;  %v6043_v48 = vpack.c.bf16 %v3228_v29, %v3226_v17  ;;  %v6053_v17 = vpack.c.bf16 %v3241_v1, %v3239_v34  ;;  %v3238_v29 = vld [vmem:[%s9428_s3 + $0x140] sm:$0xff]  ;;  %v5067_v1 = vld [vmem:[%s9428_s3 + $0x350] sm:$0xff] }
 0x361   : > { %6032 = vmatpush1.bf16.msra.mxu1 %v6031_v10  ;;  %v3123_v54 = vmax.f32 %v8143_v52, %v3048_v51  ;;  %v3082_v22 = vsel %vm3077_vm4, %v3046_v58, %v3048_v51  ;;  %5046 = vmatprep.mubr.msk.f32.mxu1 %vm3077_vm4, %v8428_v50  ;;  %v3222_v52 = vld [vmem:[%s9428_s3 + $0xc0] sm:$0xff]  ;;  %v8454_v49 = vmax.f32 %v3157_v46, 0.0  ;;  %v3232_v58 = vld [vmem:[%s9428_s3 + $0x110] sm:$0xff] }
 0x362   : > { %v3122_v0 = vmax.f32 %v9455_v20, %v3082_v22  ;;  %6034 = vmatprep.subr.bf16.mxu1 %v6033_v14  ;;  %v6039_v2 = vpack.c.bf16 %v3224_v59, %v3222_v52  ;;  %v8467_v61 = vmax.f32 %v3156_v11, 0.0  ;;  %v3230_v51 = vld [vmem:[%s9428_s3 + $0x100] sm:$0xff]  ;;  %v3235_v22 = vld [vmem:[%s9428_s3 + $0x128] sm:$0xff] }
 0x363   : > { %v3159_v19 = vadd.f32 %v8277_v8, %v3123_v54  ;;  %v6047_v20 = vpack.c.bf16 %v3232_v58, %v3230_v51  ;;  %v6049_v52 = vpack.c.bf16 %v3237_v5, %v3235_v22  ;;  %v3234_v59 = vld [vmem:[%s9428_s3 + $0x120] sm:$0xff]  ;;  %v5062_v22 = vld [vmem:[%s9428_s3 + $0x328] sm:$0xff]  ;;  %v5064_v5 = vld [vmem:[%s9428_s3 + $0x338] sm:$0xff] }
 0x364   : > { %v3032_v42 = vpop.permute.xlu1 %3031  ;;  %v3030_v56 = vpop.permute.xlu0 %3029  ;;  %3414 = vmatmul.mubr.f32.gmra.mrb[34].mxu1 %v8442_v15  ;;  %v3158_v38 = vadd.f32 %v8279_v43, %v3122_v0  ;;  %v9456_v0 = vmax.f32 %v8052_v18, %v8157_v55  ;;  %v5057_v58 = vld [vmem:[%s9428_s3 + $0x300] sm:$0xff] }
 0x365   : > { %6036 = vmatpush1.bf16.msra.mxu1 %v6035_v41  ;;  %v3115_v4 = vmax.f32 %v8103_v39, %v3032_v42  ;;  %5047 = vmatprep.mubr.msk.f32.mxu1 %vm3077_vm4, %v8454_v49  ;;  %v8476_v10 = vmax.f32 %v3159_v19, 0.0  ;;  %v3236_v19 = vld [vmem:[%s9428_s3 + $0x130] sm:$0xff]  ;;  %v3078_v63 = vsel %vm3077_vm4, %v3030_v56, %v3032_v42  ;;  %v3242_v42 = vld [vmem:[%s9428_s3 + $0x160] sm:$0xff] }
 0x366   : > { %6038 = vmatprep.subr.bf16.mxu1 %v6037_v13  ;;  %v8492_v46 = vmax.f32 %v3158_v38, 0.0  ;;  %v6051_v38 = vpack.c.bf16 %v3236_v19, %v3234_v59  ;;  %v3244_v56 = vld [vmem:[%s9428_s3 + $0x170] sm:$0xff]  ;;  %v5065_v34 = vld [vmem:[%s9428_s3 + $0x340] sm:$0xff] }
 0x367   : > { %v3151_v39 = vadd.f32 %v8277_v8, %v3115_v4 }
 0x368   : > { %v8485_v44 = vpop.permute.xlu1 %3071  ;;  %3420 = vmatmul.mubr.f32.gmra.mrb[36].mxu1 %v8467_v61  ;;  %v3070_v14 = vpop.permute.xlu0 %3069 }
 0x369   : > { %6040 = vmatpush1.bf16.msra.mxu1 %v6039_v2  ;;  %v3088_v45 = vsel %vm3077_vm4, %v3070_v14, %v8485_v44  ;;  %5048 = vmatprep.mubr.msk.f32.mxu1 %vm3077_vm4, %v8476_v10  ;;  %v3175_v54 = vmax.f32 %v3151_v39, 0.0  ;;  %v3240_v39 = vld [vmem:[%s9428_s3 + $0x150] sm:$0xff]  ;;  %v9457_v14 = vmax.f32 %v7972_v37, %v8098_v9  ;;  %v6059_v37 = vpack.c.bf16 %v3244_v56, %v3242_v42 }
 0x36a   : > { %v3134_v12 = vmax.f32 %v2999_v62, %v3088_v45  ;;  %6042 = vmatprep.subr.bf16.mxu1 %v6041_v47 }
 0x36b   : > { %v3114_v45 = vmax.f32 %v9457_v14, %v3078_v63  ;;  %v5076_v63 = vld [vmem:[%s9428_s3 + $0x398] sm:$0xff]  ;;  %v5075_v14 = vld [vmem:[%s9428_s3 + $0x390] sm:$0xff] }
 0x36c   : > { %v8509_v30 = vpop.permute.xlu1 %3051  ;;  %3426 = vmatmul.mubr.f32.gmra.mrb[38].mxu1 %v8492_v46  ;;  %v3050_v62 = vpop.permute.xlu0 %3049  ;;  %v8513_v41 = vadd.f32 %v8279_v43, %v3134_v12  ;;  %v5058_v12 = vld [vmem:[%s9428_s3 + $0x308] sm:$0xff] }
 0x36d   : > { %6044 = vmatpush1.bf16.msra.mxu1 %v6043_v48  ;;  %v3083_v11 = vsel %vm3077_vm4, %v3050_v62, %v8509_v30  ;;  %5049 = vmatprep.mubr.msk.f32.mxu1 %vm3077_vm4, %v3175_v54  ;;  %v6057_v48 = vpack.c.bf16 %v3245_v7, %v3243_v36  ;;  %v3150_v9 = vadd.f32 %v8279_v43, %v3114_v45  ;;  %v5059_v54 = vld [vmem:[%s9428_s3 + $0x310] sm:$0xff]  ;;  %v5078_v45 = vld [vmem:[%s9428_s3 + $0x3a8] sm:$0xff] }
 0x36e   : > { %v3124_v13 = vmax.f32 %v9456_v0, %v3083_v11  ;;  %6046 = vmatprep.subr.bf16.mxu1 %v6045_v40  ;;  %v5060_v40 = vld [vmem:[%s9428_s3 + $0x318] sm:$0xff]  ;;  %v6065_v11 = vpack.c.bf16 %v5064_v5, %v5062_v22  ;;  %v5063_v0 = vld [vmem:[%s9428_s3 + $0x330] sm:$0xff]  ;;  %v5085_v5 = vld [vmem:[%s9428_s3 + $0x3e0] sm:$0xff] }
 0x36f   : > { %v6061_v51 = vpack.c.bf16 %v5060_v40, %v5058_v12  ;;  %v3174_v62 = vmax.f32 %v3150_v9, 0.0  ;;  %v5077_v12 = vld [vmem:[%s9428_s3 + $0x3a0] sm:$0xff]  ;;  %v5079_v40 = vld [vmem:[%s9428_s3 + $0x3b0] sm:$0xff] }
 0x370   : > { %v8533_v18 = vpop.permute.xlu1 %3075  ;;  %v3074_v55 = vpop.permute.xlu0 %3073  ;;  %v8536_v4 = vadd.f32 %v8279_v43, %v3124_v13  ;;  %v5066_v13 = vld [vmem:[%s9428_s3 + $0x348] sm:$0xff] }
 0x371   : > { %6048 = vmatpush1.bf16.msra.mxu1 %v6047_v20  ;;  %v3089_v2 = vsel %vm3077_vm4, %v3074_v55, %v8533_v18  ;;  %v5061_v20 = vld [vmem:[%s9428_s3 + $0x320] sm:$0xff]  ;;  %v5070_v55 = vld [vmem:[%s9428_s3 + $0x368] sm:$0xff] }
 0x372   : > { %v3136_v47 = vmax.f32 %v3002_v60, %v3089_v2  ;;  %6050 = vmatprep.subr.bf16.mxu1 %v6049_v52  ;;  %v6055_v60 = vpack.c.bf16 %v3240_v39, %v3238_v29  ;;  %v5068_v52 = vld [vmem:[%s9428_s3 + $0x358] sm:$0xff]  ;;  %v6067_v59 = vpack.c.bf16 %v5063_v0, %v5061_v20  ;;  %v5071_v29 = vld [vmem:[%s9428_s3 + $0x370] sm:$0xff]  ;;  %v5074_v39 = vld [vmem:[%s9428_s3 + $0x388] sm:$0xff] }
 0x373   : > { %v6069_v19 = vpack.c.bf16 %v5068_v52, %v5066_v13  ;;  %v5072_v2 = vld [vmem:[%s9428_s3 + $0x378] sm:$0xff]  ;;  %v6077_v7 = vpack.c.bf16 %v5076_v63, %v5074_v39  ;;  %v5089_v13 = vld [vmem:[%s9428_s3 + $0x400] sm:$0xff]  ;;  %v5091_v52 = vld [vmem:[%s9428_s3 + $0x410] sm:$0xff] }
 0x374   : > { %v8557_v23 = vadd.f32 %v8279_v43, %v3136_v47  ;;  %v6063_v43 = vpack.c.bf16 %v5059_v54, %v5057_v58  ;;  %v6073_v47 = vpack.c.bf16 %v5072_v2, %v5070_v55  ;;  %v5083_v58 = vld [vmem:[%s9428_s3 + $0x3d0] sm:$0xff]  ;;  %v5093_v55 = vld [vmem:[%s9428_s3 + $0x420] sm:$0xff]  ;;  %v5102_v63 = vld [vmem:[%s9428_s3 + $0x468] sm:$0xff] }
 0x375   : > { %6052 = vmatpush1.bf16.msra.mxu1 %v6051_v38  ;;  %v6071_v38 = vpack.c.bf16 %v5067_v1, %v5065_v34  ;;  %v6095_v34 = vpack.c.bf16 %v5091_v52, %v5089_v13  ;;  %v5095_v2 = vld [vmem:[%s9428_s3 + $0x430] sm:$0xff]  ;;  %v4122_v13 = vld [vmem:[%s9430_s5 + $0x20] sm:$0xff]  ;;  %v4123_v52 = vld [vmem:[%s9430_s5 + $0x28] sm:$0xff] }
 0x376   : > { %6054 = vmatprep.subr.bf16.mxu1 %v6053_v17  ;;  %v5069_v17 = vld [vmem:[%s9428_s3 + $0x360] sm:$0xff]  ;;  %v5099_v39 = vld [vmem:[%s9428_s3 + $0x450] sm:$0xff] }
 0x377   : > { %v6075_v36 = vpack.c.bf16 %v5071_v29, %v5069_v17  ;;  %v5097_v29 = vld [vmem:[%s9428_s3 + $0x440] sm:$0xff] }
 0x379   : > { %6056 = vmatpush1.bf16.msra.mxu1 %v6055_v60  ;;  %v5073_v60 = vld [vmem:[%s9428_s3 + $0x380] sm:$0xff] }
 0x37a   : > { %6058 = vmatprep.subr.bf16.mxu1 %v6057_v48  ;;  %v5080_v48 = vld [vmem:[%s9428_s3 + $0x3b8] sm:$0xff]  ;;  %v6079_v42 = vpack.c.bf16 %v5075_v14, %v5073_v60  ;;  %v5101_v14 = vld [vmem:[%s9428_s3 + $0x460] sm:$0xff] }
 0x37b   : > { %v6081_v56 = vpack.c.bf16 %v5080_v48, %v5078_v45  ;;  %v5103_v45 = vld [vmem:[%s9428_s3 + $0x470] sm:$0xff]  ;;  %v5114_v48 = vld [vmem:[%s9428_s3 + $0x488] sm:$0xff] }
 0x37d   : > { %6060 = vmatpush1.bf16.msra.mxu1 %v6059_v37  ;;  %v5082_v37 = vld [vmem:[%s9428_s3 + $0x3c8] sm:$0xff] }
 0x37e   : > { %6062 = vmatprep.subr.bf16.mxu1 %v6061_v51  ;;  %v6085_v9 = vpack.c.bf16 %v5084_v25, %v5082_v37  ;;  %v5081_v51 = vld [vmem:[%s9428_s3 + $0x3c0] sm:$0xff]  ;;  %v5115_v37 = vld [vmem:[%s9428_s3 + $0x490] sm:$0xff]  ;;  %v5118_v25 = vld [vmem:[%s9428_s3 + $0x4a8] sm:$0xff] }
 0x37f   : > { %v6087_v54 = vpack.c.bf16 %v5083_v58, %v5081_v51  ;;  %v4119_v51 = vld [vmem:[%s9430_s5 + $0x8] sm:$0xff]  ;;  %v4120_v58 = vld [vmem:[%s9430_s5 + $0x10] sm:$0xff] }
 0x380   : > { %3500 = vmatmul.mubr.f32.vlgmr.msra.gmra.mrb[24].mxu1 %v3174_v62  ;;  %v5090_v62 = vld [vmem:[%s9428_s3 + $0x408] sm:$0xff] }
 0x381   : > { %5050 = vmatprep.mubr.msk.f32.mxu1 %vm3077_vm4, %v8402_v57  ;;  %6064 = vmatpush1.bf16.msra.mxu1 %v6063_v43  ;;  %v5087_v43 = vld [vmem:[%s9428_s3 + $0x3f0] sm:$0xff] }
 0x382   : > { %6066 = vmatprep.subr.bf16.mxu1 %v6065_v11  ;;  %v5092_v11 = vld [vmem:[%s9428_s3 + $0x418] sm:$0xff]  ;;  %v6091_v20 = vpack.c.bf16 %v5087_v43, %v5085_v5  ;;  %v5117_v43 = vld [vmem:[%s9428_s3 + $0x4a0] sm:$0xff] }
 0x383   : > { %v6093_v0 = vpack.c.bf16 %v5092_v11, %v5090_v62  ;;  %v5119_v62 = vld [vmem:[%s9428_s3 + $0x4b0] sm:$0xff]  ;;  %v5122_v11 = vld [vmem:[%s9428_s3 + $0x4c8] sm:$0xff] }
 0x384   : > { %3506 = vmatmul.mubr.f32.gmra.mrb[26].mxu1 %v8420_v28 }
 0x385   : > { %5051 = vmatprep.mubr.msk.f32.mxu1 %vm3077_vm4, %v8428_v50  ;;  %6068 = vmatpush1.bf16.msra.mxu1 %v6067_v59  ;;  %v5094_v59 = vld [vmem:[%s9428_s3 + $0x428] sm:$0xff] }
 0x386   : > { %6070 = vmatprep.subr.bf16.mxu1 %v6069_v19  ;;  %v5096_v19 = vld [vmem:[%s9428_s3 + $0x438] sm:$0xff] }
 0x387   : > { %v6097_v1 = vpack.c.bf16 %v5096_v19, %v5094_v59  ;;  %v6115_v59 = vpack.c.bf16 %v5119_v62, %v5117_v43 }
 0x388   : > { %3512 = vmatmul.mubr.f32.gmra.mrb[28].mxu1 %v8442_v15 }
 0x389   : > { %5052 = vmatprep.mubr.msk.f32.mxu1 %vm3077_vm4, %v8454_v49  ;;  %6072 = vmatpush1.bf16.msra.mxu1 %v6071_v38  ;;  %v5098_v38 = vld [vmem:[%s9428_s3 + $0x448] sm:$0xff] }
 0x38a   : > { %6074 = vmatprep.subr.bf16.mxu1 %v6073_v47  ;;  %v5100_v47 = vld [vmem:[%s9428_s3 + $0x458] sm:$0xff] }
 0x38b   : > { %v6101_v17 = vpack.c.bf16 %v5100_v47, %v5098_v38  ;;  %v4124_v38 = vld [vmem:[%s9430_s5 + $0x30] sm:$0xff]  ;;  %v4125_v47 = vld [vmem:[%s9430_s5 + $0x38] sm:$0xff] }
 0x38c   : > { %3518 = vmatmul.mubr.f32.gmra.mrb[30].mxu1 %v8467_v61 }
 0x38d   : > { %5053 = vmatprep.mubr.msk.f32.mxu1 %vm3077_vm4, %v3187_v27  ;;  %6076 = vmatpush1.bf16.msra.mxu1 %v6075_v36  ;;  %v6083_v27 = vpack.c.bf16 %v5079_v40, %v5077_v12  ;;  %v5104_v36 = vld [vmem:[%s9428_s3 + $0x478] sm:$0xff]  ;;  %v5113_v40 = vld [vmem:[%s9428_s3 + $0x480] sm:$0xff] }
 0x38e   : > { %6078 = vmatprep.subr.bf16.mxu1 %v6077_v7  ;;  %v6103_v7 = vpack.c.bf16 %v5099_v39, %v5097_v29  ;;  %v6105_v60 = vpack.c.bf16 %v5104_v36, %v5102_v63  ;;  %v5125_v29 = vld [vmem:[%s9428_s3 + $0x4e0] sm:$0xff]  ;;  %v5127_v39 = vld [vmem:[%s9428_s3 + $0x4f0] sm:$0xff]  ;;  %v5130_v63 = vld [vmem:[%s9428_s3 + $0x508] sm:$0xff] }
 0x38f   : > { %v5132_v36 = vld [vmem:[%s9428_s3 + $0x518] sm:$0xff] }
 0x390   : > { %3524 = vmatmul.mubr.f32.gmra.mrb[32].mxu1 %v3186_v31  ;;  %v5088_v31 = vld [vmem:[%s9428_s3 + $0x3f8] sm:$0xff] }
 0x391   : > { %5054 = vmatprep.mubr.msk.f32.mxu1 %vm3077_vm4, %v8320_v53  ;;  %6080 = vmatpush1.bf16.msra.mxu1 %v6079_v42  ;;  %v6089_v22 = vpack.c.bf16 %v5088_v31, %v5086_v32  ;;  %v5116_v42 = vld [vmem:[%s9428_s3 + $0x498] sm:$0xff]  ;;  %v6111_v32 = vpack.c.bf16 %v5115_v37, %v5113_v40  ;;  %v6772_v31 = vmov 0.0|0.0  }
 0x392   : > { %6082 = vmatprep.subr.bf16.mxu1 %v6081_v56  ;;  %v6107_v56 = vpack.c.bf16 %v5103_v45, %v5101_v14  ;;  %v6109_v12 = vpack.c.bf16 %v5116_v42, %v5114_v48  ;;  %6229 = vmatprep.subr.bf16.mxu0 %v6772_v31  ;;  %v4127_v14 = vld [vmem:[%s9430_s5 + $0x48] sm:$0xff]  ;;  %v6123_v45 = vpack.c.bf16 %v5127_v39, %v5125_v29  ;;  %v5129_v42 = vld [vmem:[%s9428_s3 + $0x500] sm:$0xff]  ;;  %v5136_v40 = vld [vmem:[%s9428_s3 + $0x538] sm:$0xff] }
 0x393   : > { %v6125_v48 = vpack.c.bf16 %v5132_v36, %v5130_v63  ;;  %v5150_v29 = vld [vmem:[%s9428_s3 + $0x5a8] sm:$0xff]  ;;  %v5152_v39 = vld [vmem:[%s9428_s3 + $0x5b8] sm:$0xff]  ;;  %v5149_v36 = vld [vmem:[%s9428_s3 + $0x5a0] sm:$0xff] }
 0x394   : > { %3530 = vmatmul.mubr.f32.gmra.mrb[34].mxu1 %v8338_v16  ;;  %v6145_v63 = vpack.c.bf16 %v5152_v39, %v5150_v29 }
 0x395   : > { %5055 = vmatprep.mubr.msk.f32.mxu1 %vm3077_vm4, %v8350_v6  ;;  %6084 = vmatpush1.bf16.msra.mxu1 %v6083_v27  ;;  %v5120_v27 = vld [vmem:[%s9428_s3 + $0x4b8] sm:$0xff] }
 0x396   : > { %6086 = vmatprep.subr.bf16.mxu1 %v6085_v9  ;;  %v4118_v9 = vld [vmem:[%s9430_s5] sm:$0xff]  ;;  %v6113_v5 = vpack.c.bf16 %v5120_v27, %v5118_v25  ;;  %v4128_v25 = vld [vmem:[%s9430_s5 + $0x50] sm:$0xff]  ;;  %v4129_v27 = vld [vmem:[%s9430_s5 + $0x58] sm:$0xff] }
 0x397   : > { %v6245_v43 = vpack.c.bf16 %v4129_v27, %v4128_v25  ;;  %v5157_v25 = vld [vmem:[%s9428_s3 + $0x5e0] sm:$0xff]  ;;  %v5159_v27 = vld [vmem:[%s9428_s3 + $0x5f0] sm:$0xff] }
 0x398   : > { %3536 = vmatmul.mubr.f32.gmra.mrb[36].mxu1 %v8364_v26 }
 0x399   : > { %5056 = vmatprep.mubr.msk.f32.mxu1 %vm3077_vm4, %v8376_v21  ;;  %6088 = vmatpush1.bf16.msra.mxu1 %v6087_v54  ;;  %v6230_v54 = vpack.c.bf16 %v4119_v51, %v4118_v9 }
 0x39a   : > { %6090 = vmatprep.subr.bf16.mxu1 %v6089_v22  ;;  %v4121_v22 = vld [vmem:[%s9430_s5 + $0x18] sm:$0xff] }
 0x39b   : > { %6231 = vmatpush3.bf16.msra.mxu0 %v6230_v54  ;;  %v3135_v54 = vmax.f32 %v8217_v3, %v8485_v44  ;;  %v5137_v44 = vld [vmem:[%s9428_s3 + $0x540] sm:$0xff] }
 0x39c   : > { %3542 = vmatmul.mubr.f32.gmra.mrb[38].mxu1 %v8390_v24  ;;  %6232 = vmatprep.subr.bf16.mxu0 %v6772_v31 }
 0x39d   : > { %6092 = vmatpush1.bf16.msra.mxu1 %v6091_v20  ;;  %5105 = vmatprep.mubr.msk.f32.mxu1 %vm3077_vm4, %v8402_v57  ;;  %v6099_v57 = vpack.c.bf16 %v5095_v2, %v5093_v55  ;;  %v5124_v20 = vld [vmem:[%s9428_s3 + $0x4d8] sm:$0xff]  ;;  %v6236_v2 = vpack.c.bf16 %v4123_v52, %v4122_v13 }
 0x39e   : > { %6094 = vmatprep.subr.bf16.mxu1 %v6093_v0  ;;  %v6233_v0 = vpack.c.bf16 %v4121_v22, %v4120_v58  ;;  %v6117_v19 = vpack.c.bf16 %v5124_v20, %v5122_v11  ;;  %v5128_v55 = vld [vmem:[%s9428_s3 + $0x4f8] sm:$0xff]  ;;  %v5133_v58 = vld [vmem:[%s9428_s3 + $0x520] sm:$0xff]  ;;  %v5138_v22 = vld [vmem:[%s9428_s3 + $0x548] sm:$0xff]  ;;  %v3171_v20 = vadd.f32 %v8277_v8, %v3135_v54 }
 0x39f   : > { %v5139_v11 = vld [vmem:[%s9428_s3 + $0x550] sm:$0xff]  ;;  %v5144_v13 = vld [vmem:[%s9428_s3 + $0x578] sm:$0xff]  ;;  %v5169_v54 = vld [vmem:[%s9428_s3 + $0x600] sm:$0xff] }
 0x3a0   : > { %6234 = vmatpush3.bf16.msra.mxu0 %v6233_v0  ;;  %v5142_v0 = vld [vmem:[%s9428_s3 + $0x568] sm:$0xff]  ;;  %v6135_v52 = vpack.c.bf16 %v5139_v11, %v5137_v44  ;;  %v5173_v44 = vld [vmem:[%s9428_s3 + $0x620] sm:$0xff]  ;;  %v5175_v11 = vld [vmem:[%s9428_s3 + $0x630] sm:$0xff] }
 0x3a1   : > { %6096 = vmatpush1.bf16.msra.mxu1 %v6095_v34  ;;  %v5123_v34 = vld [vmem:[%s9428_s3 + $0x4d0] sm:$0xff]  ;;  %6235 = vmatprep.subr.bf16.mxu0 %v6772_v31 }
 0x3a2   : > { %6098 = vmatprep.subr.bf16.mxu1 %v6097_v1  ;;  %v5126_v1 = vld [vmem:[%s9428_s3 + $0x4e8] sm:$0xff] }
 0x3a4   : > { %6237 = vmatpush3.bf16.msra.mxu0 %v6236_v2 }
 0x3a5   : > { %6100 = vmatpush1.bf16.msra.mxu1 %v6099_v57  ;;  %6238 = vmatprep.subr.bf16.mxu0 %v6772_v31 }
 0x3a6   : > { %6102 = vmatprep.subr.bf16.mxu1 %v6101_v17  ;;  %v6121_v17 = vpack.c.bf16 %v5128_v55, %v5126_v1  ;;  %v5146_v1 = vld [vmem:[%s9428_s3 + $0x588] sm:$0xff]  ;;  %v5148_v55 = vld [vmem:[%s9428_s3 + $0x598] sm:$0xff] }
 0x3a9   : > { %6104 = vmatpush1.bf16.msra.mxu1 %v6103_v7  ;;  %v6239_v7 = vpack.c.bf16 %v4125_v47, %v4124_v38  ;;  %v8910_v38 = vmax.f32 %v8513_v41, 0.0  ;;  %v6141_v47 = vpack.c.bf16 %v5148_v55, %v5146_v1 }
 0x3aa   : > { %6106 = vmatprep.subr.bf16.mxu1 %v6105_v60  ;;  %v4126_v60 = vld [vmem:[%s9430_s5 + $0x40] sm:$0xff] }
 0x3ab   : > { %6240 = vmatpush3.bf16.msra.mxu0 %v6239_v7  ;;  %v6242_v37 = vpack.c.bf16 %v4127_v14, %v4126_v60  ;;  %v5151_v7 = vld [vmem:[%s9428_s3 + $0x5b0] sm:$0xff]  ;;  %v5154_v60 = vld [vmem:[%s9428_s3 + $0x5c8] sm:$0xff]  ;;  %v5156_v14 = vld [vmem:[%s9428_s3 + $0x5d8] sm:$0xff] }
 0x3ac   : > { %6241 = vmatprep.subr.bf16.mxu0 %v6772_v31 }
 0x3ad   : > { %6108 = vmatpush1.bf16.msra.mxu1 %v6107_v56  ;;  %v5131_v56 = vld [vmem:[%s9428_s3 + $0x510] sm:$0xff] }
 0x3ae   : > { %6110 = vmatprep.subr.bf16.mxu1 %v6109_v12  ;;  %v5134_v12 = vld [vmem:[%s9428_s3 + $0x528] sm:$0xff]  ;;  %v6127_v9 = vpack.c.bf16 %v5131_v56, %v5129_v42  ;;  %v5155_v42 = vld [vmem:[%s9428_s3 + $0x5d0] sm:$0xff] }
 0x3af   : > { %v6129_v51 = vpack.c.bf16 %v5136_v40, %v5134_v12  ;;  %6243 = vmatpush3.bf16.msra.mxu0 %v6242_v37  ;;  %v5158_v56 = vld [vmem:[%s9428_s3 + $0x5e8] sm:$0xff]  ;;  %v5160_v12 = vld [vmem:[%s9428_s3 + $0x5f8] sm:$0xff] }
 0x3b0   : > { %3665 = vmatmul.mubr.f32.vlgmr.msra.gmra.mrb[24].mxu1 %v8420_v28  ;;  %v5121_v28 = vld [vmem:[%s9428_s3 + $0x4c0] sm:$0xff]  ;;  %6244 = vmatprep.subr.bf16.mxu0 %v6772_v31  ;;  %v6153_v37 = vpack.c.bf16 %v5160_v12, %v5158_v56  ;;  %v5196_v56 = vld [vmem:[%s9428_s3 + $0x6d8] sm:$0xff] }
 0x3b1   : > { %5106 = vmatprep.mubr.msk.f32.mxu1 %vm3077_vm4, %v8428_v50  ;;  %6112 = vmatpush1.bf16.msra.mxu1 %v6111_v32  ;;  %v6119_v57 = vpack.c.bf16 %v5123_v34, %v5121_v28  ;;  %v5135_v32 = vld [vmem:[%s9428_s3 + $0x530] sm:$0xff]  ;;  %v8898_v34 = vmax.f32 %v3171_v20, 0.0  ;;  %v5178_v20 = vld [vmem:[%s9428_s3 + $0x648] sm:$0xff] }
 0x3b2   : > { %6114 = vmatprep.subr.bf16.mxu1 %v6113_v5  ;;  %v5140_v5 = vld [vmem:[%s9428_s3 + $0x558] sm:$0xff]  ;;  %v6131_v62 = vpack.c.bf16 %v5135_v32, %v5133_v58  ;;  %v5143_v28 = vld [vmem:[%s9428_s3 + $0x570] sm:$0xff]  ;;  %v6155_v58 = vpack.c.bf16 %v5159_v27, %v5157_v25  ;;  %v5198_v25 = vld [vmem:[%s9428_s3 + $0x6e8] sm:$0xff] }
 0x3b3   : > { %v6133_v3 = vpack.c.bf16 %v5140_v5, %v5138_v22  ;;  %6246 = vmatpush3.bf16.msra.mxu0 %v6245_v43  ;;  %v5171_v22 = vld [vmem:[%s9428_s3 + $0x610] sm:$0xff]  ;;  %v5174_v5 = vld [vmem:[%s9428_s3 + $0x628] sm:$0xff]  ;;  %v5176_v43 = vld [vmem:[%s9428_s3 + $0x638] sm:$0xff] }
 0x3b4   : > { %3671 = vmatmul.mubr.f32.gmra.mrb[26].mxu1 %v8442_v15  ;;  %6247 = vmatprep.subr.bf16.mxu0 %v6772_v31  ;;  %v5200_v27 = vld [vmem:[%s9428_s3 + $0x6f8] sm:$0xff] }
 0x3b5   : > { %5107 = vmatprep.mubr.msk.f32.mxu1 %vm3077_vm4, %v8454_v49  ;;  %6116 = vmatpush1.bf16.msra.mxu1 %v6115_v59  ;;  %v6137_v59 = vpack.c.bf16 %v5144_v13, %v5142_v0  ;;  %v5180_v0 = vld [vmem:[%s9428_s3 + $0x658] sm:$0xff]  ;;  %v6163_v13 = vpack.c.bf16 %v5175_v11, %v5173_v44  ;;  %v5201_v44 = vld [vmem:[%s9428_s3 + $0x700] sm:$0xff]  ;;  %v5203_v11 = vld [vmem:[%s9428_s3 + $0x710] sm:$0xff] }
 0x3b6   : > { %6118 = vmatprep.subr.bf16.mxu1 %v6117_v19  ;;  %v5141_v19 = vld [vmem:[%s9428_s3 + $0x560] sm:$0xff] }
 0x3b7   : > { %v6139_v2 = vpack.c.bf16 %v5143_v28, %v5141_v19  ;;  %v5179_v19 = vld [vmem:[%s9428_s3 + $0x650] sm:$0xff]  ;;  %v5182_v28 = vld [vmem:[%s9428_s3 + $0x668] sm:$0xff] }
 0x3b8   : > { %3677 = vmatmul.mubr.f32.gmra.mrb[28].mxu1 %v8467_v61 }
 0x3b9   : > { %5108 = vmatprep.mubr.msk.f32.mxu1 %vm3077_vm4, %v8476_v10  ;;  %6120 = vmatpush1.bf16.msra.mxu1 %v6119_v57  ;;  %v5145_v57 = vld [vmem:[%s9428_s3 + $0x580] sm:$0xff] }
 0x3ba   : > { %6122 = vmatprep.subr.bf16.mxu1 %v6121_v17  ;;  %v5147_v17 = vld [vmem:[%s9428_s3 + $0x590] sm:$0xff] }
 0x3bb   : > { %v6143_v41 = vpack.c.bf16 %v5147_v17, %v5145_v57  ;;  %v5186_v57 = vld [vmem:[%s9428_s3 + $0x688] sm:$0xff]  ;;  %v5188_v17 = vld [vmem:[%s9428_s3 + $0x698] sm:$0xff] }
 0x3bc   : > { %3683 = vmatmul.mubr.f32.gmra.mrb[30].mxu1 %v8492_v46  ;;  %v6173_v39 = vpack.c.bf16 %v5188_v17, %v5186_v57 }
 0x3bd   : > { %5109 = vmatprep.mubr.msk.f32.mxu1 %vm3077_vm4, %v8320_v53  ;;  %6124 = vmatpush1.bf16.msra.mxu1 %v6123_v45  ;;  %v6149_v45 = vpack.c.bf16 %v5156_v14, %v5154_v60 }
 0x3be   : > { %6126 = vmatprep.subr.bf16.mxu1 %v6125_v48  ;;  %v5153_v48 = vld [vmem:[%s9428_s3 + $0x5c0] sm:$0xff] }
 0x3bf   : > { %v6151_v40 = vpack.c.bf16 %v5155_v42, %v5153_v48  ;;  %v3125_v48 = vmax.f32 %v8162_v33, %v8509_v30  ;;  %v5194_v42 = vld [vmem:[%s9428_s3 + $0x6c8] sm:$0xff]  ;;  %v5193_v33 = vld [vmem:[%s9428_s3 + $0x6c0] sm:$0xff]  ;;  %v5195_v30 = vld [vmem:[%s9428_s3 + $0x6d0] sm:$0xff] }
 0x3c0   : > { %3689 = vmatmul.mubr.f32.gmra.mrb[32].mxu1 %v8338_v16 }
 0x3c1   : > { %5110 = vmatprep.mubr.msk.f32.mxu1 %vm3077_vm4, %v8350_v6  ;;  %6128 = vmatpush1.bf16.msra.mxu1 %v6127_v9  ;;  %v5170_v9 = vld [vmem:[%s9428_s3 + $0x608] sm:$0xff] }
 0x3c2   : > { %6130 = vmatprep.subr.bf16.mxu1 %v6129_v51  ;;  %v5172_v51 = vld [vmem:[%s9428_s3 + $0x618] sm:$0xff] }
 0x3c3   : > { %v6157_v32 = vpack.c.bf16 %v5172_v51, %v5170_v9  ;;  %v6183_v9 = vpack.c.bf16 %v5195_v30, %v5193_v33  ;;  %v6185_v51 = vpack.c.bf16 %v5200_v27, %v5198_v25  ;;  %v5238_v33 = vld [vmem:[%s9430_s5 + $0xe0] sm:$0xff]  ;;  %v5240_v27 = vld [vmem:[%s9430_s5 + $0xf0] sm:$0xff] }
 0x3c4   : > { %3695 = vmatmul.mubr.f32.gmra.mrb[34].mxu1 %v8364_v26 }
 0x3c5   : > { %5111 = vmatprep.mubr.msk.f32.mxu1 %vm3077_vm4, %v8376_v21  ;;  %6132 = vmatpush1.bf16.msra.mxu1 %v6131_v62  ;;  %v6159_v62 = vpack.c.bf16 %v5171_v22, %v5169_v54  ;;  %v5202_v22 = vld [vmem:[%s9428_s3 + $0x708] sm:$0xff] }
 0x3c6   : > { %6134 = vmatprep.subr.bf16.mxu1 %v6133_v3  ;;  %v6161_v3 = vpack.c.bf16 %v5176_v43, %v5174_v5  ;;  %v5204_v5 = vld [vmem:[%s9428_s3 + $0x718] sm:$0xff] }
 0x3c8   : > { %3701 = vmatmul.mubr.f32.gmra.mrb[36].mxu1 %v8390_v24 }
 0x3c9   : > { %5112 = vmatprep.mubr.msk.f32.mxu1 %vm3077_vm4, %v8898_v34  ;;  %6136 = vmatpush1.bf16.msra.mxu1 %v6135_v52  ;;  %v6165_v52 = vpack.c.bf16 %v5180_v0, %v5178_v20  ;;  %v5206_v20 = vld [vmem:[%s9428_s3 + $0x728] sm:$0xff]  ;;  %v5208_v0 = vld [vmem:[%s9428_s3 + $0x738] sm:$0xff] }
 0x3ca   : > { %6138 = vmatprep.subr.bf16.mxu1 %v6137_v59  ;;  %v5177_v59 = vld [vmem:[%s9428_s3 + $0x640] sm:$0xff] }
 0x3cb   : > { %v6167_v1 = vpack.c.bf16 %v5179_v19, %v5177_v59  ;;  %v5207_v59 = vld [vmem:[%s9428_s3 + $0x730] sm:$0xff]  ;;  %v5210_v19 = vld [vmem:[%s9428_s3 + $0x748] sm:$0xff] }
 0x3cc   : > { %3707 = vmatmul.mubr.f32.gmra.mrb[38].mxu1 %v8910_v38 }
 0x3cd   : > { %6140 = vmatpush1.bf16.msra.mxu1 %v6139_v2  ;;  %5161 = vmatprep.mubr.msk.f32.mxu1 %vm3077_vm4, %v8320_v53  ;;  %v6147_v53 = vpack.c.bf16 %v5151_v7, %v5149_v36  ;;  %v5181_v2 = vld [vmem:[%s9428_s3 + $0x660] sm:$0xff]  ;;  %v5190_v36 = vld [vmem:[%s9428_s3 + $0x6a8] sm:$0xff]  ;;  %v5192_v7 = vld [vmem:[%s9428_s3 + $0x6b8] sm:$0xff] }
 0x3ce   : > { %6142 = vmatprep.subr.bf16.mxu1 %v6141_v47  ;;  %v5183_v47 = vld [vmem:[%s9428_s3 + $0x670] sm:$0xff]  ;;  %v6177_v14 = vpack.c.bf16 %v5192_v7, %v5190_v36  ;;  %v5227_v36 = vld [vmem:[%s9430_s5 + $0x88] sm:$0xff] }
 0x3cf   : > { %v6171_v29 = vpack.c.bf16 %v5183_v47, %v5181_v2  ;;  %v5214_v2 = vld [vmem:[%s9428_s3 + $0x768] sm:$0xff]  ;;  %v5216_v47 = vld [vmem:[%s9428_s3 + $0x778] sm:$0xff] }
 0x3d0   : > { %v6201_v17 = vpack.c.bf16 %v5216_v47, %v5214_v2  ;;  %v5242_v47 = vld [vmem:[%s9430_s5 + $0x100] sm:$0xff] }
 0x3d1   : > { %6144 = vmatpush1.bf16.msra.mxu1 %v6143_v41  ;;  %v5185_v41 = vld [vmem:[%s9428_s3 + $0x680] sm:$0xff] }
 0x3d2   : > { %6146 = vmatprep.subr.bf16.mxu1 %v6145_v63  ;;  %v5187_v63 = vld [vmem:[%s9428_s3 + $0x690] sm:$0xff] }
 0x3d3   : > { %v6175_v60 = vpack.c.bf16 %v5187_v63, %v5185_v41  ;;  %v5226_v63 = vld [vmem:[%s9430_s5 + $0x80] sm:$0xff] }
 0x3d4   : > { %v6206_v7 = vpack.c.bf16 %v5227_v36, %v5226_v63  ;;  %v5261_v63 = vld [vmem:[%s9430_s5 + $0x198] sm:$0xff] }
 0x3d5   : > { %6148 = vmatpush1.bf16.msra.mxu1 %v6147_v53  ;;  %v5189_v53 = vld [vmem:[%s9428_s3 + $0x6a0] sm:$0xff] }
 0x3d6   : > { %6150 = vmatprep.subr.bf16.mxu1 %v6149_v45  ;;  %v5191_v45 = vld [vmem:[%s9428_s3 + $0x6b0] sm:$0xff] }
 0x3d7   : > { %v6179_v12 = vpack.c.bf16 %v5191_v45, %v5189_v53  ;;  %v5235_v53 = vld [vmem:[%s9430_s5 + $0xc8] sm:$0xff] }
 0x3d9   : > { %6152 = vmatpush1.bf16.msra.mxu1 %v6151_v40  ;;  %v6181_v40 = vpack.c.bf16 %v5196_v56, %v5194_v42  ;;  %v5237_v42 = vld [vmem:[%s9430_s5 + $0xd8] sm:$0xff] }
 0x3da   : > { %6154 = vmatprep.subr.bf16.mxu1 %v6153_v37  ;;  %v9059_v37 = vadd.f32 %v8277_v8, %v3125_v48  ;;  %v5236_v48 = vld [vmem:[%s9430_s5 + $0xd0] sm:$0xff] }
 0x3db   : > { %v6221_v56 = vpack.c.bf16 %v5237_v42, %v5236_v48  ;;  %v5264_v48 = vld [vmem:[%s9430_s5 + $0x1b0] sm:$0xff]  ;;  %v5265_v42 = vld [vmem:[%s9430_s5 + $0x1b8] sm:$0xff] }
 0x3dc   : > { %v3185_v54 = vmax.f32 %v9059_v37, 0.0  ;;  %v5239_v37 = vld [vmem:[%s9430_s5 + $0xe8] sm:$0xff] }
 0x3dd   : > { %6156 = vmatpush1.bf16.msra.mxu1 %v6155_v58  ;;  %v5197_v58 = vld [vmem:[%s9428_s3 + $0x6e0] sm:$0xff]  ;;  %v6224_v25 = vpack.c.bf16 %v5239_v37, %v5238_v33  ;;  %v5249_v33 = vld [vmem:[%s9430_s5 + $0x138] sm:$0xff]  ;;  %v5267_v37 = vld [vmem:[%s9430_s5 + $0x1c8] sm:$0xff] }
 0x3de   : > { %6158 = vmatprep.subr.bf16.mxu1 %v6157_v32  ;;  %v5199_v32 = vld [vmem:[%s9428_s3 + $0x6f0] sm:$0xff] }
 0x3df   : > { %v6187_v43 = vpack.c.bf16 %v5199_v32, %v5197_v58  ;;  %v9458_v58 = vmov 0.0  }
 0x3e0   : > { %3846 = vmatmul.mubr.f32.vlgmr.msra.gmra.mrb[24].mxu1 %v8338_v16  ;;  %v5184_v16 = vld [vmem:[%s9428_s3 + $0x678] sm:$0xff]  ;;  %5781 = vmatprep.mubr.msk.f32.mxu0 %vm6773_vm5, %v9458_v58 }
 0x3e1   : > { %5162 = vmatprep.mubr.msk.f32.mxu1 %vm3077_vm4, %v8350_v6  ;;  %6160 = vmatpush1.bf16.msra.mxu1 %v6159_v62  ;;  %v6169_v55 = vpack.c.bf16 %v5184_v16, %v5182_v28  ;;  %v3184_v62 = vmax.f32 %v8536_v4, 0.0  ;;  %v6191_v4 = vpack.c.bf16 %v5203_v11, %v5201_v44  ;;  %v5212_v28 = vld [vmem:[%s9428_s3 + $0x758] sm:$0xff] }
 0x3e2   : > { %6162 = vmatprep.subr.bf16.mxu1 %v6161_v3  ;;  %v6189_v3 = vpack.c.bf16 %v5204_v5, %v5202_v22  ;;  %v6197_v16 = vpack.c.bf16 %v5212_v28, %v5210_v19  ;;  %v5258_v19 = vld [vmem:[%s9430_s5 + $0x180] sm:$0xff]  ;;  %v5259_v28 = vld [vmem:[%s9430_s5 + $0x188] sm:$0xff] }
 0x3e3   : > { %v6278_v2 = vpack.c.bf16 %v5259_v28, %v5258_v19 }
 0x3e4   : > { %3852 = vmatmul.mubr.f32.gmra.mrb[26].mxu1 %v8364_v26 }
 0x3e5   : > { %5163 = vmatprep.mubr.msk.f32.mxu1 %vm3077_vm4, %v8376_v21  ;;  %6164 = vmatpush1.bf16.msra.mxu1 %v6163_v13  ;;  %v6193_v13 = vpack.c.bf16 %v5208_v0, %v5206_v20 }
 0x3e6   : > { %6166 = vmatprep.subr.bf16.mxu1 %v6165_v52  ;;  %v5205_v52 = vld [vmem:[%s9428_s3 + $0x720] sm:$0xff] }
 0x3e8   : > { %3858 = vmatmul.mubr.f32.gmra.mrb[28].mxu1 %v8390_v24 }
 0x3e9   : > { %5164 = vmatprep.mubr.msk.f32.mxu1 %vm3077_vm4, %v8898_v34  ;;  %6168 = vmatpush1.bf16.msra.mxu1 %v6167_v1  ;;  %v5209_v1 = vld [vmem:[%s9428_s3 + $0x740] sm:$0xff] }
 0x3ea   : > { %6170 = vmatprep.subr.bf16.mxu1 %v6169_v55  ;;  %v5211_v55 = vld [vmem:[%s9428_s3 + $0x750] sm:$0xff] }
 0x3eb   : > { %v6199_v57 = vpack.c.bf16 %v5211_v55, %v5209_v1 }
 0x3ec   : > { %3864 = vmatmul.mubr.f32.gmra.mrb[30].mxu1 %v8910_v38 }
 0x3ed   : > { %5165 = vmatprep.mubr.msk.f32.mxu1 %vm3077_vm4, %v8428_v50  ;;  %6172 = vmatpush1.bf16.msra.mxu1 %v6171_v29  ;;  %v5213_v29 = vld [vmem:[%s9428_s3 + $0x760] sm:$0xff] }
 0x3ee   : > { %6174 = vmatprep.subr.bf16.mxu1 %v6173_v39  ;;  %v5215_v39 = vld [vmem:[%s9428_s3 + $0x770] sm:$0xff] }
 0x3ef   : > { %v6203_v41 = vpack.c.bf16 %v5215_v39, %v5213_v29  ;;  %v5243_v39 = vld [vmem:[%s9430_s5 + $0x108] sm:$0xff] }
 0x3f0   : > { %3870 = vmatmul.mubr.f32.gmra.mrb[32].mxu1 %v8442_v15 }
 0x3f1   : > { %5166 = vmatprep.mubr.msk.f32.mxu1 %vm3077_vm4, %v8454_v49  ;;  %6176 = vmatpush1.bf16.msra.mxu1 %v6175_v60 }
 0x3f2   : > { %6178 = vmatprep.subr.bf16.mxu1 %v6177_v14  ;;  %v5234_v14 = vld [vmem:[%s9430_s5 + $0xc0] sm:$0xff] }
 0x3f3   : > { %v6218_v45 = vpack.c.bf16 %v5235_v53, %v5234_v14  ;;  %v5246_v14 = vld [vmem:[%s9430_s5 + $0x120] sm:$0xff] }
 0x3f4   : > { %3876 = vmatmul.mubr.f32.gmra.mrb[34].mxu1 %v8467_v61 }
 0x3f5   : > { %5167 = vmatprep.mubr.msk.f32.mxu1 %vm3077_vm4, %v8476_v10  ;;  %6180 = vmatpush1.bf16.msra.mxu1 %v6179_v12  ;;  %v4132_v12 = vld [vmem:[%s9430_s5 + $0x70] sm:$0xff] }
 0x3f6   : > { %6182 = vmatprep.subr.bf16.mxu1 %v6181_v40  ;;  %v4133_v40 = vld [vmem:[%s9430_s5 + $0x78] sm:$0xff] }
 0x3f7   : > { %v6251_v30 = vpack.c.bf16 %v4133_v40, %v4132_v12  ;;  %v6287_v12 = vpack.c.bf16 %v5265_v42, %v5264_v48  ;;  %v5248_v40 = vld [vmem:[%s9430_s5 + $0x130] sm:$0xff] }
 0x3f8   : > { %3882 = vmatmul.mubr.f32.gmra.mrb[36].mxu1 %v8492_v46 }
 0x3f9   : > { %5168 = vmatprep.mubr.msk.f32.mxu1 %vm3077_vm4, %v3185_v54  ;;  %6184 = vmatpush1.bf16.msra.mxu1 %v6183_v9  ;;  %v5241_v9 = vld [vmem:[%s9430_s5 + $0xf8] sm:$0xff] }
 0x3fa   : > { %6186 = vmatprep.subr.bf16.mxu1 %v6185_v51  ;;  %v6227_v51 = vpack.c.bf16 %v5241_v9, %v5240_v27  ;;  %v5250_v9 = vld [vmem:[%s9430_s5 + $0x140] sm:$0xff] }
 0x3fc   : > { %3888 = vmatmul.mubr.f32.gmra.mrb[38].mxu1 %v3184_v62 }
 0x3fd   : > { %6188 = vmatpush1.bf16.msra.mxu1 %v6187_v43  ;;  %5217 = vmatprep.mubr.msk.f32.mxu1 %vm3077_vm4, %v8428_v50  ;;  %v6195_v50 = vpack.c.bf16 %v5207_v59, %v5205_v52 }
 0x3fe   : > { %6190 = vmatprep.subr.bf16.mxu1 %v6189_v3 }
 0x401   : > { %6192 = vmatpush1.bf16.msra.mxu1 %v6191_v4 }
 0x402   : > { %6194 = vmatprep.subr.bf16.mxu1 %v6193_v13  ;;  %v9230_v13 = vld [vmem:[%s9429_s4] ss:$0 sm:$0xff] }
 0x405   : > { %6196 = vmatpush1.bf16.msra.mxu1 %v6195_v50 }
 0x406   : > { %6198 = vmatprep.subr.bf16.mxu1 %v6197_v16 }
 0x409   : > { %6200 = vmatpush1.bf16.msra.mxu1 %v6199_v57 }
 0x40a   : > { %6202 = vmatprep.subr.bf16.mxu1 %v6201_v17 }
 0x40d   : > { %6204 = vmatpush1.bf16.msra.mxu1 %v6203_v41  ;;  %v5260_v41 = vld [vmem:[%s9430_s5 + $0x190] sm:$0xff] }
 0x40e   : > { %6205 = vmatprep.subr.bf16.mxu1 %v6772_v31 }
 0x410   : > { %4027 = vmatmul.mubr.f32.vlgmr.msra.gmra.mrb[24].mxu1 %v8442_v15  ;;  %v3137_v15 = vmax.f32 %v8230_v35, %v8533_v18  ;;  %v5228_v35 = vld [vmem:[%s9430_s5 + $0x90] sm:$0xff]  ;;  %v5233_v18 = vld [vmem:[%s9430_s5 + $0xb8] sm:$0xff] }
 0x411   : > { %5218 = vmatprep.mubr.msk.f32.mxu1 %vm3077_vm4, %v8454_v49  ;;  %6207 = vmatpush3.bf16.msra.mxu1 %v6206_v7 }
 0x412   : > { %6208 = vmatprep.subr.bf16.mxu1 %v6772_v31  ;;  %v3173_v49 = vadd.f32 %v8277_v8, %v3137_v15  ;;  %v5229_v8 = vld [vmem:[%s9430_s5 + $0x98] sm:$0xff] }
 0x414   : > { %4033 = vmatmul.mubr.f32.gmra.mrb[26].mxu1 %v8467_v61  ;;  %v3197_v61 = vmax.f32 %v3173_v49, 0.0 }
 0x415   : > { %5219 = vmatprep.mubr.msk.f32.mxu1 %vm3077_vm4, %v8476_v10 }
 0x418   : > { %4039 = vmatmul.mubr.f32.gmra.mrb[28].mxu1 %v8492_v46  ;;  %v5232_v46 = vld [vmem:[%s9430_s5 + $0xb0] sm:$0xff] }
 0x419   : > { %5220 = vmatprep.mubr.msk.f32.mxu1 %vm3077_vm4, %v3185_v54 }
 0x41c   : > { %4045 = vmatmul.mubr.f32.gmra.mrb[30].mxu1 %v3184_v62 }
 0x41d   : > { %5221 = vmatprep.mubr.msk.f32.mxu1 %vm3077_vm4, %v8350_v6  ;;  %v3196_v6 = vmax.f32 %v8557_v23, 0.0  ;;  %v6215_v23 = vpack.c.bf16 %v5233_v18, %v5232_v46  ;;  %v5263_v46 = vld [vmem:[%s9430_s5 + $0x1a8] sm:$0xff] }
 0x420   : > { %4051 = vmatmul.mubr.f32.gmra.mrb[32].mxu1 %v8364_v26  ;;  %v6209_v26 = vpack.c.bf16 %v5229_v8, %v5228_v35  ;;  %v5244_v35 = vld [vmem:[%s9430_s5 + $0x110] sm:$0xff] }
 0x421   : > { %5222 = vmatprep.mubr.msk.f32.mxu1 %vm3077_vm4, %v8376_v21  ;;  %v5230_v21 = vld [vmem:[%s9430_s5 + $0xa0] sm:$0xff] }
 0x422   : > { %6210 = vmatpush3.bf16.msra.mxu1 %v6209_v26 }
 0x423   : > { %6211 = vmatprep.subr.bf16.mxu1 %v6772_v31 }
 0x424   : > { %4057 = vmatmul.mubr.f32.gmra.mrb[34].mxu1 %v8390_v24  ;;  %v5231_v24 = vld [vmem:[%s9430_s5 + $0xa8] sm:$0xff] }
 0x425   : > { %5223 = vmatprep.mubr.msk.f32.mxu1 %vm3077_vm4, %v8898_v34  ;;  %v6212_v10 = vpack.c.bf16 %v5231_v24, %v5230_v21  ;;  %v4130_v34 = vld [vmem:[%s9430_s5 + $0x60] sm:$0xff]  ;;  %v5245_v24 = vld [vmem:[%s9430_s5 + $0x118] sm:$0xff] }
 0x427   : > { %6213 = vmatpush3.bf16.msra.mxu1 %v6212_v10  ;;  %v5262_v10 = vld [vmem:[%s9430_s5 + $0x1a0] sm:$0xff] }
 0x428   : > { %4063 = vmatmul.mubr.f32.gmra.mrb[36].mxu1 %v8910_v38  ;;  %6214 = vmatprep.subr.bf16.mxu1 %v6772_v31  ;;  %v4131_v38 = vld [vmem:[%s9430_s5 + $0x68] sm:$0xff] }
 0x429   : > { %5224 = vmatprep.mubr.msk.f32.mxu1 %vm3077_vm4, %v3197_v61  ;;  %v6248_v60 = vpack.c.bf16 %v4131_v38, %v4130_v34  ;;  %v6254_v61 = vpack.c.bf16 %v5243_v39, %v5242_v47  ;;  %v6257_v38 = vpack.c.bf16 %v5245_v24, %v5244_v35  ;;  %v4478_v39 = vld [vmem:[%s9432_s7 + $0x10] sm:$0xff] }
 0x42b   : > { %6216 = vmatpush3.bf16.msra.mxu1 %v6215_v23  ;;  %6249 = vmatpush3.bf16.msra.mxu0 %v6248_v60  ;;  %v6284_v60 = vpack.c.bf16 %v5263_v46, %v5262_v10  ;;  %v5275_v46 = vld [vmem:[%s9433_s8] ss:$0 sm:$0xff] }
 0x42c   : > { %4069 = vmatmul.mubr.f32.gmra.mrb[38].mxu1 %v3196_v6  ;;  %6217 = vmatprep.subr.bf16.mxu1 %v6772_v31  ;;  %v6281_v6 = vpack.c.bf16 %v5261_v63, %v5260_v41 }
 0x42d   : > { %6250 = vmatprep.subr.bf16.mxu0 %v6772_v31  ;;  %5746 = vmatprep.mubr.msk.f32.mxu1 %vm6773_vm5, %v9458_v58 }
 0x42f   : > { %6219 = vmatpush3.bf16.msra.mxu1 %v6218_v45  ;;  %6252 = vmatpush3.bf16.msra.mxu0 %v6251_v30  ;;  %v5247_v45 = vld [vmem:[%s9430_s5 + $0x128] sm:$0xff]  ;;  %v5266_v30 = vld [vmem:[%s9430_s5 + $0x1c0] sm:$0xff] }
 0x430   : > { %6220 = vmatprep.subr.bf16.mxu1 %v6772_v31  ;;  %6277 = vmatprep.subr.bf16.mxu0 %v6772_v31  ;;  %v6290_v27 = vpack.c.bf16 %v5267_v37, %v5266_v30 }
 0x433   : > { %6222 = vmatpush3.bf16.msra.mxu1 %v6221_v56  ;;  %v6260_v56 = vpack.c.bf16 %v5247_v45, %v5246_v14 }
 0x434   : > { %6223 = vmatprep.subr.bf16.mxu1 %v6772_v31 }
 0x437   : > { %6225 = vmatpush3.bf16.msra.mxu1 %v6224_v25  ;;  %v6263_v25 = vpack.c.bf16 %v5249_v33, %v5248_v40 }
 0x438   : > { %6226 = vmatprep.subr.bf16.mxu1 %v6772_v31 }
 0x43b   : > { %6228 = vmatpush3.bf16.msra.mxu1 %v6227_v51  ;;  %v5251_v51 = vld [vmem:[%s9430_s5 + $0x148] sm:$0xff] }
 0x43c   : > { %6253 = vmatprep.subr.bf16.mxu1 %v6772_v31 }
 0x4e3   : > { %v4028_v32 = vpop.f32.mrb[24].mxu1 }
 0x4e4   : > { %v4030_v54 = vpop.f32.mrb[25].mxu1 }
 0x4e7   : > { %v4034_v22 = vpop.f32.mrb[26].mxu1 }
 0x4e8   : > { %v4036_v5 = vpop.f32.mrb[27].mxu1 }
 0x4eb   : > { %v4040_v43 = vpop.f32.mrb[28].mxu1 }
 0x4ec   : > { %v4042_v62 = vpop.f32.mrb[29].mxu1 }
 0x4ef   : > { %v4046_v3 = vpop.f32.mrb[30].mxu1 }
 0x4f0   : > { %v4048_v44 = vpop.f32.mrb[31].mxu1 }
 0x4f3   : > { %v4052_v11 = vpop.f32.mrb[32].mxu1 }
 0x4f4   : > { %v4091_v20 = vmax.f32 %v4028_v32, %v4052_v11  ;;  %v4054_v0 = vpop.f32.mrb[33].mxu1  ;;  %v5268_v32 = vld [vmem:[%s9430_s5 + $0x1d0] sm:$0xff] }
 0x4f5   : > { %v4092_v4 = vmax.f32 %v4030_v54, %v4054_v0  ;;  %v5269_v54 = vld [vmem:[%s9430_s5 + $0x1d8] sm:$0xff]  ;;  %v5254_v0 = vld [vmem:[%s9430_s5 + $0x160] sm:$0xff] }
 0x4f7   : > { %v4099_v52 = vmax.f32 %v4091_v20, %v4092_v4  ;;  %v4058_v59 = vpop.f32.mrb[34].mxu1  ;;  %v5255_v4 = vld [vmem:[%s9430_s5 + $0x168] sm:$0xff] }
 0x4f8   : > { %v4093_v50 = vmax.f32 %v4034_v22, %v4058_v59  ;;  %v4060_v16 = vpop.f32.mrb[35].mxu1  ;;  %v6266_v22 = vpack.c.bf16 %v5251_v51, %v5250_v9  ;;  %v5273_v59 = vld [vmem:[%s9430_s5 + $0x1f8] sm:$0xff]  ;;  %v6272_v19 = vpack.c.bf16 %v5255_v4, %v5254_v0 }
 0x4f9   : > { %v4110_v1 = vadd.f32 %v9230_v13, %v4099_v52  ;;  %v4094_v55 = vmax.f32 %v4036_v5, %v4060_v16  ;;  %v6293_v5 = vpack.c.bf16 %v5269_v54, %v5268_v32  ;;  %v5272_v52 = vld [vmem:[%s9430_s5 + $0x1f0] sm:$0xff] }
 0x4fa   : > { %v6299_v28 = vpack.c.bf16 %v5273_v59, %v5272_v52  ;;  %v5256_v16 = vld [vmem:[%s9430_s5 + $0x170] sm:$0xff] }
 0x4fb   : > { %v4114_v57 = vmax.f32 %v4110_v1, 0.0  ;;  %v4100_v17 = vmax.f32 %v4093_v50, %v4094_v55  ;;  %v4064_v29 = vpop.f32.mrb[36].mxu1  ;;  %v5257_v1 = vld [vmem:[%s9430_s5 + $0x178] sm:$0xff] }
 0x4fc   : > { %v4095_v36 = vmax.f32 %v4040_v43, %v4064_v29  ;;  %v4066_v7 = vpop.f32.mrb[37].mxu1  ;;  %v5252_v43 = vld [vmem:[%s9430_s5 + $0x150] sm:$0xff]  ;;  %v6275_v55 = vpack.c.bf16 %v5257_v1, %v5256_v16 }
 0x4fd   : > { %v4111_v15 = vadd.f32 %v9230_v13, %v4100_v17  ;;  %v4096_v49 = vmax.f32 %v4042_v62, %v4066_v7  ;;  %5782 = vmatmul.mubr.f32.vlgmr.msra.gmra.mrb[48].mxu0 %v4114_v57  ;;  %v5253_v62 = vld [vmem:[%s9430_s5 + $0x158] sm:$0xff]  ;;  %v4476_v17 = vld [vmem:[%s9432_s7] sm:$0xff] }
 0x4fe   : > { %6279 = vmatpush3.bf16.msra.mxu0 %v6278_v2  ;;  %5851 = vmatprep.mubr.msk.f32.mxu0 %vm6773_vm5, %v9458_v58  ;;  %v6269_v11 = vpack.c.bf16 %v5253_v62, %v5252_v43 }
 0x4ff   : > { %v4115_v8 = vmax.f32 %v4111_v15, 0.0  ;;  %v9257_v26 = vmax.f32 %v4095_v36, %v4096_v49  ;;  %v4070_v21 = vpop.f32.mrb[38].mxu1  ;;  %6280 = vmatprep.subr.bf16.mxu0 %v6772_v31 }
 0x500   : > { %v4097_v18 = vmax.f32 %v4046_v3, %v4070_v21  ;;  %v4072_v23 = vpop.f32.mrb[39].mxu1  ;;  %v5270_v3 = vld [vmem:[%s9430_s5 + $0x1e0] sm:$0xff] }
 0x501   : > { %v4098_v34 = vmax.f32 %v4048_v44, %v4072_v23  ;;  %5747 = vmatmul.mubr.f32.vlgmr.msra.gmra.mrb[40].mxu1 %v4115_v8  ;;  %v5271_v44 = vld [vmem:[%s9430_s5 + $0x1e8] sm:$0xff]  ;;  %v4112_v2 = vadd.f32 %v9230_v13, %v9257_v26  ;;  %v5274_v26 = vld [vmem:[%s9431_s6] ss:$0 sm:$0xff] }
 0x502   : > { %6255 = vmatpush3.bf16.msra.mxu1 %v6254_v61  ;;  %6282 = vmatpush3.bf16.msra.mxu0 %v6281_v6  ;;  %v6296_v20 = vpack.c.bf16 %v5271_v44, %v5270_v3 }
 0x503   : > { %v4102_v53 = vmax.f32 %v4097_v18, %v4098_v34  ;;  %6256 = vmatprep.subr.bf16.mxu1 %v6772_v31  ;;  %6283 = vmatprep.subr.bf16.mxu0 %v6772_v31  ;;  %v4116_v57 = vmax.f32 %v4112_v2, 0.0 }
 0x504   : > { %5816 = vmatprep.mubr.msk.f32.mxu1 %vm6773_vm5, %v9458_v58 }
 0x505   : > { %v4113_v50 = vadd.f32 %v9230_v13, %v4102_v53  ;;  %v4477_v13 = vld [vmem:[%s9432_s7 + $0x8] sm:$0xff] }
 0x506   : > { %6258 = vmatpush3.bf16.msra.mxu1 %v6257_v38  ;;  %6285 = vmatpush3.bf16.msra.mxu0 %v6284_v60  ;;  %v6302_v29 = vpack.c.bf16 %v4477_v13, %v4476_v17 }
 0x507   : > { %6259 = vmatprep.subr.bf16.mxu1 %v6772_v31  ;;  %6286 = vmatprep.subr.bf16.mxu0 %v6772_v31  ;;  %v4117_v47 = vmax.f32 %v4113_v50, 0.0 }
 0x50a   : > { %6261 = vmatpush3.bf16.msra.mxu1 %v6260_v56  ;;  %6288 = vmatpush3.bf16.msra.mxu0 %v6287_v12 }
 0x50b   : > { %6262 = vmatprep.subr.bf16.mxu1 %v6772_v31  ;;  %6289 = vmatprep.subr.bf16.mxu0 %v6772_v31 }
 0x50e   : > { %6264 = vmatpush3.bf16.msra.mxu1 %v6263_v25  ;;  %6291 = vmatpush3.bf16.msra.mxu0 %v6290_v27 }
 0x50f   : > { %6265 = vmatprep.subr.bf16.mxu1 %v6772_v31  ;;  %6292 = vmatprep.subr.bf16.mxu0 %v6772_v31 }
 0x512   : > { %6267 = vmatpush3.bf16.msra.mxu1 %v6266_v22  ;;  %6294 = vmatpush3.bf16.msra.mxu0 %v6293_v5 }
 0x513   : > { %6268 = vmatprep.subr.bf16.mxu1 %v6772_v31  ;;  %6295 = vmatprep.subr.bf16.mxu0 %v6772_v31 }
 0x516   : > { %6270 = vmatpush3.bf16.msra.mxu1 %v6269_v11  ;;  %6297 = vmatpush3.bf16.msra.mxu0 %v6296_v20 }
 0x517   : > { %6271 = vmatprep.subr.bf16.mxu1 %v6772_v31  ;;  %6298 = vmatprep.subr.bf16.mxu0 %v6772_v31 }
 0x51a   : > { %6273 = vmatpush3.bf16.msra.mxu1 %v6272_v19  ;;  %6300 = vmatpush3.bf16.msra.mxu0 %v6299_v28 }
 0x51b   : > { %6274 = vmatprep.subr.bf16.mxu1 %v6772_v31 }
 0x51d   : > { %5852 = vmatmul.mubr.f32.vlgmr.msra.gmra.mrb[50].mxu0 %v4117_v47 }
 0x51e   : > { %6276 = vmatpush3.bf16.msra.mxu1 %v6275_v55 }
 0x51f   : > { %6301 = vmatprep.subr.bf16.mxu1 %v6772_v31 }
 0x521   : > { %5817 = vmatmul.mubr.f32.vlgmr.msra.gmra.mrb[42].mxu1 %v4116_v57 }
 0x522   : > { %5862 = vmatprep.mubr.msk.f32.mxu1 %vm6773_vm5, %v9458_v58  ;;  %6303 = vmatpush3.bf16.msra.mxu1 %v6302_v29  ;;  %v4479_v58 = vld [vmem:[%s9432_s7 + $0x18] sm:$0xff] }
 0x523   : > { %6304 = vmatprep.subr.bf16.mxu1 %v6772_v31  ;;  %v6305_v41 = vpack.c.bf16 %v4479_v58, %v4478_v39 }
 0x526   : > { %6306 = vmatpush3.bf16.msra.mxu1 %v6305_v41 }
 0x5d0   : > { %v4287_v63 = vpop.f32.mrb[48].mxu0 }
 0x5d1   : > { %v5783_v36 = vpop.f32.mrb[49].mxu0 }
 0x5d4   : > { %v4217_v7 = vpop.f32.mrb[40].mxu1 }
 0x5d5   : > { %v4288_v15 = vadd.f32 %v4287_v63, %v4217_v7  ;;  %v5748_v49 = vpop.f32.mrb[41].mxu1 }
 0x5f0   : > { %v4462_v61 = vpop.f32.mrb[50].mxu0 }
 0x5f1   : > { %v5853_v6 = vpop.f32.mrb[51].mxu0 }
 0x5f4   : > { %v4374_v31 = vpop.f32.mrb[42].mxu1 }
 0x5f5   : > { %v4378_v35 = vadd.f32 %v4374_v31, %v4288_v15  ;;  %v5818_v8 = vpop.f32.mrb[43].mxu1 }
 0x5f7   : > { %v4466_v21 = vadd.f32 %v4462_v61, %v4378_v35 }
 0x5f9   : > { %v4474_v24 = vadd.f32 %v5274_v26, %v4466_v21 }
 0x5fb   : > { %v4475_v10 = vmax.f32 %v4474_v24, 0.0 }
 0x5fd   : > { %5863 = vmatmul.mubr.msk.f32.vlgmr.msra.gmra.mrb[44].mxu1 %vm4487_vm6, %v4475_v10 }
 0x6d0   : > { %v4557_v18 = vpop.f32.mrb[44].mxu1 }
 0x6d1   : > { %v4558_v23 = vadd.f32 %v5275_v46, %v4557_v18  ;;  %v5864_v34 = vpop.f32.mrb[45].mxu1 }
 0x6d3   : > { %4562 = vst.msk [vmem:[%s472_s26] sm:$0xff] %vm4561_vm7, %v4558_v23 }
 0x6d4   : > { %6718 = shalt.err (!%p6715_p5)
}
 0x6d5   : > { %s6719_s28 = scalar_lea.hbm %s9381_s29, 128  ;;  %s6723_s26 = scalar_lea.hbm %s9434_s9, 256 }
 0x6d6   : > { %p6720_p7 = scmp.ne.s32.totalorder %s9381_s29, %s6719_s28  ;;  %p6724_p12 = scmp.lt.u32.totalorder %s9381_s29, %s9434_s9 }
 0x6d7   : > { %p6725_p13 = scmp.lt.u32.totalorder %s6723_s26, %s6719_s28  ;;  %p6727_p1 = scmp.lt.u32.totalorder %s6719_s28, %s9381_s29 }
 0x6d8   : > { %p6721_p10 = pnand %p6720_p7, %p6863_p6 }
 0x6d9   : > { %p6726_p0 = por %p6725_p13, %p6724_p12 }
 0x6da   : > { %p6722_p11 = pneg %p6721_p10 }
 0x6db   : > { %p6728_p2 = por %p6727_p1, %p6726_p0 }
 0x6dd   : > { %p6729_p3 = pnand %p6728_p2, %p6722_p11 }
 0x6df   : > { %6732 = shalt.err (!%p6729_p3)
}
 0x6e0   : > { %6661 = dma.vmem_to_hbm [thread:$0]  (%p6863_p6), %s9383_s21, 128, %s9381_s29, %s4564_s14  }
 0x6e1 PF: > { %s4589_s17 = sand.u32 1, %s6755_s30   ;;  %p6664_p4 = pnand %p4644_p9, %p6867_p8 }
 0x6e2   : > { %s4590_s22 = scalar_lea.sflag [#allocation4], %s4589_s17 }
 0x6e3   : > { %6750 = dma.done.wait (!%p6664_p4), %s4590_s22, 128  }
 0x6e4   : > { %6752 = vsyncadd (!%p6664_p4), %s4590_s22, 4294967168  ;;  %p19_p5 = scmp.ge.s32.totalorder %s6848_s15, 4   ;;  %s9460_s30 = smov %s6759_s10 }
 0x6e5   : > { %s9461_s10 = smov %s6763_s11  ;;  %s9462_s11 = smov %s6861_s18 }
 0x6e6   : > { %s9463_s12 = smov %s6848_s15  ;;  %21 = sbr.rel (!%p19_p5) target bundleno = 3 (0x3), region = 152 }
 0x6ed   :  { %4595 = vsyncpa [#allocation4], 1 }
 0x6ee   :  { %4597 = vsyncpa [#allocation4 + $0x1], 1 }

</bundles_post_ra>
